<compile_context>
chip_gen: v7x
topology: tpu7x:2x2x1
jax: 0.10.0
libtpu: 0.0.40
codegen_flags: <defaults>
</compile_context>

<pallas_src>
import numpy as np
import jax
import jax.numpy as jnp
from jax.experimental import pallas as pl
from jax.experimental.pallas import tpu as pltpu


# ----------------------------------------------------------------------------
# Static mask structure (taps that survive the PixelCNN causal masks)
# ----------------------------------------------------------------------------

def _nonzero_taps(kh, kw, mask_type):
    taps = []
    for i in range(kh):
        for j in range(kw):
            if i < kh // 2:
                taps.append((i, j))
            elif i == kh // 2 and j < kw // 2 + (1 if mask_type == 'B' else 0):
                taps.append((i, j))
    return taps


TAPS_A7 = _nonzero_taps(7, 7, 'A')   # 24 of 49 taps survive the 'A' mask
TAPS_B3 = _nonzero_taps(3, 3, 'B')   # 5 of 9 taps survive the 'B' mask


# ----------------------------------------------------------------------------
# Fused PixelCNN kernel
# ----------------------------------------------------------------------------

def _full_spec(arr):
    nd = arr.ndim
    return pl.BlockSpec(arr.shape, lambda g, _nd=nd: (0,) * _nd)


def _build_kernel(H, W, h, n_blocks, imgs_per_step):
    HW = H * W
    M = imgs_per_step * HW
    K7 = len(TAPS_A7)

    # Sublane (row) shift of the flattened (M, C) activation for each surviving
    # 3x3 'B' tap, in the SAME order the (5h, h) weights are packed.
    shifts_b3 = [-((ki - 1) * W + (kj - 1)) for (ki, kj) in TAPS_B3]  # [W+1, W, W-1, 1, 0]

    def kernel(xcol_ref, fw_ref, fb_ref, w1_ref, b1_ref, w2_ref, b2_ref,
               w3_ref, b3_ref, tw_ref, tb_ref, ew_ref, eb_ref, m3_ref,
               logits_ref):
        # ---- first layer: masked 7x7 'A' conv as a single im2col matmul -----
        cols = xcol_ref[...].reshape(M, K7)                     # bf16 (M, 24)
        x = jnp.dot(cols, fw_ref[...],
                    preferred_element_type=jnp.float32) + fb_ref[...]   # (M, 2h) f32

        m3 = m3_ref[...]                                        # (M, 5h) tap-validity mask

        # ---- residual blocks -------------------------------------------------
        for b in range(n_blocks):
            a = jnp.maximum(x, 0.0)                             # ReLU
            y = jnp.dot(a.astype(jnp.bfloat16), w1_ref[b],
                        preferred_element_type=jnp.float32) + b1_ref[b]
            y = jnp.maximum(y, 0.0)                             # (M, h)

            # masked 3x3 'B' conv: the 5 causal taps are sublane shifts of y;
            # concatenate along channels, mask invalid (out-of-image) sources,
            # and run ONE K=5h MXU matmul.
            parts = []
            for s in shifts_b3:
                if s == 0:
                    parts.append(y)
                else:
                    parts.append(jnp.concatenate(
                        [jnp.zeros((s, h), jnp.float32), y[:M - s, :]], axis=0))
            ycat = jnp.concatenate(parts, axis=1) * m3          # (M, 5h)
            z = jnp.dot(ycat.astype(jnp.bfloat16), w2_ref[b],
                        preferred_element_type=jnp.float32) + b2_ref[b]
            z = jnp.maximum(z, 0.0)                             # (M, h)

            x = x + jnp.dot(z.astype(jnp.bfloat16), w3_ref[b],
                            preferred_element_type=jnp.float32) + b3_ref[b]

        # ---- top layer + evidence (logits) ------------------------------------
        a = jnp.maximum(x, 0.0)
        t = jnp.dot(a.astype(jnp.bfloat16), tw_ref[...],
                    preferred_element_type=jnp.float32) + tb_ref[...]
        t = jnp.maximum(t, 0.0)                                 # (M, d)
        logits = jnp.dot(t.astype(jnp.bfloat16), ew_ref[...],
                         preferred_element_type=jnp.float32) + eb_ref[...]
        logits_ref[...] = logits.reshape(imgs_per_step, HW, 256)   # lane-dense write

    return kernel


def _build_tap_mask(H, W, h, imgs_per_step):
    """0/1 validity mask for each 3x3 'B' tap, laid out as (M, 5h) to match the
    channel-concatenated shifted windows inside the kernel."""
    HW = H * W
    ii = np.arange(H)[:, None]
    jj = np.arange(W)[None, :]
    cols = []
    for (ki, kj) in TAPS_B3:
        di, dj = ki - 1, kj - 1
        valid = ((ii + di >= 0) & (jj + dj >= 0) & (jj + dj < W)).astype(np.float32)
        cols.append(np.repeat(valid.reshape(HW, 1), h, axis=1))
    m = np.concatenate(cols, axis=1)                       # (HW, 5h)
    return jnp.asarray(np.tile(m, (imgs_per_step, 1)))     # (M, 5h)


def _images_per_step(N, HW, target_rows=2048):
    """Batch several images per grid step (bigger matmul M) while keeping
    >= 2 grid steps so both v7x TensorCores get work."""
    b = max(1, min(N, max(1, target_rows // HW)))
    if N >= 2:
        b = min(b, N // 2)
    while N % b:
        b -= 1
    return max(b, 1)


def pixelcnn_forward(x_nchw, params):
    N, _, H, W = x_nchw.shape
    HW = H * W
    n_blocks, _, h = params['w1'].shape          # w1: (n_blocks, 2h, h)
    B = _images_per_step(N, HW)

    # im2col for the masked 7x7 'A' first conv (Cin == 1): gather the 24
    # surviving taps outside the kernel (tiny 1-channel input) so the kernel's
    # first layer is a single (M, 24) @ (24, 2h) bf16 MXU matmul.
    x = x_nchw[:, 0, :, :].astype(jnp.float32)               # (N, H, W)
    xp = jnp.pad(x, ((0, 0), (3, 3), (3, 3)))
    cols = jnp.stack([xp[:, i:i + H, j:j + W] for (i, j) in TAPS_A7], axis=-1)
    x_cols = cols.reshape(N, HW, len(TAPS_A7)).astype(jnp.bfloat16)

    mask3 = _build_tap_mask(H, W, h, B)                      # (B*HW, 5h) f32

    inputs = [x_cols, params['first_w'], params['first_b'],
              params['w1'], params['b1'], params['w2'], params['b2'],
              params['w3'], params['b3'], params['top_w'], params['top_b'],
              params['ev_w'], params['ev_b'], mask3]
    in_specs = [pl.BlockSpec((B, HW, len(TAPS_A7)), lambda g: (g, 0, 0))]
    in_specs += [_full_spec(a) for a in inputs[1:]]

    kernel = _build_kernel(H, W, h, n_blocks, B)

    logits_flat = pl.pallas_call(
        kernel,
        out_shape=jax.ShapeDtypeStruct((N, HW, 256), jnp.float32),
        grid=(N // B,),
        in_specs=in_specs,
        out_specs=pl.BlockSpec((B, HW, 256), lambda g: (g, 0, 0)),
        compiler_params=pltpu.CompilerParams(
            dimension_semantics=("parallel",)),
    )(*inputs)

    # Softmax + NCHW relayout as trivial fused XLA epilogue (halves kernel
    # HBM writeback vs. also emitting probs from the kernel).
    probs_flat = jax.nn.softmax(logits_flat, axis=-1)
    logits = jnp.transpose(logits_flat.reshape(N, H, W, 256), (0, 3, 1, 2))
    probs = jnp.transpose(probs_flat.reshape(N, H, W, 256), (0, 3, 1, 2))
    return logits, probs


# ----------------------------------------------------------------------------
# Parameter initialization (mirrors the PyTorch __init__ shapes/inits)
# ----------------------------------------------------------------------------

def _kaiming_conv(key, cout, cin, kh, kw):
    fan_in = cin * kh * kw
    std = float(np.sqrt(2.0 / fan_in))
    return std * jax.random.normal(key, (cout, cin, kh, kw), jnp.float32)


def _conv_bias(key, cout, fan_in):
    bound = float(1.0 / np.sqrt(fan_in))
    return jax.random.uniform(key, (cout,), jnp.float32, -bound, bound)


def _oihw_to_hwio(w):
    return jnp.transpose(w, (2, 3, 1, 0))


def init_params(key, h, n, d):
    nb = n + 1
    keys = iter(jax.random.split(key, 8 + 6 * nb))
    params = {}

    # first_layer: MaskedConvolution(1, 2h, 7x7, 'A', pad=3) -> pack surviving taps
    w_hwio = _oihw_to_hwio(_kaiming_conv(next(keys), 2 * h, 1, 7, 7))      # (7,7,1,2h)
    params['first_w'] = jnp.stack(
        [w_hwio[i, j, 0, :] for (i, j) in TAPS_A7], 0).astype(jnp.bfloat16)  # (24, 2h)
    params['first_b'] = _conv_bias(next(keys), 2 * h, 1 * 7 * 7).reshape(1, 2 * h)

    w1s, b1s, w2s, b2s, w3s, b3s = [], [], [], [], [], []
    for _ in range(nb):
        w1s.append(_oihw_to_hwio(_kaiming_conv(next(keys), h, 2 * h, 1, 1)).reshape(2 * h, h))
        b1s.append(_conv_bias(next(keys), h, 2 * h).reshape(1, h))

        w2_hwio = _oihw_to_hwio(_kaiming_conv(next(keys), h, h, 3, 3))     # (3,3,h,h)
        w2s.append(jnp.concatenate([w2_hwio[i, j] for (i, j) in TAPS_B3], axis=0))  # (5h, h)
        b2s.append(_conv_bias(next(keys), h, h * 3 * 3).reshape(1, h))

        w3s.append(_oihw_to_hwio(_kaiming_conv(next(keys), 2 * h, h, 1, 1)).reshape(h, 2 * h))
        b3s.append(_conv_bias(next(keys), 2 * h, h).reshape(1, 2 * h))

    params['w1'] = jnp.stack(w1s).astype(jnp.bfloat16)   # (nb, 2h, h)
    params['b1'] = jnp.stack(b1s)                        # (nb, 1, h)
    params['w2'] = jnp.stack(w2s).astype(jnp.bfloat16)   # (nb, 5h, h)
    params['b2'] = jnp.stack(b2s)                        # (nb, 1, h)
    params['w3'] = jnp.stack(w3s).astype(jnp.bfloat16)   # (nb, h, 2h)
    params['b3'] = jnp.stack(b3s)                        # (nb, 1, 2h)

    # top_layer: ReLU, Conv2d(2h, d, 1x1), ReLU
    params['top_w'] = _oihw_to_hwio(
        _kaiming_conv(next(keys), d, 2 * h, 1, 1)).reshape(2 * h, d).astype(jnp.bfloat16)
    params['top_b'] = _conv_bias(next(keys), d, 2 * h).reshape(1, d)

    # evidence: Conv2d(d, 256, 1x1)
    params['ev_w'] = _oihw_to_hwio(
        _kaiming_conv(next(keys), 256, d, 1, 1)).reshape(d, 256).astype(jnp.bfloat16)
    params['ev_b'] = _conv_bias(next(keys), 256, d).reshape(1, 256)
    return params


# ----------------------------------------------------------------------------
# Main
# ----------------------------------------------------------------------------

if __name__ == "__main__":
    h, n, d = 8, 1, 16            # small PixelCNN: n+1 = 2 residual blocks
    N, H, W = 2, 16, 16

    key = jax.random.PRNGKey(0)
    k_x, k_p = jax.random.split(key)
    x = jax.random.uniform(k_x, (N, 1, H, W), jnp.float32)   # NCHW like PyTorch
    params = init_params(k_p, h, n, d)

    fwd = jax.jit(pixelcnn_forward)
    logits, probs = fwd(x, params)
    jax.block_until_ready((logits, probs))

    assert logits.shape == (N, 256, H, W)
    assert probs.shape == (N, 256, H, W)
    assert bool(jnp.all(jnp.isfinite(logits)))
    # softmax over the channel dim sums to 1
    assert bool(jnp.allclose(jnp.sum(probs, axis=1), 1.0, atol=1e-5))

    print("KERNEL_OK")
</pallas_src>

<mosaic_0001>
module attributes {stable_mosaic.version = 11 : i64} {
  func.func @kernel(%arg0: i32, %arg1: memref<1x256x24xbf16, #tpu.memory_space<vmem>>, %arg2: memref<24x16xbf16, #tpu.memory_space<vmem>>, %arg3: memref<1x16xf32, #tpu.memory_space<vmem>>, %arg4: memref<2x16x8xbf16, #tpu.memory_space<vmem>>, %arg5: memref<2x1x8xf32, #tpu.memory_space<vmem>>, %arg6: memref<2x40x8xbf16, #tpu.memory_space<vmem>>, %arg7: memref<2x1x8xf32, #tpu.memory_space<vmem>>, %arg8: memref<2x8x16xbf16, #tpu.memory_space<vmem>>, %arg9: memref<2x1x16xf32, #tpu.memory_space<vmem>>, %arg10: memref<16x16xbf16, #tpu.memory_space<vmem>>, %arg11: memref<1x16xf32, #tpu.memory_space<vmem>>, %arg12: memref<16x256xbf16, #tpu.memory_space<vmem>>, %arg13: memref<1x256xf32, #tpu.memory_space<vmem>>, %arg14: memref<256x40xf32, #tpu.memory_space<vmem>>, %arg15: memref<1x256x256xf32, #tpu.memory_space<vmem>>) attributes {dimension_semantics = [#tpu.dimension_semantics<parallel>], iteration_bounds = array<i64: 2>, scalar_prefetch = 0 : i64, scratch_operands = 0 : i64, tpu.core_type = #tpu.core_type<tc>, window_params = [{transform_indices = @transform_0, window_bounds = array<i64: 1, 256, 24>}, {pipeline_mode = #tpu.pipeline_mode<synchronous>, transform_indices = @transform_1, window_bounds = array<i64: 24, 16>}, {pipeline_mode = #tpu.pipeline_mode<synchronous>, transform_indices = @transform_2, window_bounds = array<i64: 1, 16>}, {pipeline_mode = #tpu.pipeline_mode<synchronous>, transform_indices = @transform_3, window_bounds = array<i64: 2, 16, 8>}, {pipeline_mode = #tpu.pipeline_mode<synchronous>, transform_indices = @transform_4, window_bounds = array<i64: 2, 1, 8>}, {pipeline_mode = #tpu.pipeline_mode<synchronous>, transform_indices = @transform_5, window_bounds = array<i64: 2, 40, 8>}, {pipeline_mode = #tpu.pipeline_mode<synchronous>, transform_indices = @transform_6, window_bounds = array<i64: 2, 1, 8>}, {pipeline_mode = #tpu.pipeline_mode<synchronous>, transform_indices = @transform_7, window_bounds = array<i64: 2, 8, 16>}, {pipeline_mode = #tpu.pipeline_mode<synchronous>, transform_indices = @transform_8, window_bounds = array<i64: 2, 1, 16>}, {pipeline_mode = #tpu.pipeline_mode<synchronous>, transform_indices = @transform_9, window_bounds = array<i64: 16, 16>}, {pipeline_mode = #tpu.pipeline_mode<synchronous>, transform_indices = @transform_10, window_bounds = array<i64: 1, 16>}, {pipeline_mode = #tpu.pipeline_mode<synchronous>, transform_indices = @transform_11, window_bounds = array<i64: 16, 256>}, {pipeline_mode = #tpu.pipeline_mode<synchronous>, transform_indices = @transform_12, window_bounds = array<i64: 1, 256>}, {pipeline_mode = #tpu.pipeline_mode<synchronous>, transform_indices = @transform_13, window_bounds = array<i64: 256, 40>}, {transform_indices = @transform_14, window_bounds = array<i64: 1, 256, 256>}]} {
    %c0 = arith.constant 0 : index
    %c0_0 = arith.constant 0 : index
    %c0_1 = arith.constant 0 : index
    %0 = vector.load %arg1[%c0, %c0_0, %c0_1] : memref<1x256x24xbf16, #tpu.memory_space<vmem>>, vector<1x256x24xbf16>
    %1 = vector.shape_cast %0 : vector<1x256x24xbf16> to vector<256x24xbf16>
    %c0_2 = arith.constant 0 : index
    %c0_3 = arith.constant 0 : index
    %2 = vector.load %arg2[%c0_2, %c0_3] : memref<24x16xbf16, #tpu.memory_space<vmem>>, vector<24x16xbf16>
    %cst = arith.constant dense<0.000000e+00> : vector<256x16xf32>
    %3 = tpu.matmul %1, %2, %cst {dimension_numbers = #tpu.dot_dimension_numbers<[1], [0], [0], [1], [0, 0, 1, 1], [], []>} : vector<256x24xbf16>, vector<24x16xbf16>, vector<256x16xf32> -> vector<256x16xf32>
    %c0_4 = arith.constant 0 : index
    %c0_5 = arith.constant 0 : index
    %4 = vector.load %arg3[%c0_4, %c0_5] : memref<1x16xf32, #tpu.memory_space<vmem>>, vector<1x16xf32>
    %5 = vector.broadcast %4 : vector<1x16xf32> to vector<256x16xf32>
    %6 = arith.addf %3, %5 : vector<256x16xf32>
    %c0_6 = arith.constant 0 : index
    %c0_7 = arith.constant 0 : index
    %7 = vector.load %arg14[%c0_6, %c0_7] : memref<256x40xf32, #tpu.memory_space<vmem>>, vector<256x40xf32>
    %cst_8 = arith.constant 0.000000e+00 : f32
    %8 = vector.broadcast %cst_8 : f32 to vector<256x16xf32>
    %9 = arith.maximumf %6, %8 : vector<256x16xf32>
    %10 = arith.truncf %9 : vector<256x16xf32> to vector<256x16xbf16>
    %c0_9 = arith.constant 0 : index
    %c0_10 = arith.constant 0 : index
    %c0_11 = arith.constant 0 : index
    %11 = vector.load %arg4[%c0_9, %c0_10, %c0_11] : memref<2x16x8xbf16, #tpu.memory_space<vmem>>, vector<1x16x8xbf16>
    %12 = vector.shape_cast %11 : vector<1x16x8xbf16> to vector<16x8xbf16>
    %cst_12 = arith.constant dense<0.000000e+00> : vector<256x8xf32>
    %13 = tpu.matmul %10, %12, %cst_12 {dimension_numbers = #tpu.dot_dimension_numbers<[1], [0], [0], [1], [0, 0, 1, 1], [], []>} : vector<256x16xbf16>, vector<16x8xbf16>, vector<256x8xf32> -> vector<256x8xf32>
    %c0_13 = arith.constant 0 : index
    %c0_14 = arith.constant 0 : index
    %c0_15 = arith.constant 0 : index
    %14 = vector.load %arg5[%c0_13, %c0_14, %c0_15] : memref<2x1x8xf32, #tpu.memory_space<vmem>>, vector<1x1x8xf32>
    %15 = vector.shape_cast %14 : vector<1x1x8xf32> to vector<1x8xf32>
    %16 = vector.broadcast %15 : vector<1x8xf32> to vector<256x8xf32>
    %17 = arith.addf %13, %16 : vector<256x8xf32>
    %cst_16 = arith.constant 0.000000e+00 : f32
    %18 = vector.broadcast %cst_16 : f32 to vector<256x8xf32>
    %19 = arith.maximumf %17, %18 : vector<256x8xf32>
    %cst_17 = arith.constant 0.000000e+00 : f32
    %20 = vector.broadcast %cst_17 : f32 to vector<17x8xf32>
    %21 = vector.extract_strided_slice %19 {offsets = [0, 0], sizes = [239, 8], strides = [1, 1]} : vector<256x8xf32> to vector<239x8xf32>
    %22 = tpu.concatenate %20, %21 in 0 : vector<17x8xf32>, vector<239x8xf32> -> vector<256x8xf32>
    %cst_18 = arith.constant 0.000000e+00 : f32
    %23 = vector.broadcast %cst_18 : f32 to vector<16x8xf32>
    %24 = vector.extract_strided_slice %19 {offsets = [0, 0], sizes = [240, 8], strides = [1, 1]} : vector<256x8xf32> to vector<240x8xf32>
    %25 = tpu.concatenate %23, %24 in 0 : vector<16x8xf32>, vector<240x8xf32> -> vector<256x8xf32>
    %cst_19 = arith.constant 0.000000e+00 : f32
    %26 = vector.broadcast %cst_19 : f32 to vector<15x8xf32>
    %27 = vector.extract_strided_slice %19 {offsets = [0, 0], sizes = [241, 8], strides = [1, 1]} : vector<256x8xf32> to vector<241x8xf32>
    %28 = tpu.concatenate %26, %27 in 0 : vector<15x8xf32>, vector<241x8xf32> -> vector<256x8xf32>
    %cst_20 = arith.constant 0.000000e+00 : f32
    %29 = vector.broadcast %cst_20 : f32 to vector<1x8xf32>
    %30 = vector.extract_strided_slice %19 {offsets = [0, 0], sizes = [255, 8], strides = [1, 1]} : vector<256x8xf32> to vector<255x8xf32>
    %31 = tpu.concatenate %29, %30 in 0 : vector<1x8xf32>, vector<255x8xf32> -> vector<256x8xf32>
    %32 = tpu.concatenate %22, %25, %28, %31, %19 in 1 : vector<256x8xf32>, vector<256x8xf32>, vector<256x8xf32>, vector<256x8xf32>, vector<256x8xf32> -> vector<256x40xf32>
    %33 = arith.mulf %32, %7 : vector<256x40xf32>
    %34 = arith.truncf %33 : vector<256x40xf32> to vector<256x40xbf16>
    %c0_21 = arith.constant 0 : index
    %c0_22 = arith.constant 0 : index
    %c0_23 = arith.constant 0 : index
    %35 = vector.load %arg6[%c0_21, %c0_22, %c0_23] : memref<2x40x8xbf16, #tpu.memory_space<vmem>>, vector<1x40x8xbf16>
    %36 = vector.shape_cast %35 : vector<1x40x8xbf16> to vector<40x8xbf16>
    %cst_24 = arith.constant dense<0.000000e+00> : vector<256x8xf32>
    %37 = tpu.matmul %34, %36, %cst_24 {dimension_numbers = #tpu.dot_dimension_numbers<[1], [0], [0], [1], [0, 0, 1, 1], [], []>} : vector<256x40xbf16>, vector<40x8xbf16>, vector<256x8xf32> -> vector<256x8xf32>
    %c0_25 = arith.constant 0 : index
    %c0_26 = arith.constant 0 : index
    %c0_27 = arith.constant 0 : index
    %38 = vector.load %arg7[%c0_25, %c0_26, %c0_27] : memref<2x1x8xf32, #tpu.memory_space<vmem>>, vector<1x1x8xf32>
    %39 = vector.shape_cast %38 : vector<1x1x8xf32> to vector<1x8xf32>
    %40 = vector.broadcast %39 : vector<1x8xf32> to vector<256x8xf32>
    %41 = arith.addf %37, %40 : vector<256x8xf32>
    %cst_28 = arith.constant 0.000000e+00 : f32
    %42 = vector.broadcast %cst_28 : f32 to vector<256x8xf32>
    %43 = arith.maximumf %41, %42 : vector<256x8xf32>
    %44 = arith.truncf %43 : vector<256x8xf32> to vector<256x8xbf16>
    %c0_29 = arith.constant 0 : index
    %c0_30 = arith.constant 0 : index
    %c0_31 = arith.constant 0 : index
    %45 = vector.load %arg8[%c0_29, %c0_30, %c0_31] : memref<2x8x16xbf16, #tpu.memory_space<vmem>>, vector<1x8x16xbf16>
    %46 = vector.shape_cast %45 : vector<1x8x16xbf16> to vector<8x16xbf16>
    %cst_32 = arith.constant dense<0.000000e+00> : vector<256x16xf32>
    %47 = tpu.matmul %44, %46, %cst_32 {dimension_numbers = #tpu.dot_dimension_numbers<[1], [0], [0], [1], [0, 0, 1, 1], [], []>} : vector<256x8xbf16>, vector<8x16xbf16>, vector<256x16xf32> -> vector<256x16xf32>
    %48 = arith.addf %6, %47 : vector<256x16xf32>
    %c0_33 = arith.constant 0 : index
    %c0_34 = arith.constant 0 : index
    %c0_35 = arith.constant 0 : index
    %49 = vector.load %arg9[%c0_33, %c0_34, %c0_35] : memref<2x1x16xf32, #tpu.memory_space<vmem>>, vector<1x1x16xf32>
    %50 = vector.shape_cast %49 : vector<1x1x16xf32> to vector<1x16xf32>
    %51 = vector.broadcast %50 : vector<1x16xf32> to vector<256x16xf32>
    %52 = arith.addf %48, %51 : vector<256x16xf32>
    %cst_36 = arith.constant 0.000000e+00 : f32
    %53 = vector.broadcast %cst_36 : f32 to vector<256x16xf32>
    %54 = arith.maximumf %52, %53 : vector<256x16xf32>
    %55 = arith.truncf %54 : vector<256x16xf32> to vector<256x16xbf16>
    %c1 = arith.constant 1 : index
    %c0_37 = arith.constant 0 : index
    %c0_38 = arith.constant 0 : index
    %56 = vector.load %arg4[%c1, %c0_37, %c0_38] : memref<2x16x8xbf16, #tpu.memory_space<vmem>>, vector<1x16x8xbf16>
    %57 = vector.shape_cast %56 : vector<1x16x8xbf16> to vector<16x8xbf16>
    %cst_39 = arith.constant dense<0.000000e+00> : vector<256x8xf32>
    %58 = tpu.matmul %55, %57, %cst_39 {dimension_numbers = #tpu.dot_dimension_numbers<[1], [0], [0], [1], [0, 0, 1, 1], [], []>} : vector<256x16xbf16>, vector<16x8xbf16>, vector<256x8xf32> -> vector<256x8xf32>
    %c1_40 = arith.constant 1 : index
    %c0_41 = arith.constant 0 : index
    %c0_42 = arith.constant 0 : index
    %59 = vector.load %arg5[%c1_40, %c0_41, %c0_42] : memref<2x1x8xf32, #tpu.memory_space<vmem>>, vector<1x1x8xf32>
    %60 = vector.shape_cast %59 : vector<1x1x8xf32> to vector<1x8xf32>
    %61 = vector.broadcast %60 : vector<1x8xf32> to vector<256x8xf32>
    %62 = arith.addf %58, %61 : vector<256x8xf32>
    %cst_43 = arith.constant 0.000000e+00 : f32
    %63 = vector.broadcast %cst_43 : f32 to vector<256x8xf32>
    %64 = arith.maximumf %62, %63 : vector<256x8xf32>
    %cst_44 = arith.constant 0.000000e+00 : f32
    %65 = vector.broadcast %cst_44 : f32 to vector<17x8xf32>
    %66 = vector.extract_strided_slice %64 {offsets = [0, 0], sizes = [239, 8], strides = [1, 1]} : vector<256x8xf32> to vector<239x8xf32>
    %67 = tpu.concatenate %65, %66 in 0 : vector<17x8xf32>, vector<239x8xf32> -> vector<256x8xf32>
    %cst_45 = arith.constant 0.000000e+00 : f32
    %68 = vector.broadcast %cst_45 : f32 to vector<16x8xf32>
    %69 = vector.extract_strided_slice %64 {offsets = [0, 0], sizes = [240, 8], strides = [1, 1]} : vector<256x8xf32> to vector<240x8xf32>
    %70 = tpu.concatenate %68, %69 in 0 : vector<16x8xf32>, vector<240x8xf32> -> vector<256x8xf32>
    %cst_46 = arith.constant 0.000000e+00 : f32
    %71 = vector.broadcast %cst_46 : f32 to vector<15x8xf32>
    %72 = vector.extract_strided_slice %64 {offsets = [0, 0], sizes = [241, 8], strides = [1, 1]} : vector<256x8xf32> to vector<241x8xf32>
    %73 = tpu.concatenate %71, %72 in 0 : vector<15x8xf32>, vector<241x8xf32> -> vector<256x8xf32>
    %cst_47 = arith.constant 0.000000e+00 : f32
    %74 = vector.broadcast %cst_47 : f32 to vector<1x8xf32>
    %75 = vector.extract_strided_slice %64 {offsets = [0, 0], sizes = [255, 8], strides = [1, 1]} : vector<256x8xf32> to vector<255x8xf32>
    %76 = tpu.concatenate %74, %75 in 0 : vector<1x8xf32>, vector<255x8xf32> -> vector<256x8xf32>
    %77 = tpu.concatenate %67, %70, %73, %76, %64 in 1 : vector<256x8xf32>, vector<256x8xf32>, vector<256x8xf32>, vector<256x8xf32>, vector<256x8xf32> -> vector<256x40xf32>
    %78 = arith.mulf %77, %7 : vector<256x40xf32>
    %79 = arith.truncf %78 : vector<256x40xf32> to vector<256x40xbf16>
    %c1_48 = arith.constant 1 : index
    %c0_49 = arith.constant 0 : index
    %c0_50 = arith.constant 0 : index
    %80 = vector.load %arg6[%c1_48, %c0_49, %c0_50] : memref<2x40x8xbf16, #tpu.memory_space<vmem>>, vector<1x40x8xbf16>
    %81 = vector.shape_cast %80 : vector<1x40x8xbf16> to vector<40x8xbf16>
    %cst_51 = arith.constant dense<0.000000e+00> : vector<256x8xf32>
    %82 = tpu.matmul %79, %81, %cst_51 {dimension_numbers = #tpu.dot_dimension_numbers<[1], [0], [0], [1], [0, 0, 1, 1], [], []>} : vector<256x40xbf16>, vector<40x8xbf16>, vector<256x8xf32> -> vector<256x8xf32>
    %c1_52 = arith.constant 1 : index
    %c0_53 = arith.constant 0 : index
    %c0_54 = arith.constant 0 : index
    %83 = vector.load %arg7[%c1_52, %c0_53, %c0_54] : memref<2x1x8xf32, #tpu.memory_space<vmem>>, vector<1x1x8xf32>
    %84 = vector.shape_cast %83 : vector<1x1x8xf32> to vector<1x8xf32>
    %85 = vector.broadcast %84 : vector<1x8xf32> to vector<256x8xf32>
    %86 = arith.addf %82, %85 : vector<256x8xf32>
    %cst_55 = arith.constant 0.000000e+00 : f32
    %87 = vector.broadcast %cst_55 : f32 to vector<256x8xf32>
    %88 = arith.maximumf %86, %87 : vector<256x8xf32>
    %89 = arith.truncf %88 : vector<256x8xf32> to vector<256x8xbf16>
    %c1_56 = arith.constant 1 : index
    %c0_57 = arith.constant 0 : index
    %c0_58 = arith.constant 0 : index
    %90 = vector.load %arg8[%c1_56, %c0_57, %c0_58] : memref<2x8x16xbf16, #tpu.memory_space<vmem>>, vector<1x8x16xbf16>
    %91 = vector.shape_cast %90 : vector<1x8x16xbf16> to vector<8x16xbf16>
    %cst_59 = arith.constant dense<0.000000e+00> : vector<256x16xf32>
    %92 = tpu.matmul %89, %91, %cst_59 {dimension_numbers = #tpu.dot_dimension_numbers<[1], [0], [0], [1], [0, 0, 1, 1], [], []>} : vector<256x8xbf16>, vector<8x16xbf16>, vector<256x16xf32> -> vector<256x16xf32>
    %93 = arith.addf %52, %92 : vector<256x16xf32>
    %c1_60 = arith.constant 1 : index
    %c0_61 = arith.constant 0 : index
    %c0_62 = arith.constant 0 : index
    %94 = vector.load %arg9[%c1_60, %c0_61, %c0_62] : memref<2x1x16xf32, #tpu.memory_space<vmem>>, vector<1x1x16xf32>
    %95 = vector.shape_cast %94 : vector<1x1x16xf32> to vector<1x16xf32>
    %96 = vector.broadcast %95 : vector<1x16xf32> to vector<256x16xf32>
    %97 = arith.addf %93, %96 : vector<256x16xf32>
    %cst_63 = arith.constant 0.000000e+00 : f32
    %98 = vector.broadcast %cst_63 : f32 to vector<256x16xf32>
    %99 = arith.maximumf %97, %98 : vector<256x16xf32>
    %100 = arith.truncf %99 : vector<256x16xf32> to vector<256x16xbf16>
    %c0_64 = arith.constant 0 : index
    %c0_65 = arith.constant 0 : index
    %101 = vector.load %arg10[%c0_64, %c0_65] : memref<16x16xbf16, #tpu.memory_space<vmem>>, vector<16x16xbf16>
    %cst_66 = arith.constant dense<0.000000e+00> : vector<256x16xf32>
    %102 = tpu.matmul %100, %101, %cst_66 {dimension_numbers = #tpu.dot_dimension_numbers<[1], [0], [0], [1], [0, 0, 1, 1], [], []>} : vector<256x16xbf16>, vector<16x16xbf16>, vector<256x16xf32> -> vector<256x16xf32>
    %c0_67 = arith.constant 0 : index
    %c0_68 = arith.constant 0 : index
    %103 = vector.load %arg11[%c0_67, %c0_68] : memref<1x16xf32, #tpu.memory_space<vmem>>, vector<1x16xf32>
    %104 = vector.broadcast %103 : vector<1x16xf32> to vector<256x16xf32>
    %105 = arith.addf %102, %104 : vector<256x16xf32>
    %cst_69 = arith.constant 0.000000e+00 : f32
    %106 = vector.broadcast %cst_69 : f32 to vector<256x16xf32>
    %107 = arith.maximumf %105, %106 : vector<256x16xf32>
    %108 = arith.truncf %107 : vector<256x16xf32> to vector<256x16xbf16>
    %c0_70 = arith.constant 0 : index
    %c0_71 = arith.constant 0 : index
    %109 = vector.load %arg12[%c0_70, %c0_71] : memref<16x256xbf16, #tpu.memory_space<vmem>>, vector<16x256xbf16>
    %cst_72 = arith.constant dense<0.000000e+00> : vector<256x256xf32>
    %110 = tpu.matmul %108, %109, %cst_72 {dimension_numbers = #tpu.dot_dimension_numbers<[1], [0], [0], [1], [0, 0, 1, 1], [], []>} : vector<256x16xbf16>, vector<16x256xbf16>, vector<256x256xf32> -> vector<256x256xf32>
    %c0_73 = arith.constant 0 : index
    %c0_74 = arith.constant 0 : index
    %111 = vector.load %arg13[%c0_73, %c0_74] : memref<1x256xf32, #tpu.memory_space<vmem>>, vector<1x256xf32>
    %112 = vector.broadcast %111 : vector<1x256xf32> to vector<256x256xf32>
    %113 = arith.addf %110, %112 : vector<256x256xf32>
    %114 = vector.shape_cast %113 : vector<256x256xf32> to vector<1x256x256xf32>
    %c0_75 = arith.constant 0 : index
    %c0_76 = arith.constant 0 : index
    %c0_77 = arith.constant 0 : index
    %115 = vector.load %arg15[%c0_75, %c0_76, %c0_77] : memref<1x256x256xf32, #tpu.memory_space<vmem>>, vector<1x256x256xf32>
    tpu.vector_store %arg15[%c0_75, %c0_76, %c0_77], %114 {strides = array<i32>} : memref<1x256x256xf32, #tpu.memory_space<vmem>>, vector<1x256x256xf32>,
    return
  }
  func.func @transform_0(%arg0: i32) -> (i32, i32, i32) {
    %c0_i32 = arith.constant 0 : i32
    %c0_i32_0 = arith.constant 0 : i32
    %c0_i32_1 = arith.constant 0 : i32
    return %arg0, %c0_i32, %c0_i32_0 : i32, i32, i32
  }
  func.func @transform_1(%arg0: i32) -> (i32, i32) {
    %c0_i32 = arith.constant 0 : i32
    %c0_i32_0 = arith.constant 0 : i32
    %c0_i32_1 = arith.constant 0 : i32
    return %c0_i32, %c0_i32_0 : i32, i32
  }
  func.func @transform_2(%arg0: i32) -> (i32, i32) {
    %c0_i32 = arith.constant 0 : i32
    %c0_i32_0 = arith.constant 0 : i32
    %c0_i32_1 = arith.constant 0 : i32
    return %c0_i32, %c0_i32_0 : i32, i32
  }
  func.func @transform_3(%arg0: i32) -> (i32, i32, i32) {
    %c0_i32 = arith.constant 0 : i32
    %c0_i32_0 = arith.constant 0 : i32
    %c0_i32_1 = arith.constant 0 : i32
    %c0_i32_2 = arith.constant 0 : i32
    return %c0_i32, %c0_i32_0, %c0_i32_1 : i32, i32, i32
  }
  func.func @transform_4(%arg0: i32) -> (i32, i32, i32) {
    %c0_i32 = arith.constant 0 : i32
    %c0_i32_0 = arith.constant 0 : i32
    %c0_i32_1 = arith.constant 0 : i32
    %c0_i32_2 = arith.constant 0 : i32
    return %c0_i32, %c0_i32_0, %c0_i32_1 : i32, i32, i32
  }
  func.func @transform_5(%arg0: i32) -> (i32, i32, i32) {
    %c0_i32 = arith.constant 0 : i32
    %c0_i32_0 = arith.constant 0 : i32
    %c0_i32_1 = arith.constant 0 : i32
    %c0_i32_2 = arith.constant 0 : i32
    return %c0_i32, %c0_i32_0, %c0_i32_1 : i32, i32, i32
  }
  func.func @transform_6(%arg0: i32) -> (i32, i32, i32) {
    %c0_i32 = arith.constant 0 : i32
    %c0_i32_0 = arith.constant 0 : i32
    %c0_i32_1 = arith.constant 0 : i32
    %c0_i32_2 = arith.constant 0 : i32
    return %c0_i32, %c0_i32_0, %c0_i32_1 : i32, i32, i32
  }
  func.func @transform_7(%arg0: i32) -> (i32, i32, i32) {
    %c0_i32 = arith.constant 0 : i32
    %c0_i32_0 = arith.constant 0 : i32
    %c0_i32_1 = arith.constant 0 : i32
    %c0_i32_2 = arith.constant 0 : i32
    return %c0_i32, %c0_i32_0, %c0_i32_1 : i32, i32, i32
  }
  func.func @transform_8(%arg0: i32) -> (i32, i32, i32) {
    %c0_i32 = arith.constant 0 : i32
    %c0_i32_0 = arith.constant 0 : i32
    %c0_i32_1 = arith.constant 0 : i32
    %c0_i32_2 = arith.constant 0 : i32
    return %c0_i32, %c0_i32_0, %c0_i32_1 : i32, i32, i32
  }
  func.func @transform_9(%arg0: i32) -> (i32, i32) {
    %c0_i32 = arith.constant 0 : i32
    %c0_i32_0 = arith.constant 0 : i32
    %c0_i32_1 = arith.constant 0 : i32
    return %c0_i32, %c0_i32_0 : i32, i32
  }
  func.func @transform_10(%arg0: i32) -> (i32, i32) {
    %c0_i32 = arith.constant 0 : i32
    %c0_i32_0 = arith.constant 0 : i32
    %c0_i32_1 = arith.constant 0 : i32
    return %c0_i32, %c0_i32_0 : i32, i32
  }
  func.func @transform_11(%arg0: i32) -> (i32, i32) {
    %c0_i32 = arith.constant 0 : i32
    %c0_i32_0 = arith.constant 0 : i32
    %c0_i32_1 = arith.constant 0 : i32
    return %c0_i32, %c0_i32_0 : i32, i32
  }
  func.func @transform_12(%arg0: i32) -> (i32, i32) {
    %c0_i32 = arith.constant 0 : i32
    %c0_i32_0 = arith.constant 0 : i32
    %c0_i32_1 = arith.constant 0 : i32
    return %c0_i32, %c0_i32_0 : i32, i32
  }
  func.func @transform_13(%arg0: i32) -> (i32, i32) {
    %c0_i32 = arith.constant 0 : i32
    %c0_i32_0 = arith.constant 0 : i32
    %c0_i32_1 = arith.constant 0 : i32
    return %c0_i32, %c0_i32_0 : i32, i32
  }
  func.func @transform_14(%arg0: i32) -> (i32, i32, i32) {
    %c0_i32 = arith.constant 0 : i32
    %c0_i32_0 = arith.constant 0 : i32
    %c0_i32_1 = arith.constant 0 : i32
    return %arg0, %c0_i32, %c0_i32_0 : i32, i32, i32
  }
}

</mosaic_0001>

<bundles_post_ra>
// kernel: pixelcnn_forward.1
= control target key start
LH: loop header
LB: loop body
LE: loop exit
PB: predicated region body
PF: predicated region fallthrough
CT: control target
= control target key end

     0   :  { %s5597_s29 = smov 0   ;;  %s8055_s0 = inlined_call_operand.vmem [shape: bf16[2,256,24], index: 0, kind: input, shape index: {}]   ;;  %s8056_s1 = inlined_call_operand.vmem [shape: bf16[24,16], index: 1, kind: input, shape index: {}]   ;;  %s8057_s2 = inlined_call_operand.vmem [shape: f32[1,16], index: 2, kind: input, shape index: {}]   ;;  %s8058_s3 = inlined_call_operand.vmem [shape: bf16[2,16,8], index: 3, kind: input, shape index: {}]   ;;  %s8059_s4 = inlined_call_operand.vmem [shape: f32[2,1,8], index: 4, kind: input, shape index: {}]   ;;  %s8060_s5 = inlined_call_operand.vmem [shape: bf16[2,40,8], index: 5, kind: input, shape index: {}]   ;;  %s8061_s6 = inlined_call_operand.vmem [shape: f32[2,1,8], index: 6, kind: input, shape index: {}]   ;;  %s8062_s7 = inlined_call_operand.vmem [shape: bf16[2,8,16], index: 7, kind: input, shape index: {}]   ;;  %s8063_s8 = inlined_call_operand.vmem [shape: f32[2,1,16], index: 8, kind: input, shape index: {}]   ;;  %s8064_s9 = inlined_call_operand.vmem [shape: bf16[16,16], index: 9, kind: input, shape index: {}]   ;;  %s8065_s10 = inlined_call_operand.vmem [shape: f32[1,16], index: 10, kind: input, shape index: {}]   ;;  %s8066_s11 = inlined_call_operand.vmem [shape: bf16[16,256], index: 11, kind: input, shape index: {}]   ;;  %s8067_s12 = inlined_call_operand.vmem [shape: f32[1,256], index: 12, kind: input, shape index: {}]   ;;  %s8068_s13 = inlined_call_operand.vmem [shape: f32[256,40], index: 13, kind: input, shape index: {}]   ;;  %s8069_s14 = inlined_call_operand.vmem [shape: f32[2,256,256], index: 14, kind: output, shape index: {}]  }
   0x1 LB: > { %s4799_s30 = sadd.s32 4294967295, %s5514_s29   ;;  %p4803_p0 = scmp.ge.s32.totalorder %s5514_s29, 1  ;;  %s5514_s29 = sphi %s5597_s29, %s24_s29  }
   0x2   : > { %p412_p1 = scmp.lt.s32.totalorder %s5514_s29, 3 }
   0x4   : > { %p413_p2 = pnand %p4803_p0, %p412_p1 }
   0x6   : > { %416 = sbr.rel (%p413_p2) target bundleno = 2539 (0x9eb), region = 76 }
   0xd   : > { %v5446_v0 = vld [vmem:[%s8056_s1] sm:$0xff]   ;;  %vm649_vm0 = vcmask 1043456   ;;  %v5447_v1 = vld [vmem:[%s8056_s1 + $0x8] ss:$0 sps:$4 sm:$0xff]   ;;  %p458_p3 = scmp.lt.s32.totalorder %s4799_s30, 1  ;;  %vm600_vm1 = vcmask 195584  }
   0xe   : > { %5145 = vmatprep.subr.bf16.mxu0 %v5446_v0  ;;  %v651_v2 = vsel %vm649_vm0, %v5447_v1, 0  ;;  %v5464_v19 = vld [vmem:[%s8058_s3] sm:$0xff]   ;;  %vm909_vm2 = vcmask 130048   ;;  %s5517_s27 = smov 16   ;;  %s5518_s28 = smov 8   ;;  %vm1181_vm3 = vcmask 1040384  }
   0xf   : > { %5146 = vmatpush3.bf16.msra.mxu0 %v5446_v0  ;;  %s8311_s30 = smov (!%p458_p3, %s4799_s30), 1  ;;  %5181 = vmatprep.subr.bf16.mxu1 %v5464_v19  ;;  %v5659_v20 = vld [vmem:[%s8057_s2] ss:$0 sm:$0xff]  ;;  %s5519_s21 = smov 32   ;;  %vm1273_vm4 = vcmask 1046528   ;;  %vm1726_vm5 = vcmask 64512  }
  0x10   : > { %5427 = vmatprep.subr.msk.bf16.mxu0 %vm649_vm0, %v5447_v1  ;;  %s5002_s19 = sshll.u32 %s8311_s30, 7  ;;  %5182 = vmatpush3.bf16.msra.mxu1 %v5464_v19  ;;  %s5520_s24 = smov 24   ;;  %vm1822_vm6 = vcmask 261120   ;;  %vm1930_vm7 = vcmask 326656  }
  0x11   : > { %s5619_s22 = scalar_lea.vmem %s8055_s0, %s5002_s19 }
  0x12   : > { %v5448_v3 = vld [vmem:[%s5619_s22] sm:$0xff]   ;;  %v5449_v4 = vld [vmem:[%s5619_s22 + $0x8] sm:$0xff]   ;;  %v5450_v5 = vld [vmem:[%s5619_s22 + $0x10] sm:$0xff]  }
  0x13   : > { %5148 = vmatpush3.bf16.msra.mxu0 %v651_v2  ;;  %5149 = vmatprep.mubr.msk.bf16.mxu0 %vm600_vm1, %v5448_v3  ;;  %v5451_v6 = vld [vmem:[%s5619_s22 + $0x18] sm:$0xff]   ;;  %v5452_v7 = vld [vmem:[%s5619_s22 + $0x20] sm:$0xff]   ;;  %v5453_v8 = vld [vmem:[%s5619_s22 + $0x28] sm:$0xff]  }
  0x14   : > { %v5454_v9 = vld [vmem:[%s5619_s22 + $0x30] sm:$0xff]   ;;  %v5455_v10 = vld [vmem:[%s5619_s22 + $0x38] sm:$0xff]   ;;  %v5456_v11 = vld [vmem:[%s5619_s22 + $0x40] sm:$0xff]  }
  0x15   : > { %v5457_v12 = vld [vmem:[%s5619_s22 + $0x48] sm:$0xff]   ;;  %v5458_v13 = vld [vmem:[%s5619_s22 + $0x50] sm:$0xff]   ;;  %v5459_v14 = vld [vmem:[%s5619_s22 + $0x58] sm:$0xff]  }
  0x16   : > { %5150 = vmatmul.mubr.msk.bf16.vlgmr.msra.gmra.mrb[0].mxu0 %vm600_vm1, %v5449_v4  ;;  %v5460_v15 = vld [vmem:[%s5619_s22 + $0x60] sm:$0xff]   ;;  %v5461_v16 = vld [vmem:[%s5619_s22 + $0x68] sm:$0xff]   ;;  %v5462_v17 = vld [vmem:[%s5619_s22 + $0x70] sm:$0xff]  }
  0x17   : > { %5153 = vmatprep.mubr.msk.bf16.mxu0 %vm600_vm1, %v5450_v5  ;;  %v5463_v18 = vld [vmem:[%s5619_s22 + $0x78] sm:$0xff]  }
  0x1e   : > { %5154 = vmatmul.mubr.msk.bf16.gmra.mrb[4].mxu0 %vm600_vm1, %v5451_v6 }
  0x1f   : > { %5157 = vmatprep.mubr.msk.bf16.mxu0 %vm600_vm1, %v5452_v7 }
  0x26   : > { %5158 = vmatmul.mubr.msk.bf16.gmra.mrb[8].mxu0 %vm600_vm1, %v5453_v8 }
  0x27   : > { %5161 = vmatprep.mubr.msk.bf16.mxu0 %vm600_vm1, %v5454_v9 }
  0x2e   : > { %5162 = vmatmul.mubr.msk.bf16.gmra.mrb[12].mxu0 %vm600_vm1, %v5455_v10 }
  0x2f   : > { %5165 = vmatprep.mubr.msk.bf16.mxu0 %vm600_vm1, %v5456_v11 }
  0x36   : > { %5166 = vmatmul.mubr.msk.bf16.gmra.mrb[16].mxu0 %vm600_vm1, %v5457_v12 }
  0x37   : > { %5169 = vmatprep.mubr.msk.bf16.mxu0 %vm600_vm1, %v5458_v13 }
  0x3e   : > { %5170 = vmatmul.mubr.msk.bf16.gmra.mrb[20].mxu0 %vm600_vm1, %v5459_v14 }
  0x3f   : > { %5173 = vmatprep.mubr.msk.bf16.mxu0 %vm600_vm1, %v5460_v15 }
  0x46   : > { %5174 = vmatmul.mubr.msk.bf16.gmra.mrb[24].mxu0 %vm600_vm1, %v5461_v16 }
  0x47   : > { %5177 = vmatprep.mubr.msk.bf16.mxu0 %vm600_vm1, %v5462_v17 }
  0x4e   : > { %5178 = vmatmul.mubr.msk.bf16.gmra.mrb[28].mxu0 %vm600_vm1, %v5463_v18 }
  0xe9   : > { %v5151_v21 = vpop.f32.mrb[0].mxu0 }
  0xea   : > { %v687_v22 = vpop.f32.mrb[1].mxu0  ;;  %v5665_v25 = vadd.f32 %v5151_v21, %v5659_v20 }
  0xeb   : > { %v5662_v23 = vadd.f32 %v5659_v20, %v687_v22  ;;  %v5152_v24 = vpop.f32.mrb[2].mxu0 }
  0xec   : > { %8156 = vst [vmem:[#allocation3_spill] sm:$0xff] %v5665_v25  ;;  %v5668_v26 = vadd.f32 %v5152_v24, %v5659_v20  ;;  %v690_v27 = vpop.f32.mrb[3].mxu0  ;;  %v848_v32 = vmax.f32 %v5665_v25, 0.0 }
  0xed   : > { %8155 = vst [vmem:[#allocation2_spill] sm:$0xff] %v5662_v23  ;;  %v5671_v28 = vadd.f32 %v5659_v20, %v690_v27  ;;  %v846_v30 = vmax.f32 %v5662_v23, 0.0 }
  0xee   : > { %8157 = vst [vmem:[#allocation4_spill] sm:$0xff] %v5668_v26  ;;  %v849_v29 = vmax.f32 %v5668_v26, 0.0 }
  0xef   : > { %8158 = vst [vmem:[#allocation5_spill] sm:$0xff] %v5671_v28  ;;  %v847_v31 = vmax.f32 %v5671_v28, 0.0 }
  0xf0   : > { %v879_v35 = vpack.c.bf16 %v849_v29, %v848_v32 }
  0xf1   : > { %v5155_v33 = vpop.f32.mrb[4].mxu0  ;;  %v878_v34 = vpack.c.bf16 %v847_v31, %v846_v30 }
  0xf2   : > { %v5678_v36 = vadd.f32 %v5155_v33, %v5659_v20  ;;  %v703_v37 = vpop.f32.mrb[5].mxu0 }
  0xf3   : > { %v5681_v38 = vadd.f32 %v5659_v20, %v703_v37  ;;  %v5156_v39 = vpop.f32.mrb[6].mxu0  ;;  %5183 = vmatprep.mubr.msk.bf16.mxu1 %vm909_vm2, %v878_v34 }
  0xf4   : > { %8159 = vst [vmem:[#allocation6_spill] sm:$0xff] %v5678_v36  ;;  %v852_v40 = vmax.f32 %v5678_v36, 0.0  ;;  %v5686_v41 = vadd.f32 %v5156_v39, %v5659_v20  ;;  %v706_v42 = vpop.f32.mrb[7].mxu0  ;;  %5184 = vmatmul.mubr.msk.bf16.vlgmr.msra.gmra.mrb[0].mxu1 %vm909_vm2, %v879_v35 }
  0xf5   : > { %8160 = vst [vmem:[#allocation7_spill] sm:$0xff] %v5681_v38  ;;  %v850_v43 = vmax.f32 %v5681_v38, 0.0  ;;  %v5691_v44 = vadd.f32 %v5659_v20, %v706_v42 }
  0xf6   : > { %8161 = vst [vmem:[#allocation8_spill] sm:$0xff] %v5686_v41  ;;  %v853_v45 = vmax.f32 %v5686_v41, 0.0 }
  0xf7   : > { %8162 = vst [vmem:[#allocation9_spill] sm:$0xff] %v5691_v44  ;;  %v851_v46 = vmax.f32 %v5691_v44, 0.0 }
  0xf8   : > { %v881_v47 = vpack.c.bf16 %v853_v45, %v852_v40 }
  0xf9   : > { %v880_v48 = vpack.c.bf16 %v851_v46, %v850_v43  ;;  %v5159_v49 = vpop.f32.mrb[8].mxu0 }
  0xfa   : > { %v5696_v50 = vadd.f32 %v5159_v49, %v5659_v20  ;;  %v719_v51 = vpop.f32.mrb[9].mxu0 }
  0xfb   : > { %5187 = vmatprep.mubr.msk.bf16.mxu1 %vm909_vm2, %v880_v48  ;;  %v5700_v52 = vadd.f32 %v5659_v20, %v719_v51  ;;  %v5160_v53 = vpop.f32.mrb[10].mxu0 }
  0xfc   : > { %8163 = vst [vmem:[#allocation10_spill] sm:$0xff] %v5696_v50  ;;  %5188 = vmatmul.mubr.msk.bf16.gmra.mrb[4].mxu1 %vm909_vm2, %v881_v47  ;;  %v856_v54 = vmax.f32 %v5696_v50, 0.0  ;;  %v5705_v55 = vadd.f32 %v5160_v53, %v5659_v20  ;;  %v722_v56 = vpop.f32.mrb[11].mxu0 }
  0xfd   : > { %8164 = vst [vmem:[#allocation11_spill] sm:$0xff] %v5700_v52  ;;  %v854_v57 = vmax.f32 %v5700_v52, 0.0  ;;  %v5709_v58 = vadd.f32 %v5659_v20, %v722_v56 }
  0xfe   : > { %8165 = vst [vmem:[#allocation12_spill] sm:$0xff] %v5705_v55  ;;  %v857_v59 = vmax.f32 %v5705_v55, 0.0 }
  0xff   : > { %8166 = vst [vmem:[#allocation13_spill] sm:$0xff] %v5709_v58  ;;  %v855_v60 = vmax.f32 %v5709_v58, 0.0 }
 0x100   : > { %v883_v61 = vpack.c.bf16 %v857_v59, %v856_v54 }
 0x101   : > { %v882_v62 = vpack.c.bf16 %v855_v60, %v854_v57  ;;  %v5163_v63 = vpop.f32.mrb[12].mxu0 }
 0x102   : > { %v5714_v0 = vadd.f32 %v5163_v63, %v5659_v20  ;;  %v735_v1 = vpop.f32.mrb[13].mxu0 }
 0x103   : > { %5191 = vmatprep.mubr.msk.bf16.mxu1 %vm909_vm2, %v882_v62  ;;  %v5718_v2 = vadd.f32 %v5659_v20, %v735_v1  ;;  %v5164_v3 = vpop.f32.mrb[14].mxu0 }
 0x104   : > { %8167 = vst [vmem:[#allocation14_spill] sm:$0xff] %v5714_v0  ;;  %5192 = vmatmul.mubr.msk.bf16.gmra.mrb[8].mxu1 %vm909_vm2, %v883_v61  ;;  %v860_v4 = vmax.f32 %v5714_v0, 0.0  ;;  %v5723_v5 = vadd.f32 %v5164_v3, %v5659_v20  ;;  %v738_v6 = vpop.f32.mrb[15].mxu0 }
 0x105   : > { %8168 = vst [vmem:[#allocation15_spill] sm:$0xff] %v5718_v2  ;;  %v858_v7 = vmax.f32 %v5718_v2, 0.0  ;;  %v5727_v8 = vadd.f32 %v5659_v20, %v738_v6 }
 0x106   : > { %8169 = vst [vmem:[#allocation16_spill] sm:$0xff] %v5723_v5  ;;  %v861_v9 = vmax.f32 %v5723_v5, 0.0 }
 0x107   : > { %8170 = vst [vmem:[#allocation17_spill] sm:$0xff] %v5727_v8  ;;  %v859_v10 = vmax.f32 %v5727_v8, 0.0 }
 0x108   : > { %v885_v11 = vpack.c.bf16 %v861_v9, %v860_v4 }
 0x109   : > { %v884_v12 = vpack.c.bf16 %v859_v10, %v858_v7  ;;  %v5167_v13 = vpop.f32.mrb[16].mxu0 }
 0x10a   : > { %v5732_v14 = vadd.f32 %v5167_v13, %v5659_v20  ;;  %v751_v15 = vpop.f32.mrb[17].mxu0 }
 0x10b   : > { %5195 = vmatprep.mubr.msk.bf16.mxu1 %vm909_vm2, %v884_v12  ;;  %v5736_v16 = vadd.f32 %v5659_v20, %v751_v15  ;;  %v5168_v17 = vpop.f32.mrb[18].mxu0 }
 0x10c   : > { %8171 = vst [vmem:[#allocation18_spill] sm:$0xff] %v5732_v14  ;;  %5196 = vmatmul.mubr.msk.bf16.gmra.mrb[12].mxu1 %vm909_vm2, %v885_v11  ;;  %v864_v18 = vmax.f32 %v5732_v14, 0.0  ;;  %v5741_v19 = vadd.f32 %v5168_v17, %v5659_v20  ;;  %v754_v21 = vpop.f32.mrb[19].mxu0 }
 0x10d   : > { %8172 = vst [vmem:[#allocation19_spill] sm:$0xff] %v5736_v16  ;;  %v862_v22 = vmax.f32 %v5736_v16, 0.0  ;;  %v5745_v24 = vadd.f32 %v5659_v20, %v754_v21 }
 0x10e   : > { %8173 = vst [vmem:[#allocation20_spill] sm:$0xff] %v5741_v19  ;;  %v865_v27 = vmax.f32 %v5741_v19, 0.0 }
 0x10f   : > { %8174 = vst [vmem:[#allocation21_spill] sm:$0xff] %v5745_v24  ;;  %v863_v29 = vmax.f32 %v5745_v24, 0.0 }
 0x110   : > { %v887_v30 = vpack.c.bf16 %v865_v27, %v864_v18 }
 0x111   : > { %v886_v31 = vpack.c.bf16 %v863_v29, %v862_v22  ;;  %v5171_v32 = vpop.f32.mrb[20].mxu0 }
 0x112   : > { %v5750_v33 = vadd.f32 %v5171_v32, %v5659_v20  ;;  %v767_v34 = vpop.f32.mrb[21].mxu0  ;;  %v5466_v32 = vld [vmem:[%s8060_s5 + $0x8] sm:$0xff]  }
 0x113   : > { %5199 = vmatprep.mubr.msk.bf16.mxu1 %vm909_vm2, %v886_v31  ;;  %v5754_v35 = vadd.f32 %v5659_v20, %v767_v34  ;;  %v5172_v37 = vpop.f32.mrb[22].mxu0  ;;  %v5516_v31 = vmov 0.0   ;;  %v5816_v34 = vld [vmem:[%s8059_s4] ss:$0 sm:$0xff] }
 0x114   : > { %8175 = vst [vmem:[#allocation22_spill] sm:$0xff] %v5750_v33  ;;  %5200 = vmatmul.mubr.msk.bf16.gmra.mrb[16].mxu1 %vm909_vm2, %v887_v30  ;;  %v868_v39 = vmax.f32 %v5750_v33, 0.0  ;;  %v5759_v40 = vadd.f32 %v5172_v37, %v5659_v20  ;;  %v770_v42 = vpop.f32.mrb[23].mxu0  ;;  %1437 = vrot.lane.b32.xlu1 %v5516_v31, %s5517_s27 }
 0x115   : > { %8176 = vst [vmem:[#allocation23_spill] sm:$0xff] %v5754_v35  ;;  %v866_v43 = vmax.f32 %v5754_v35, 0.0  ;;  %v5763_v45 = vadd.f32 %v5659_v20, %v770_v42  ;;  %1343 = vrot.lane.b32.xlu0 %v5516_v31, %s5518_s28 }
 0x116   : > { %8177 = vst [vmem:[#allocation24_spill] sm:$0xff] %v5759_v40  ;;  %v869_v46 = vmax.f32 %v5759_v40, 0.0 }
 0x117   : > { %8178 = vst [vmem:[#allocation25_spill] sm:$0xff] %v5763_v45  ;;  %v867_v47 = vmax.f32 %v5763_v45, 0.0 }
 0x118   : > { %v889_v48 = vpack.c.bf16 %v869_v46, %v868_v39 }
 0x119   : > { %v888_v49 = vpack.c.bf16 %v867_v47, %v866_v43  ;;  %v5175_v51 = vpop.f32.mrb[24].mxu0 }
 0x11a   : > { %v5768_v53 = vadd.f32 %v5175_v51, %v5659_v20  ;;  %v783_v54 = vpop.f32.mrb[25].mxu0 }
 0x11b   : > { %5203 = vmatprep.mubr.msk.bf16.mxu1 %vm909_vm2, %v888_v49  ;;  %v5772_v56 = vadd.f32 %v5659_v20, %v783_v54  ;;  %v5176_v57 = vpop.f32.mrb[26].mxu0 }
 0x11c   : > { %8179 = vst [vmem:[#allocation26_spill] sm:$0xff] %v5768_v53  ;;  %5204 = vmatmul.mubr.msk.bf16.gmra.mrb[20].mxu1 %vm909_vm2, %v889_v48  ;;  %v872_v59 = vmax.f32 %v5768_v53, 0.0  ;;  %v5777_v60 = vadd.f32 %v5176_v57, %v5659_v20  ;;  %v786_v61 = vpop.f32.mrb[27].mxu0 }
 0x11d   : > { %8180 = vst [vmem:[#allocation27_spill] sm:$0xff] %v5772_v56  ;;  %v870_v62 = vmax.f32 %v5772_v56, 0.0  ;;  %v5781_v63 = vadd.f32 %v5659_v20, %v786_v61 }
 0x11e   : > { %8181 = vst [vmem:[#allocation28_spill] sm:$0xff] %v5777_v60  ;;  %v873_v1 = vmax.f32 %v5777_v60, 0.0 }
 0x11f   : > { %8182 = vst [vmem:[#allocation29_spill] sm:$0xff] %v5781_v63  ;;  %v871_v3 = vmax.f32 %v5781_v63, 0.0 }
 0x120   : > { %v891_v4 = vpack.c.bf16 %v873_v1, %v872_v59 }
 0x121   : > { %v890_v6 = vpack.c.bf16 %v871_v3, %v870_v62  ;;  %v5179_v7 = vpop.f32.mrb[28].mxu0 }
 0x122   : > { %v5786_v9 = vadd.f32 %v5179_v7, %v5659_v20  ;;  %v799_v10 = vpop.f32.mrb[29].mxu0 }
 0x123   : > { %5207 = vmatprep.mubr.msk.bf16.mxu1 %vm909_vm2, %v890_v6  ;;  %v5790_v11 = vadd.f32 %v5659_v20, %v799_v10  ;;  %v5180_v12 = vpop.f32.mrb[30].mxu0 }
 0x124   : > { %8183 = vst [vmem:[#allocation30_spill] sm:$0xff] %v5786_v9  ;;  %5208 = vmatmul.mubr.msk.bf16.gmra.mrb[24].mxu1 %vm909_vm2, %v891_v4  ;;  %v876_v13 = vmax.f32 %v5786_v9, 0.0  ;;  %v5795_v15 = vadd.f32 %v5180_v12, %v5659_v20  ;;  %v802_v17 = vpop.f32.mrb[31].mxu0 }
 0x125   : > { %8184 = vst [vmem:[#allocation31_spill] sm:$0xff] %v5790_v11  ;;  %v874_v18 = vmax.f32 %v5790_v11, 0.0  ;;  %v5799_v21 = vadd.f32 %v5659_v20, %v802_v17  ;;  %v5465_v20 = vld [vmem:[%s8060_s5] sm:$0xff]  }
 0x126   : > { %8185 = vst [vmem:[#allocation32_spill] sm:$0xff] %v5795_v15  ;;  %v877_v22 = vmax.f32 %v5795_v15, 0.0  ;;  %5215 = vmatprep.subr.bf16.mxu0 %v5465_v20 }
 0x127   : > { %8186 = vst [vmem:[#allocation33_spill] sm:$0xff] %v5799_v21  ;;  %v875_v27 = vmax.f32 %v5799_v21, 0.0  ;;  %5216 = vmatpush3.bf16.msra.mxu0 %v5465_v20 }
 0x128   : > { %v893_v29 = vpack.c.bf16 %v877_v22, %v876_v13  ;;  %5217 = vmatprep.subr.bf16.mxu0 %v5466_v32 }
 0x129   : > { %v892_v30 = vpack.c.bf16 %v875_v27, %v874_v18 }
 0x12b   : > { %5211 = vmatprep.mubr.msk.bf16.mxu1 %vm909_vm2, %v892_v30  ;;  %5218 = vmatpush3.bf16.msra.mxu0 %v5466_v32  ;;  %v5467_v32 = vld [vmem:[%s8060_s5 + $0x10] ss:$0 sps:$4 sm:$0xff]  }
 0x12c   : > { %5212 = vmatmul.mubr.msk.bf16.gmra.mrb[28].mxu1 %vm909_vm2, %v893_v29  ;;  %5428 = vmatprep.subr.msk.bf16.mxu0 %vm649_vm0, %v5467_v32 }
 0x1c7   : > { %v5185_v37 = vpop.f32.mrb[0].mxu1 }
 0x1c8   : > { %v1001_v39 = vadd.f32 %v5185_v37, %v5816_v34  ;;  %v992_v42 = vpop.f32.mrb[1].mxu1 }
 0x1c9   : > { %v993_v43 = vadd.f32 %v5816_v34, %v992_v42  ;;  %v5186_v46 = vpop.f32.mrb[2].mxu1 }
 0x1ca   : > { %v1121_v47 = vmax.f32 %v1001_v39, 0.0  ;;  %v1004_v48 = vadd.f32 %v5186_v46, %v5816_v34  ;;  %v995_v49 = vpop.f32.mrb[3].mxu1 }
 0x1cb   : > { %v5821_v51 = vmax.f32 %v993_v43, 0.0  ;;  %v996_v54 = vadd.f32 %v5816_v34, %v995_v49 }
 0x1cc   : > { %v1122_v57 = vmax.f32 %v1004_v48, 0.0  ;;  %1634 = vrot.lane.b32.xlu1 %v1121_v47, %s5519_s21  ;;  %v1277_v61 = vrot.slane %v1121_v47, 1  ;;  %v1185_v1 = vrot.slane %v1121_v47, 7  ;;  %v1980_v48 = vsel %vm649_vm0, %v5467_v32, 0 }
 0x1cd   : > { %v1120_v59 = vmax.f32 %v996_v54, 0.0  ;;  %1345 = vrot.lane.b32.xlu0 %v5821_v51, %s5518_s28  ;;  %v1274_v6 = vrot.slane %v5821_v51, 1  ;;  %v1182_v17 = vrot.slane %v5821_v51, 7  ;;  %5220 = vmatpush3.bf16.msra.mxu0 %v1980_v48 }
 0x1ce   : > { %v1279_v62 = vrot.slane %v1122_v57, 1  ;;  %v1187_v3 = vrot.slane %v1122_v57, 7 }
 0x1cf   : > { %v5189_v4 = vpop.f32.mrb[4].mxu1  ;;  %v1275_v7 = vrot.slane %v1120_v59, 1  ;;  %v1183_v10 = vrot.slane %v1120_v59, 7 }
 0x1d0   : > { %v1017_v12 = vadd.f32 %v5189_v4, %v5816_v34  ;;  %1349 = vrot.lane.b32.xlu1 %v1121_v47, %s5518_s28  ;;  %v1008_v13 = vpop.f32.mrb[5].mxu1  ;;  %v5832_v18 = vsel %vm1273_vm4, %v1277_v61, %v1279_v62  ;;  %v5835_v22 = vsel %vm1181_vm3, %v1185_v1, %v1187_v3 }
 0x1d1   : > { %8187 = vst [vmem:[#allocation34_spill] sm:$0xff] %v5835_v22  ;;  %v1009_v27 = vadd.f32 %v5816_v34, %v1008_v13  ;;  %1636 = vrot.lane.b32.xlu0 %v1122_v57, %s5519_s21  ;;  %v5190_v29 = vpop.f32.mrb[6].mxu1  ;;  %v5840_v30 = vsel %vm1273_vm4, %v1274_v6, %v1275_v7  ;;  %v5843_v31 = vsel %vm1273_vm4, %v1275_v7, %v1277_v61 }
 0x1d2   : > { %v5846_v20 = vsel %vm1181_vm3, %v1183_v10, %v1185_v1  ;;  %v5851_v37 = vmax.f32 %v1017_v12, 0.0  ;;  %v1020_v39 = vadd.f32 %v5190_v29, %v5816_v34  ;;  %v1011_v42 = vpop.f32.mrb[7].mxu1  ;;  %v5855_v43 = vsel %vm1181_vm3, %v1182_v17, %v1183_v10 }
 0x1d3   : > { %8188 = vst [vmem:[#allocation35_spill] sm:$0xff] %v5846_v20  ;;  %v5857_v46 = vmax.f32 %v1009_v27, 0.0  ;;  %v1012_v47 = vadd.f32 %v5816_v34, %v1011_v42 }
 0x1d4   : > { %1630 = vrot.lane.b32.xlu1 %v5821_v51, %s5519_s21  ;;  %v5864_v49 = vmax.f32 %v1020_v39, 0.0  ;;  %v1285_v54 = vrot.slane %v5851_v37, 1  ;;  %v1193_v61 = vrot.slane %v5851_v37, 7 }
 0x1d5   : > { %1351 = vrot.lane.b32.xlu0 %v1122_v57, %s5518_s28  ;;  %v5869_v1 = vmax.f32 %v1012_v47, 0.0  ;;  %v1189_v4 = vrot.slane %v5857_v46, 7  ;;  %v1281_v7 = vrot.slane %v5857_v46, 1 }
 0x1d6   : > { %v1287_v10 = vrot.slane %v5864_v49, 1  ;;  %v1195_v12 = vrot.slane %v5864_v49, 7 }
 0x1d7   : > { %v5193_v51 = vpop.f32.mrb[8].mxu1  ;;  %v5876_v13 = vsel %vm1181_vm3, %v1187_v3, %v1189_v4  ;;  %v5879_v27 = vsel %vm1273_vm4, %v1279_v62, %v1281_v7  ;;  %v1283_v29 = vrot.slane %v5869_v1, 1  ;;  %v1191_v57 = vrot.slane %v5869_v1, 7 }
 0x1d8   : > { %1347 = vrot.lane.b32.xlu1 %v1120_v59, %s5518_s28  ;;  %v1033_v32 = vadd.f32 %v5193_v51, %v5816_v34  ;;  %v1024_v39 = vpop.f32.mrb[9].mxu1  ;;  %v5886_v42 = vsel %vm1273_vm4, %v1285_v54, %v1287_v10  ;;  %v5889_v47 = vsel %vm1181_vm3, %v1193_v61, %v1195_v12 }
 0x1d9   : > { %8189 = vst [vmem:[#allocation36_spill] sm:$0xff] %v5889_v47  ;;  %1632 = vrot.lane.b32.xlu0 %v1120_v59, %s5519_s21  ;;  %v1025_v62 = vadd.f32 %v5816_v34, %v1024_v39  ;;  %v5194_v3 = vpop.f32.mrb[10].mxu1  ;;  %v5894_v48 = vsel %vm1273_vm4, %v1281_v7, %v1283_v29  ;;  %v5897_v21 = vsel %vm1273_vm4, %v1283_v29, %v1285_v54  ;;  %v5909_v59 = vsel %vm1181_vm3, 0.0, %v1182_v17 }
 0x1da   : > { %v5900_v51 = vsel %vm1181_vm3, %v1191_v57, %v1193_v61  ;;  %v5902_v15 = vmax.f32 %v1033_v32, 0.0  ;;  %v1036_v11 = vadd.f32 %v5194_v3, %v5816_v34  ;;  %v1027_v9 = vpop.f32.mrb[11].mxu1  ;;  %v5906_v63 = vsel %vm1181_vm3, %v1189_v4, %v1191_v57 }
 0x1db   : > { %8190 = vst [vmem:[#allocation37_spill] sm:$0xff] %v5900_v51  ;;  %v5911_v39 = vmax.f32 %v1025_v62, 0.0  ;;  %v1028_v7 = vadd.f32 %v5816_v34, %v1027_v9  ;;  %v1336_v54 = vsel %vm1273_vm4, 0.0, %v1274_v6 }
 0x1dc   : > { %1534 = vrot.lane.b32.xlu1 %v5909_v59, %s5520_s24  ;;  %v5917_v61 = vmax.f32 %v1036_v11, 0.0  ;;  %v1293_v29 = vrot.slane %v5902_v15, 1  ;;  %v1201_v4 = vrot.slane %v5902_v15, 7 }
 0x1dd   : > { %1439 = vrot.lane.b32.xlu0 %v1336_v54, %s5517_s27  ;;  %v5922_v17 = vmax.f32 %v1028_v7, 0.0  ;;  %v1197_v57 = vrot.slane %v5911_v39, 7  ;;  %v1289_v9 = vrot.slane %v5911_v39, 1 }
 0x1de   : > { %v1295_v32 = vrot.slane %v5917_v61, 1  ;;  %v1203_v62 = vrot.slane %v5917_v61, 7 }
 0x1df   : > { %v5197_v3 = vpop.f32.mrb[12].mxu1  ;;  %v5929_v11 = vsel %vm1181_vm3, %v1195_v12, %v1197_v57  ;;  %v5932_v6 = vsel %vm1273_vm4, %v1287_v10, %v1289_v9  ;;  %v1291_v60 = vrot.slane %v5922_v17, 1  ;;  %v1199_v7 = vrot.slane %v5922_v17, 7 }
 0x1e0   : > { %1445 = vrot.lane.b32.xlu1 %v5832_v18, %s5517_s27  ;;  %v1049_v54 = vadd.f32 %v5197_v3, %v5816_v34  ;;  %v1040_v56 = vpop.f32.mrb[13].mxu1  ;;  %v5940_v53 = vsel %vm1273_vm4, %v1293_v29, %v1295_v32  ;;  %v5943_v45 = vsel %vm1181_vm3, %v1201_v4, %v1203_v62 }
 0x1e1   : > { %1540 = vrot.lane.b32.xlu0 %v5835_v22, %s5520_s24  ;;  %v1041_v10 = vadd.f32 %v5816_v34, %v1040_v56  ;;  %v5198_v12 = vpop.f32.mrb[14].mxu1  ;;  %v5949_v40 = vsel %vm1273_vm4, %v1289_v9, %v1291_v60  ;;  %v5952_v18 = vsel %vm1273_vm4, %v1291_v60, %v1293_v29  ;;  %v5955_v3 = vsel %vm1181_vm3, %v1199_v7, %v1201_v4 }
 0x1e2   : > { %v5957_v35 = vmax.f32 %v1049_v54, 0.0  ;;  %v1052_v33 = vadd.f32 %v5198_v12, %v5816_v34  ;;  %v1043_v24 = vpop.f32.mrb[15].mxu1  ;;  %v5961_v19 = vsel %vm1181_vm3, %v1197_v57, %v1199_v7 }
 0x1e3   : > { %v5963_v16 = vmax.f32 %v1041_v10, 0.0  ;;  %v1044_v56 = vadd.f32 %v5816_v34, %v1043_v24 }
 0x1e4   : > { %1441 = vrot.lane.b32.xlu1 %v5840_v30, %s5517_s27  ;;  %v5968_v60 = vmax.f32 %v1052_v33, 0.0  ;;  %v1301_v29 = vrot.slane %v5957_v35, 1  ;;  %v1209_v4 = vrot.slane %v5957_v35, 7 }
 0x1e5   : > { %1443 = vrot.lane.b32.xlu0 %v5843_v31, %s5517_s27  ;;  %v5974_v9 = vmax.f32 %v1044_v56, 0.0  ;;  %v1205_v57 = vrot.slane %v5963_v16, 7  ;;  %v1297_v7 = vrot.slane %v5963_v16, 1 }
 0x1e6   : > { %v1303_v24 = vrot.slane %v5968_v60, 1  ;;  %v1211_v54 = vrot.slane %v5968_v60, 7 }
 0x1e7   : > { %v5201_v30 = vpop.f32.mrb[16].mxu1  ;;  %v5981_v33 = vsel %vm1181_vm3, %v1203_v62, %v1205_v57  ;;  %v5984_v10 = vsel %vm1273_vm4, %v1295_v32, %v1297_v7  ;;  %v1299_v12 = vrot.slane %v5974_v9, 1  ;;  %v1207_v31 = vrot.slane %v5974_v9, 7 }
 0x1e8   : > { %1538 = vrot.lane.b32.xlu1 %v5846_v20, %s5520_s24  ;;  %v1065_v56 = vadd.f32 %v5201_v30, %v5816_v34  ;;  %v1056_v14 = vpop.f32.mrb[17].mxu1  ;;  %v5992_v8 = vsel %vm1273_vm4, %v1301_v29, %v1303_v24  ;;  %v5995_v5 = vsel %vm1181_vm3, %v1209_v4, %v1211_v54 }
 0x1e9   : > { %1536 = vrot.lane.b32.xlu0 %v5855_v43, %s5520_s24  ;;  %v1057_v32 = vadd.f32 %v5816_v34, %v1056_v14  ;;  %v5202_v62 = vpop.f32.mrb[18].mxu1  ;;  %v6001_v2 = vsel %vm1273_vm4, %v1297_v7, %v1299_v12  ;;  %v6004_v0 = vsel %vm1273_vm4, %v1299_v12, %v1301_v29  ;;  %v6007_v30 = vsel %vm1181_vm3, %v1207_v31, %v1209_v4 }
 0x1ea   : > { %v6009_v58 = vmax.f32 %v1065_v56, 0.0  ;;  %v1068_v55 = vadd.f32 %v5202_v62, %v5816_v34  ;;  %v1059_v52 = vpop.f32.mrb[19].mxu1  ;;  %v6013_v50 = vsel %vm1181_vm3, %v1205_v57, %v1207_v31 }
 0x1eb   : > { %v6015_v44 = vmax.f32 %v1057_v32, 0.0  ;;  %v1060_v14 = vadd.f32 %v5816_v34, %v1059_v52 }
 0x1ec   : > { %1642 = vrot.lane.b32.xlu1 %v5851_v37, %s5519_s21  ;;  %v6020_v29 = vmax.f32 %v1068_v55, 0.0  ;;  %v1309_v4 = vrot.slane %v6009_v58, 1  ;;  %v1217_v7 = vrot.slane %v6009_v58, 7 }
 0x1ed   : > { %1644 = vrot.lane.b32.xlu0 %v5864_v49, %s5519_s21  ;;  %v6026_v12 = vmax.f32 %v1060_v14, 0.0  ;;  %v1213_v57 = vrot.slane %v6015_v44, 7  ;;  %v1305_v31 = vrot.slane %v6015_v44, 1 }
 0x1ee   : > { %v1311_v52 = vrot.slane %v6020_v29, 1  ;;  %v1219_v56 = vrot.slane %v6020_v29, 7 }
 0x1ef   : > { %v5205_v32 = vpop.f32.mrb[20].mxu1  ;;  %v6033_v55 = vsel %vm1181_vm3, %v1211_v54, %v1213_v57  ;;  %v6036_v62 = vsel %vm1273_vm4, %v1303_v24, %v1305_v31  ;;  %v1307_v41 = vrot.slane %v6026_v12, 1  ;;  %v1215_v14 = vrot.slane %v6026_v12, 7 }
 0x1f0   : > { %1357 = vrot.lane.b32.xlu1 %v5851_v37, %s5518_s28  ;;  %v1081_v38 = vadd.f32 %v5205_v32, %v5816_v34  ;;  %v1072_v36 = vpop.f32.mrb[21].mxu1  ;;  %v6044_v28 = vsel %vm1273_vm4, %v1309_v4, %v1311_v52  ;;  %v6047_v26 = vsel %vm1181_vm3, %v1217_v7, %v1219_v56 }
 0x1f1   : > { %8191 = vst [vmem:[#allocation38_spill] sm:$0xff] %v6047_v26  ;;  %1359 = vrot.lane.b32.xlu0 %v5864_v49, %s5518_s28  ;;  %v1073_v24 = vadd.f32 %v5816_v34, %v1072_v36  ;;  %v5206_v54 = vpop.f32.mrb[22].mxu1  ;;  %v6053_v23 = vsel %vm1273_vm4, %v1305_v31, %v1307_v41  ;;  %v6056_v37 = vsel %vm1273_vm4, %v1307_v41, %v1309_v4 }
 0x1f2   : > { %v6059_v32 = vsel %vm1181_vm3, %v1215_v14, %v1217_v7  ;;  %v6061_v25 = vmax.f32 %v1081_v38, 0.0  ;;  %v1084_v22 = vadd.f32 %v5206_v54, %v5816_v34  ;;  %v1075_v20 = vpop.f32.mrb[23].mxu1  ;;  %v6065_v26 = vsel %vm1181_vm3, %v1213_v57, %v1215_v14 }
 0x1f3   : > { %8193 = vst [vmem:[#allocation40_spill] sm:$0xff] %v6065_v26  ;;  %v6067_v49 = vmax.f32 %v1073_v24, 0.0  ;;  %v1076_v36 = vadd.f32 %v5816_v34, %v1075_v20 }
 0x1f4   : > { %8192 = vst [vmem:[#allocation39_spill] sm:$0xff] %v6061_v25  ;;  %1353 = vrot.lane.b32.xlu1 %v5857_v46, %s5518_s28  ;;  %v6072_v41 = vmax.f32 %v1084_v22, 0.0  ;;  %v1317_v4 = vrot.slane %v6061_v25, 1  ;;  %v1225_v38 = vrot.slane %v6061_v25, 7 }
 0x1f5   : > { %8194 = vst [vmem:[#allocation41_spill] sm:$0xff] %v6067_v49  ;;  %1355 = vrot.lane.b32.xlu0 %v5869_v1, %s5518_s28  ;;  %v6078_v7 = vmax.f32 %v1076_v36, 0.0  ;;  %v1221_v57 = vrot.slane %v6067_v49, 7  ;;  %v1313_v31 = vrot.slane %v6067_v49, 1 }
 0x1f6   : > { %8195 = vst [vmem:[#allocation42_spill] sm:$0xff] %v6072_v41  ;;  %v1319_v20 = vrot.slane %v6072_v41, 1  ;;  %v1227_v14 = vrot.slane %v6072_v41, 7 }
 0x1f7   : > { %v5209_v24 = vpop.f32.mrb[24].mxu1  ;;  %v6085_v22 = vsel %vm1181_vm3, %v1219_v56, %v1221_v57  ;;  %v6088_v54 = vsel %vm1273_vm4, %v1311_v52, %v1313_v31  ;;  %v1315_v25 = vrot.slane %v6078_v7, 1  ;;  %v1223_v36 = vrot.slane %v6078_v7, 7 }
 0x1f8   : > { %8196 = vst [vmem:[#allocation43_spill] sm:$0xff] %v6085_v22  ;;  %8197 = vst [vmem:[#allocation44_spill] sm:$0xff] %v6088_v54  ;;  %1638 = vrot.lane.b32.xlu1 %v5857_v46, %s5519_s21  ;;  %v1088_v26 = vpop.f32.mrb[25].mxu1  ;;  %v6095_v49 = vsel %vm1273_vm4, %v1317_v4, %v1319_v20  ;;  %v6098_v41 = vsel %vm1181_vm3, %v1225_v38, %v1227_v14 }
 0x1f9   : > { %8198 = vst [vmem:[#allocation45_spill] sm:$0xff] %v6095_v49  ;;  %1640 = vrot.lane.b32.xlu0 %v5869_v1, %s5519_s21  ;;  %v1089_v52 = vadd.f32 %v5816_v34, %v1088_v26  ;;  %v6104_v56 = vsel %vm1273_vm4, %v1313_v31, %v1315_v25  ;;  %v6107_v54 = vsel %vm1273_vm4, %v1315_v25, %v1317_v4 }
 0x1fa   : > { %v6110_v46 = vsel %vm1181_vm3, %v1223_v36, %v1225_v38  ;;  %v6113_v22 = vsel %vm1181_vm3, %v1221_v57, %v1223_v36  ;;  %v1097_v38 = vadd.f32 %v5209_v24, %v5816_v34  ;;  %v5210_v57 = vpop.f32.mrb[26].mxu1 }
 0x1fb   : > { %v6115_v49 = vmax.f32 %v1089_v52, 0.0  ;;  %v1091_v31 = vpop.f32.mrb[27].mxu1 }
 0x1fc   : > { %1542 = vrot.lane.b32.xlu1 %v5876_v13, %s5520_s24  ;;  %v1092_v36 = vadd.f32 %v5816_v34, %v1091_v31 }
 0x1fd   : > { %8199 = vst [vmem:[#allocation46_spill] sm:$0xff] %v6115_v49  ;;  %1447 = vrot.lane.b32.xlu0 %v5879_v27, %s5517_s27  ;;  %v1229_v26 = vrot.slane %v6115_v49, 7  ;;  %v1321_v1 = vrot.slane %v6115_v49, 1  ;;  %v1100_v27 = vadd.f32 %v5210_v57, %v5816_v34 }
 0x1fe   : > { %v6145_v24 = vmax.f32 %v1092_v36, 0.0 }
 0x1ff   : > { %v6124_v25 = vsel %vm1181_vm3, %v1227_v14, %v1229_v26  ;;  %v6127_v4 = vsel %vm1273_vm4, %v1319_v20, %v1321_v1  ;;  %v5213_v52 = vpop.f32.mrb[28].mxu1  ;;  %v6138_v20 = vmax.f32 %v1097_v38, 0.0 }
 0x200   : > { %8200 = vst [vmem:[#allocation47_spill] sm:$0xff] %v6124_v25  ;;  %8201 = vst [vmem:[#allocation48_spill] sm:$0xff] %v6127_v4  ;;  %1453 = vrot.lane.b32.xlu1 %v5886_v42, %s5517_s27  ;;  %v1104_v14 = vpop.f32.mrb[29].mxu1  ;;  %v6140_v4 = vmax.f32 %v1100_v27, 0.0  ;;  %v1231_v36 = vrot.slane %v6145_v24, 7 }
 0x201   : > { %1548 = vrot.lane.b32.xlu0 %v5889_v47, %s5520_s24  ;;  %v1105_v42 = vadd.f32 %v5816_v34, %v1104_v14  ;;  %8203 = vst [vmem:[#allocation50_spill] sm:$0xff] %v6145_v24  ;;  %v1325_v31 = vrot.slane %v6138_v20, 1  ;;  %v1233_v38 = vrot.slane %v6138_v20, 7 }
 0x202   : > { %8202 = vst [vmem:[#allocation49_spill] sm:$0xff] %v6140_v4  ;;  %v1235_v27 = vrot.slane %v6140_v4, 7 }
 0x203   : > { %v6147_v57 = vmax.f32 %v1105_v42, 0.0 }
 0x204   : > { %1449 = vrot.lane.b32.xlu1 %v5894_v48, %s5517_s27  ;;  %v1327_v48 = vrot.slane %v6140_v4, 1  ;;  %v6165_v47 = vsel %vm1181_vm3, %v1233_v38, %v1235_v27  ;;  %v6174_v4 = vsel %vm1181_vm3, %v1231_v36, %v1233_v38 }
 0x205   : > { %1451 = vrot.lane.b32.xlu0 %v5897_v21, %s5517_s27  ;;  %8204 = vst [vmem:[#allocation51_spill] sm:$0xff] %v6147_v57  ;;  %v1323_v21 = vrot.slane %v6145_v24, 1  ;;  %v1237_v14 = vrot.slane %v6147_v57, 7  ;;  %v1329_v42 = vrot.slane %v6147_v57, 1  ;;  %8205 = vst [vmem:[#allocation52_spill] sm:$0xff] %v6165_v47  ;;  %v6177_v24 = vsel %vm1181_vm3, %v1229_v26, %v1231_v36 }
 0x206   : > { %v6162_v25 = vsel %vm1273_vm4, %v1325_v31, %v1327_v48 }
 0x207   : > { %v6171_v49 = vsel %vm1273_vm4, %v1323_v21, %v1325_v31  ;;  %v6182_v57 = vsel %vm1181_vm3, %v1235_v27, %v1237_v14  ;;  %v6185_v47 = vsel %vm1273_vm4, %v1327_v48, %v1329_v42 }
 0x208   : > { %1546 = vrot.lane.b32.xlu1 %v5900_v51, %s5520_s24  ;;  %v6168_v51 = vsel %vm1273_vm4, %v1321_v1, %v1323_v21 }
 0x209   : > { %1544 = vrot.lane.b32.xlu0 %v5906_v63, %s5520_s24 }
 0x20c   : > { %1650 = vrot.lane.b32.xlu1 %v5902_v15, %s5519_s21 }
 0x20d   : > { %1652 = vrot.lane.b32.xlu0 %v5917_v61, %s5519_s21 }
 0x210   : > { %1365 = vrot.lane.b32.xlu1 %v5902_v15, %s5518_s28  ;;  %v1113_v15 = vadd.f32 %v5213_v52, %v5816_v34 }
 0x211   : > { %1367 = vrot.lane.b32.xlu0 %v5917_v61, %s5518_s28  ;;  %v5214_v61 = vpop.f32.mrb[30].mxu1 }
 0x212   : > { %v6210_v26 = vmax.f32 %v1113_v15, 0.0 }
 0x214   : > { %1361 = vrot.lane.b32.xlu1 %v5911_v39, %s5518_s28  ;;  %v1338_v52 = vrot.slane %v6210_v26, 7 }
 0x215   : > { %1363 = vrot.lane.b32.xlu0 %v5922_v17, %s5518_s28 }
 0x218   : > { %1646 = vrot.lane.b32.xlu1 %v5911_v39, %s5519_s21  ;;  %v6213_v39 = vadd.f32 %v5214_v61, %v5816_v34 }
 0x219   : > { %1648 = vrot.lane.b32.xlu0 %v5922_v17, %s5519_s21  ;;  %v1107_v17 = vpop.f32.mrb[31].mxu1 }
 0x21a   : > { %v1108_v1 = vadd.f32 %v5816_v34, %v1107_v17  ;;  %v8125_v31 = vmax.f32 %v6213_v39, 0.0 }
 0x21c   : > { %1550 = vrot.lane.b32.xlu1 %v5929_v11, %s5520_s24  ;;  %v1340_v48 = vrot.slane %v8125_v31, 7 }
 0x21d   : > { %1455 = vrot.lane.b32.xlu0 %v5932_v6, %s5517_s27  ;;  %v6219_v6 = vmax.f32 %v1108_v1, 0.0 }
 0x21f   : > { %v1331_v38 = vrot.slane %v6219_v6, 1  ;;  %v1239_v34 = vrot.slane %v6219_v6, 7 }
 0x220   : > { %1461 = vrot.lane.b32.xlu1 %v5940_v53, %s5517_s27  ;;  %v1333_v53 = vrot.slane %v6210_v26, 1 }
 0x221   : > { %1556 = vrot.lane.b32.xlu0 %v5943_v45, %s5520_s24  ;;  %v6240_v27 = vsel %vm1181_vm3, %v1239_v34, %v1338_v52  ;;  %v6246_v36 = vsel %vm1181_vm3, %v1237_v14, %v1239_v34  ;;  %v1438_v14 = vpop.permute.xlu1 %1437 }
 0x222   : > { %v6243_v21 = vsel %vm1273_vm4, %v1331_v38, %v1333_v53 }
 0x224   : > { %1457 = vrot.lane.b32.xlu1 %v5949_v40, %s5517_s27  ;;  %v6234_v40 = vsel %vm1273_vm4, %v1329_v42, %v1331_v38  ;;  %v1344_v42 = vpop.permute.xlu0 %1343 }
 0x225   : > { %1459 = vrot.lane.b32.xlu0 %v5952_v18, %s5517_s27  ;;  %v6237_v18 = vsel %vm1181_vm3, %v1338_v52, %v1340_v48  ;;  %v6295_v53 = vsel %vm1726_vm5, 0.0, %v1344_v42 }
 0x226   : > { %8206 = vst [vmem:[#allocation53_spill] sm:$0xff] %v6295_v53  ;;  %v6305_v48 = vsel %vm909_vm2, %v6295_v53, %v1438_v14  ;;  %v816_v14 = vld [vmem:[%s8068_s13 + $0x10] sm:$0xff] }
 0x228   : > { %1554 = vrot.lane.b32.xlu1 %v5955_v3, %s5520_s24 }
 0x229   : > { %1552 = vrot.lane.b32.xlu0 %v5961_v19, %s5520_s24 }
 0x22c   : > { %1658 = vrot.lane.b32.xlu1 %v5957_v35, %s5519_s21 }
 0x22d   : > { %1660 = vrot.lane.b32.xlu0 %v5968_v60, %s5519_s21 }
 0x230   : > { %1373 = vrot.lane.b32.xlu1 %v5957_v35, %s5518_s28 }
 0x231   : > { %1375 = vrot.lane.b32.xlu0 %v5968_v60, %s5518_s28 }
 0x234   : > { %1369 = vrot.lane.b32.xlu1 %v5963_v16, %s5518_s28 }
 0x235   : > { %1371 = vrot.lane.b32.xlu0 %v5974_v9, %s5518_s28 }
 0x238   : > { %1654 = vrot.lane.b32.xlu1 %v5963_v16, %s5519_s21 }
 0x239   : > { %1656 = vrot.lane.b32.xlu0 %v5974_v9, %s5519_s21 }
 0x23c   : > { %1558 = vrot.lane.b32.xlu1 %v5981_v33, %s5520_s24 }
 0x23d   : > { %1463 = vrot.lane.b32.xlu0 %v5984_v10, %s5517_s27 }
 0x23e   : > { %v1635_v35 = vpop.permute.xlu1 %1634 }
 0x23f   : > { %v1346_v60 = vpop.permute.xlu0 %1345 }
 0x240   : > { %1469 = vrot.lane.b32.xlu1 %v5992_v8, %s5517_s27  ;;  %v1728_v42 = vsel %vm1726_vm5, %v5909_v59, %v1346_v60 }
 0x241   : > { %1564 = vrot.lane.b32.xlu0 %v5995_v5, %s5520_s24 }
 0x242   : > { %v6272_v16 = vpop.permute.xlu1 %1349 }
 0x243   : > { %v1637_v15 = vpop.permute.xlu0 %1636 }
 0x244   : > { %1465 = vrot.lane.b32.xlu1 %v6001_v2, %s5517_s27 }
 0x245   : > { %1467 = vrot.lane.b32.xlu0 %v6004_v0, %s5517_s27 }
 0x246   : > { %v1631_v9 = vpop.permute.xlu1 %1630 }
 0x247   : > { %v6278_v61 = vpop.permute.xlu0 %1351 }
 0x248   : > { %1562 = vrot.lane.b32.xlu1 %v6007_v30, %s5520_s24 }
 0x249   : > { %1560 = vrot.lane.b32.xlu0 %v6013_v50, %s5520_s24 }
 0x24a   : > { %v1348_v8 = vpop.permute.xlu1 %1347 }
 0x24b   : > { %v1633_v10 = vpop.permute.xlu0 %1632 }
 0x24c   : > { %1666 = vrot.lane.b32.xlu1 %v6009_v58, %s5519_s21 }
 0x24d   : > { %1668 = vrot.lane.b32.xlu0 %v6020_v29, %s5519_s21 }
 0x24e   : > { %v1535_v2 = vpop.permute.xlu1 %1534 }
 0x24f   : > { %v1440_v17 = vpop.permute.xlu0 %1439  ;;  %v1790_v38 = vsel %vm600_vm1, %v6305_v48, %v1535_v2  ;;  %v814_v2 = vld [vmem:[%s8068_s13] sm:$0xff] }
 0x250   : > { %1381 = vrot.lane.b32.xlu1 %v6009_v58, %s5518_s28  ;;  %v1729_v58 = vsel %vm1726_vm5, %v5855_v43, %v1348_v8  ;;  %v1759_v59 = vsel %vm909_vm2, %v6295_v53, %v1440_v17 }
 0x251   : > { %1383 = vrot.lane.b32.xlu0 %v6020_v29, %s5518_s28 }
 0x252   : > { %v6292_v0 = vpop.permute.xlu1 %1445 }
 0x253   : > { %v1541_v1 = vpop.permute.xlu0 %1540 }
 0x254   : > { %1377 = vrot.lane.b32.xlu1 %v6015_v44, %s5518_s28 }
 0x255   : > { %1379 = vrot.lane.b32.xlu0 %v6026_v12, %s5518_s28 }
 0x256   : > { %v1442_v52 = vpop.permute.xlu1 %1441 }
 0x257   : > { %v1444_v29 = vpop.permute.xlu0 %1443  ;;  %v1760_v43 = vsel %vm909_vm2, %v1728_v42, %v1442_v52  ;;  %v817_v52 = vld [vmem:[%s8068_s13 + $0x18] sm:$0xff] }
 0x258   : > { %v1761_v34 = vsel %vm909_vm2, %v1729_v58, %v1444_v29  ;;  %1662 = vrot.lane.b32.xlu1 %v6015_v44, %s5519_s21  ;;  %v1823_v44 = vsel %vm1822_vm6, %v1790_v38, %v1631_v9 }
 0x259   : > { %v1793_v31 = vsel %vm600_vm1, %v1761_v34, %v1541_v1  ;;  %1664 = vrot.lane.b32.xlu0 %v6026_v12, %s5519_s21  ;;  %v815_v12 = vld [vmem:[%s8068_s13 + $0x8] sm:$0xff]  ;;  %v1855_v34 = vmul.f32 %v1823_v44, %v814_v2  ;;  %v8208_v2 = vld [vmem:[#allocation40_spill] sm:$0xff] }
 0x25a   : > { %v1539_v8 = vpop.permute.xlu1 %1538  ;;  %v1826_v58 = vsel %vm1822_vm6, %v1793_v31, %v1637_v15  ;;  %v8207_v15 = vld [vmem:[#allocation38_spill] sm:$0xff] }
 0x25b   : > { %v1792_v60 = vsel %vm600_vm1, %v1760_v43, %v1539_v8  ;;  %v1537_v1 = vpop.permute.xlu0 %1536  ;;  %v1858_v8 = vmul.f32 %v1826_v58, %v817_v52  ;;  %v8211_v58 = vld [vmem:[#allocation41_spill] sm:$0xff] }
 0x25c   : > { %v1825_v29 = vsel %vm1822_vm6, %v1792_v60, %v1635_v35  ;;  %v1791_v9 = vsel %vm600_vm1, %v1759_v59, %v1537_v1  ;;  %1566 = vrot.lane.b32.xlu1 %v6033_v55, %s5520_s24  ;;  %v8209_v60 = vld [vmem:[#allocation39_spill] sm:$0xff] }
 0x25d   : > { %v1857_v17 = vmul.f32 %v1825_v29, %v816_v14  ;;  %v1824_v38 = vsel %vm1822_vm6, %v1791_v9, %v1633_v10  ;;  %1471 = vrot.lane.b32.xlu0 %v6036_v62, %s5517_s27  ;;  %v8212_v29 = vld [vmem:[#allocation35_spill] sm:$0xff] }
 0x25e   : > { %v1856_v42 = vmul.f32 %v1824_v38, %v815_v12  ;;  %v1643_v43 = vpop.permute.xlu1 %1642  ;;  %v8210_v12 = vld [vmem:[#allocation42_spill] sm:$0xff]  ;;  %v1730_v9 = vsel %vm1726_vm5, %v8212_v29, %v6272_v16 }
 0x25f   : > { %v1645_v53 = vpop.permute.xlu0 %1644  ;;  %v1888_v35 = vpack.c.bf16 %v1858_v8, %v1857_v17  ;;  %v1762_v38 = vsel %vm909_vm2, %v1730_v9, %v6292_v0  ;;  %v8213_v0 = vld [vmem:[#allocation34_spill] sm:$0xff] }
 0x260   : > { %v1887_v31 = vpack.c.bf16 %v1856_v42, %v1855_v34  ;;  %1477 = vrot.lane.b32.xlu1 %v6044_v28, %s5517_s27 }
 0x261   : > { %1572 = vrot.lane.b32.xlu0 %v8207_v15, %s5520_s24 }
 0x262   : > { %v6346_v14 = vpop.permute.xlu1 %1357  ;;  %5221 = vmatprep.mubr.msk.bf16.mxu0 %vm1930_vm7, %v1887_v31 }
 0x263   : > { %v6349_v10 = vpop.permute.xlu0 %1359  ;;  %5222 = vmatmul.mubr.msk.bf16.vlgmr.msra.gmra.mrb[32].mxu0 %vm1930_vm7, %v1888_v35 }
 0x264   : > { %1473 = vrot.lane.b32.xlu1 %v6053_v23, %s5517_s27 }
 0x265   : > { %1475 = vrot.lane.b32.xlu0 %v6056_v37, %s5517_s27 }
 0x266   : > { %v1354_v62 = vpop.permute.xlu1 %1353 }
 0x267   : > { %v1356_v28 = vpop.permute.xlu0 %1355  ;;  %v1732_v35 = vsel %vm1726_vm5, %v5876_v13, %v1354_v62  ;;  %v818_v13 = vld [vmem:[%s8068_s13 + $0x20] sm:$0xff] }
 0x268   : > { %1570 = vrot.lane.b32.xlu1 %v6059_v32, %s5520_s24  ;;  %v1733_v34 = vsel %vm1726_vm5, %v5906_v63, %v1356_v28  ;;  %v1731_v63 = vsel %vm1726_vm5, %v8213_v0, %v6278_v61  ;;  %v819_v61 = vld [vmem:[%s8068_s13 + $0x28] sm:$0xff] }
 0x269   : > { %1568 = vrot.lane.b32.xlu0 %v8208_v2, %s5520_s24 }
 0x26a   : > { %v1639_v44 = vpop.permute.xlu1 %1638 }
 0x26b   : > { %v1641_v59 = vpop.permute.xlu0 %1640 }
 0x26c   : > { %1674 = vrot.lane.b32.xlu1 %v8209_v60, %s5519_s21 }
 0x26d   : > { %1676 = vrot.lane.b32.xlu0 %v8210_v12, %s5519_s21 }
 0x26e   : > { %v1543_v23 = vpop.permute.xlu1 %1542 }
 0x26f   : > { %v1448_v1 = vpop.permute.xlu0 %1447  ;;  %v1794_v8 = vsel %vm600_vm1, %v1762_v38, %v1543_v23 }
 0x270   : > { %1389 = vrot.lane.b32.xlu1 %v8209_v60, %s5518_s28  ;;  %v820_v60 = vld [vmem:[%s8068_s13 + $0x30] sm:$0xff]  ;;  %v1827_v62 = vsel %vm1822_vm6, %v1794_v8, %v1639_v44  ;;  %v1763_v23 = vsel %vm909_vm2, %v1731_v63, %v1448_v1  ;;  %v8214_v44 = vld [vmem:[#allocation43_spill] sm:$0xff] }
 0x271   : > { %1391 = vrot.lane.b32.xlu0 %v8210_v12, %s5518_s28 }
 0x272   : > { %v6368_v37 = vpop.permute.xlu1 %1453 }
 0x273   : > { %v1549_v52 = vpop.permute.xlu0 %1548 }
 0x274   : > { %1385 = vrot.lane.b32.xlu1 %v8211_v58, %s5518_s28 }
 0x275   : > { %1387 = vrot.lane.b32.xlu0 %v6078_v7, %s5518_s28 }
 0x276   : > { %v1450_v17 = vpop.permute.xlu1 %1449 }
 0x277   : > { %v1452_v42 = vpop.permute.xlu0 %1451  ;;  %v1764_v28 = vsel %vm909_vm2, %v1732_v35, %v1450_v17 }
 0x278   : > { %v1765_v31 = vsel %vm909_vm2, %v1733_v34, %v1452_v42  ;;  %1670 = vrot.lane.b32.xlu1 %v8211_v58, %s5519_s21  ;;  %v821_v58 = vld [vmem:[%s8068_s13 + $0x38] sm:$0xff]  ;;  %v8215_v34 = vld [vmem:[#allocation44_spill] sm:$0xff]  ;;  %v1859_v42 = vmul.f32 %v1827_v62, %v818_v13 }
 0x279   : > { %v1797_v16 = vsel %vm600_vm1, %v1765_v31, %v1549_v52  ;;  %1672 = vrot.lane.b32.xlu0 %v6078_v7, %s5519_s21 }
 0x27a   : > { %v1547_v12 = vpop.permute.xlu1 %1546  ;;  %v1830_v29 = vsel %vm1822_vm6, %v1797_v16, %v1645_v53  ;;  %v8216_v53 = vld [vmem:[#allocation45_spill] sm:$0xff] }
 0x27b   : > { %v1796_v7 = vsel %vm600_vm1, %v1764_v28, %v1547_v12  ;;  %v1545_v52 = vpop.permute.xlu0 %1544  ;;  %v1862_v35 = vmul.f32 %v1830_v29, %v821_v58  ;;  %v2191_v28 = vld [vmem:[%s8062_s7] sm:$0xf] }
 0x27c   : > { %v1829_v9 = vsel %vm1822_vm6, %v1796_v7, %v1643_v43  ;;  %v1795_v17 = vsel %vm600_vm1, %v1763_v23, %v1545_v52  ;;  %1574 = vrot.lane.b32.xlu1 %v8214_v44, %s5520_s24  ;;  %5429 = vmatprep.subr.msk.bf16.mxu0 %vm649_vm0, %v2191_v28  ;;  %v8218_v58 = vld [vmem:[#allocation46_spill] sm:$0xff] }
 0x27d   : > { %v1861_v1 = vmul.f32 %v1829_v9, %v820_v60  ;;  %v1828_v38 = vsel %vm1822_vm6, %v1795_v17, %v1641_v59  ;;  %1479 = vrot.lane.b32.xlu0 %v8215_v34, %s5517_s27  ;;  %v2241_v60 = vsel %vm649_vm0, %v2191_v28, 0  ;;  %v8219_v29 = vld [vmem:[#allocation50_spill] sm:$0xff]  ;;  %v8220_v9 = vld [vmem:[#allocation37_spill] sm:$0xff] }
 0x27e   : > { %v1860_v8 = vmul.f32 %v1828_v38, %v819_v61  ;;  %v1651_v31 = vpop.permute.xlu1 %1650  ;;  %5254 = vmatpush3.bf16.msra.mxu0 %v2241_v60  ;;  %v1734_v17 = vsel %vm1726_vm5, %v8220_v9, %v6346_v14  ;;  %v8223_v9 = vld [vmem:[#allocation48_spill] sm:$0xff] }
 0x27f   : > { %v1653_v0 = vpop.permute.xlu0 %1652  ;;  %v1890_v43 = vpack.c.bf16 %v1862_v35, %v1861_v1 }
 0x280   : > { %v1889_v63 = vpack.c.bf16 %v1860_v8, %v1859_v42  ;;  %1485 = vrot.lane.b32.xlu1 %v8216_v53, %s5517_s27  ;;  %v824_v53 = vld [vmem:[%s8068_s13 + $0x50] sm:$0xff] }
 0x281   : > { %1580 = vrot.lane.b32.xlu0 %v6098_v41, %s5520_s24 }
 0x282   : > { %v6421_v16 = vpop.permute.xlu1 %1365  ;;  %5225 = vmatprep.mubr.msk.bf16.mxu0 %vm1930_vm7, %v1889_v63 }
 0x283   : > { %v6424_v59 = vpop.permute.xlu0 %1367  ;;  %5226 = vmatmul.mubr.msk.bf16.gmra.mrb[36].mxu0 %vm1930_vm7, %v1890_v43 }
 0x284   : > { %1481 = vrot.lane.b32.xlu1 %v6104_v56, %s5517_s27 }
 0x285   : > { %1483 = vrot.lane.b32.xlu0 %v6107_v54, %s5517_s27  ;;  %v8217_v54 = vld [vmem:[#allocation49_spill] sm:$0xff] }
 0x286   : > { %v1362_v12 = vpop.permute.xlu1 %1361 }
 0x287   : > { %v1364_v13 = vpop.permute.xlu0 %1363  ;;  %v1736_v35 = vsel %vm1726_vm5, %v5929_v11, %v1362_v12  ;;  %v822_v11 = vld [vmem:[%s8068_s13 + $0x40] sm:$0xff] }
 0x288   : > { %1578 = vrot.lane.b32.xlu1 %v6110_v46, %s5520_s24  ;;  %v1737_v38 = vsel %vm1726_vm5, %v5961_v19, %v1364_v13 }
 0x289   : > { %1576 = vrot.lane.b32.xlu0 %v6113_v22, %s5520_s24 }
 0x28a   : > { %v1647_v56 = vpop.permute.xlu1 %1646 }
 0x28b   : > { %v1649_v62 = vpop.permute.xlu0 %1648 }
 0x28c   : > { %1682 = vrot.lane.b32.xlu1 %v6138_v20, %s5519_s21 }
 0x28d   : > { %1684 = vrot.lane.b32.xlu0 %v8217_v54, %s5519_s21 }
 0x28e   : > { %v1551_v23 = vpop.permute.xlu1 %1550 }
 0x28f   : > { %v1456_v7 = vpop.permute.xlu0 %1455 }
 0x290   : > { %1397 = vrot.lane.b32.xlu1 %v6138_v20, %s5518_s28  ;;  %v1766_v20 = vsel %vm909_vm2, %v1734_v17, %v6368_v37  ;;  %v8221_v37 = vld [vmem:[#allocation36_spill] sm:$0xff] }
 0x291   : > { %1399 = vrot.lane.b32.xlu0 %v8217_v54, %s5518_s28  ;;  %v1798_v42 = vsel %vm600_vm1, %v1766_v20, %v1551_v23  ;;  %v1735_v19 = vsel %vm1726_vm5, %v8221_v37, %v6349_v10  ;;  %v823_v10 = vld [vmem:[%s8068_s13 + $0x48] sm:$0xff]  ;;  %v825_v54 = vld [vmem:[%s8068_s13 + $0x58] sm:$0xff] }
 0x292   : > { %v6448_v61 = vpop.permute.xlu1 %1461  ;;  %v1831_v28 = vsel %vm1822_vm6, %v1798_v42, %v1647_v56  ;;  %v1767_v60 = vsel %vm909_vm2, %v1735_v19, %v1456_v7  ;;  %v8222_v56 = vld [vmem:[#allocation47_spill] sm:$0xff] }
 0x293   : > { %v1557_v52 = vpop.permute.xlu0 %1556  ;;  %v1863_v17 = vmul.f32 %v1831_v28, %v822_v11  ;;  %v8225_v19 = vld [vmem:[#allocation51_spill] sm:$0xff] }
 0x294   : > { %1393 = vrot.lane.b32.xlu1 %v8218_v58, %s5518_s28 }
 0x295   : > { %1395 = vrot.lane.b32.xlu0 %v8219_v29, %s5518_s28 }
 0x296   : > { %v1458_v1 = vpop.permute.xlu1 %1457 }
 0x297   : > { %v1460_v34 = vpop.permute.xlu0 %1459  ;;  %v1768_v63 = vsel %vm909_vm2, %v1736_v35, %v1458_v1 }
 0x298   : > { %v1769_v8 = vsel %vm909_vm2, %v1737_v38, %v1460_v34  ;;  %1678 = vrot.lane.b32.xlu1 %v8218_v58, %s5519_s21 }
 0x299   : > { %v1801_v14 = vsel %vm600_vm1, %v1769_v8, %v1557_v52  ;;  %1680 = vrot.lane.b32.xlu0 %v8219_v29, %s5519_s21 }
 0x29a   : > { %v1555_v43 = vpop.permute.xlu1 %1554  ;;  %v1834_v23 = vsel %vm1822_vm6, %v1801_v14, %v1653_v0  ;;  %v8224_v0 = vld [vmem:[#allocation52_spill] sm:$0xff] }
 0x29b   : > { %v1800_v12 = vsel %vm600_vm1, %v1768_v63, %v1555_v43  ;;  %v1553_v13 = vpop.permute.xlu0 %1552  ;;  %v1866_v38 = vmul.f32 %v1834_v23, %v825_v54  ;;  %v1738_v43 = vsel %vm1726_vm5, %v5955_v3, %v6421_v16  ;;  %v829_v23 = vld [vmem:[%s8068_s13 + $0x78] sm:$0xff] }
 0x29c   : > { %v1833_v52 = vsel %vm1822_vm6, %v1800_v12, %v1651_v31  ;;  %v1799_v58 = vsel %vm600_vm1, %v1767_v60, %v1553_v13  ;;  %1582 = vrot.lane.b32.xlu1 %v8222_v56, %s5520_s24  ;;  %v1770_v28 = vsel %vm909_vm2, %v1738_v43, %v6448_v61  ;;  %v828_v61 = vld [vmem:[%s8068_s13 + $0x70] sm:$0xff] }
 0x29d   : > { %v1865_v7 = vmul.f32 %v1833_v52, %v824_v53  ;;  %v1832_v29 = vsel %vm1822_vm6, %v1799_v58, %v1649_v62  ;;  %1487 = vrot.lane.b32.xlu0 %v8223_v9, %s5517_s27 }
 0x29e   : > { %v1864_v1 = vmul.f32 %v1832_v29, %v823_v10  ;;  %v1659_v20 = vpop.permute.xlu1 %1658 }
 0x29f   : > { %v1661_v34 = vpop.permute.xlu0 %1660  ;;  %v1892_v31 = vpack.c.bf16 %v1866_v38, %v1865_v7 }
 0x2a0   : > { %v1891_v42 = vpack.c.bf16 %v1864_v1, %v1863_v17  ;;  %1493 = vrot.lane.b32.xlu1 %v6162_v25, %s5517_s27 }
 0x2a1   : > { %1588 = vrot.lane.b32.xlu0 %v8224_v0, %s5520_s24 }
 0x2a2   : > { %v6501_v8 = vpop.permute.xlu1 %1373  ;;  %5229 = vmatprep.mubr.msk.bf16.mxu0 %vm1930_vm7, %v1891_v42 }
 0x2a3   : > { %v6504_v62 = vpop.permute.xlu0 %1375  ;;  %5230 = vmatmul.mubr.msk.bf16.gmra.mrb[40].mxu0 %vm1930_vm7, %v1892_v31  ;;  %v1742_v43 = vsel %vm1726_vm5, %v6007_v30, %v6501_v8 }
 0x2a4   : > { %1489 = vrot.lane.b32.xlu1 %v6168_v51, %s5517_s27  ;;  %v1743_v30 = vsel %vm1726_vm5, %v5995_v5, %v6504_v62  ;;  %v831_v5 = vld [vmem:[%s8068_s13 + $0x88] sm:$0xff] }
 0x2a5   : > { %1491 = vrot.lane.b32.xlu0 %v6171_v49, %s5517_s27 }
 0x2a6   : > { %v1370_v35 = vpop.permute.xlu1 %1369 }
 0x2a7   : > { %v1372_v25 = vpop.permute.xlu0 %1371 }
 0x2a8   : > { %1586 = vrot.lane.b32.xlu1 %v6174_v4, %s5520_s24  ;;  %v1741_v60 = vsel %vm1726_vm5, %v6013_v50, %v1372_v25  ;;  %v1739_v50 = vsel %vm1726_vm5, %v5943_v45, %v6424_v59  ;;  %v827_v45 = vld [vmem:[%s8068_s13 + $0x68] sm:$0xff] }
 0x2a9   : > { %1584 = vrot.lane.b32.xlu0 %v6177_v24, %s5520_s24 }
 0x2aa   : > { %v1655_v14 = vpop.permute.xlu1 %1654 }
 0x2ab   : > { %v1657_v37 = vpop.permute.xlu0 %1656 }
 0x2ac   : > { %1401 = vrot.lane.b32.xlu1 %v8225_v19, %s5518_s28 }
 0x2ad   : > { %1403 = vrot.lane.b32.xlu0 %v6219_v6, %s5518_s28 }
 0x2ae   : > { %v1559_v51 = vpop.permute.xlu1 %1558 }
 0x2af   : > { %v1464_v63 = vpop.permute.xlu0 %1463  ;;  %v1802_v12 = vsel %vm600_vm1, %v1770_v28, %v1559_v51 }
 0x2b0   : > { %1686 = vrot.lane.b32.xlu1 %v8225_v19, %s5519_s21  ;;  %v1771_v54 = vsel %vm909_vm2, %v1739_v50, %v1464_v63 }
 0x2b1   : > { %1688 = vrot.lane.b32.xlu0 %v6219_v6, %s5519_s21 }
 0x2b2   : > { %v1470_v49 = vpop.permute.xlu1 %1469 }
 0x2b3   : > { %v1565_v53 = vpop.permute.xlu0 %1564  ;;  %v1774_v28 = vsel %vm909_vm2, %v1742_v43, %v1470_v49 }
 0x2b4   : > { %1590 = vrot.lane.b32.xlu1 %v6182_v57, %s5520_s24 }
 0x2b5   : > { %1495 = vrot.lane.b32.xlu0 %v6185_v47, %s5517_s27  ;;  %v1740_v47 = vsel %vm1726_vm5, %v5981_v33, %v1370_v35  ;;  %v826_v33 = vld [vmem:[%s8068_s13 + $0x60] sm:$0xff] }
 0x2b6   : > { %v1466_v11 = vpop.permute.xlu1 %1465 }
 0x2b7   : > { %v1468_v6 = vpop.permute.xlu0 %1467  ;;  %v1772_v16 = vsel %vm909_vm2, %v1740_v47, %v1466_v11 }
 0x2b8   : > { %v1773_v10 = vsel %vm909_vm2, %v1741_v60, %v1468_v6  ;;  %1497 = vrot.lane.b32.xlu1 %v6234_v40, %s5517_s27  ;;  %v1835_v40 = vsel %vm1822_vm6, %v1802_v12, %v1655_v14 }
 0x2b9   : > { %v1805_v3 = vsel %vm600_vm1, %v1773_v10, %v1565_v53  ;;  %1596 = vrot.lane.b32.xlu0 %v6237_v18, %s5520_s24  ;;  %v1867_v17 = vmul.f32 %v1835_v40, %v826_v33 }
 0x2ba   : > { %v1563_v13 = vpop.permute.xlu1 %1562  ;;  %v1838_v52 = vsel %vm1822_vm6, %v1805_v3, %v1661_v34  ;;  %v830_v3 = vld [vmem:[%s8068_s13 + $0x80] sm:$0xff] }
 0x2bb   : > { %v1804_v18 = vsel %vm600_vm1, %v1772_v16, %v1563_v13  ;;  %v1561_v59 = vpop.permute.xlu0 %1560  ;;  %v1870_v42 = vmul.f32 %v1838_v52, %v829_v23 }
 0x2bc   : > { %v1837_v58 = vsel %vm1822_vm6, %v1804_v18, %v1659_v20  ;;  %v1803_v7 = vsel %vm600_vm1, %v1771_v54, %v1561_v59  ;;  %1594 = vrot.lane.b32.xlu1 %v6240_v27, %s5520_s24 }
 0x2bd   : > { %v1869_v29 = vmul.f32 %v1837_v58, %v828_v61  ;;  %v1836_v9 = vsel %vm1822_vm6, %v1803_v7, %v1657_v37  ;;  %1499 = vrot.lane.b32.xlu0 %v6243_v21, %s5517_s27  ;;  %v8226_v21 = vmax.f32 %v6213_v39, 0.0  ;;  %v833_v61 = vld [vmem:[%s8068_s13 + $0x98] sm:$0xff] }
 0x2be   : > { %v1868_v1 = vmul.f32 %v1836_v9, %v827_v45  ;;  %v1667_v38 = vpop.permute.xlu1 %1666 }
 0x2bf   : > { %v1669_v31 = vpop.permute.xlu0 %1668  ;;  %v1894_v20 = vpack.c.bf16 %v1870_v42, %v1869_v29 }
 0x2c0   : > { %v1893_v35 = vpack.c.bf16 %v1868_v1, %v1867_v17  ;;  %1690 = vrot.lane.b32.xlu1 %v6210_v26, %s5519_s21 }
 0x2c1   : > { %1592 = vrot.lane.b32.xlu0 %v6246_v36, %s5520_s24 }
 0x2c2   : > { %v1382_v27 = vpop.permute.xlu1 %1381  ;;  %5233 = vmatprep.mubr.msk.bf16.mxu0 %vm1930_vm7, %v1893_v35 }
 0x2c3   : > { %v6575_v34 = vpop.permute.xlu0 %1383  ;;  %5234 = vmatmul.mubr.msk.bf16.gmra.mrb[44].mxu0 %vm1930_vm7, %v1894_v20 }
 0x2c5   : > { %1692 = vrot.lane.b32.xlu0 %v8226_v21, %s5519_s21 }
 0x2c6   : > { %v1378_v25 = vpop.permute.xlu1 %1377 }
 0x2c7   : > { %v1380_v14 = vpop.permute.xlu0 %1379  ;;  %v1744_v10 = vsel %vm1726_vm5, %v6033_v55, %v1378_v25 }
 0x2c8   : > { %v1745_v60 = vsel %vm1726_vm5, %v8208_v2, %v1380_v14  ;;  %v832_v2 = vld [vmem:[%s8068_s13 + $0x90] sm:$0xff]  ;;  %v1746_v14 = vsel %vm1726_vm5, %v6059_v32, %v1382_v27  ;;  %v1747_v32 = vsel %vm1726_vm5, %v8207_v15, %v6575_v34  ;;  %v835_v15 = vld [vmem:[%s8068_s13 + $0xa8] sm:$0xff] }
 0x2ca   : > { %v1663_v37 = vpop.permute.xlu1 %1662 }
 0x2cb   : > { %v1665_v19 = vpop.permute.xlu0 %1664 }
 0x2ce   : > { %v1567_v26 = vpop.permute.xlu1 %1566 }
 0x2cf   : > { %v1472_v51 = vpop.permute.xlu0 %1471  ;;  %v1806_v6 = vsel %vm600_vm1, %v1774_v28, %v1567_v26 }
 0x2d0   : > { %v1839_v50 = vsel %vm1822_vm6, %v1806_v6, %v1663_v37  ;;  %v1775_v55 = vsel %vm909_vm2, %v1743_v30, %v1472_v51 }
 0x2d1   : > { %v1871_v45 = vmul.f32 %v1839_v50, %v830_v3 }
 0x2d2   : > { %v1478_v63 = vpop.permute.xlu1 %1477 }
 0x2d3   : > { %v1573_v53 = vpop.permute.xlu0 %1572 }
 0x2d6   : > { %v1474_v11 = vpop.permute.xlu1 %1473 }
 0x2d7   : > { %v1476_v39 = vpop.permute.xlu0 %1475  ;;  %v1776_v8 = vsel %vm909_vm2, %v1744_v10, %v1474_v11 }
 0x2d8   : > { %v1777_v12 = vsel %vm909_vm2, %v1745_v60, %v1476_v39  ;;  %v834_v60 = vld [vmem:[%s8068_s13 + $0xa0] sm:$0xff] }
 0x2d9   : > { %v1809_v47 = vsel %vm600_vm1, %v1777_v12, %v1573_v53  ;;  %v837_v12 = vld [vmem:[%s8068_s13 + $0xb8] sm:$0xff] }
 0x2da   : > { %v1571_v49 = vpop.permute.xlu1 %1570  ;;  %v1842_v13 = vsel %vm1822_vm6, %v1809_v47, %v1669_v31 }
 0x2db   : > { %v1808_v16 = vsel %vm600_vm1, %v1776_v8, %v1571_v49  ;;  %v1569_v62 = vpop.permute.xlu0 %1568  ;;  %v1874_v52 = vmul.f32 %v1842_v13, %v833_v61 }
 0x2dc   : > { %v1841_v33 = vsel %vm1822_vm6, %v1808_v16, %v1667_v38  ;;  %v1807_v40 = vsel %vm600_vm1, %v1775_v55, %v1569_v62 }
 0x2dd   : > { %v1873_v54 = vmul.f32 %v1841_v33, %v832_v2  ;;  %v1840_v18 = vsel %vm1822_vm6, %v1807_v40, %v1665_v19  ;;  %v1778_v19 = vsel %vm909_vm2, %v1746_v14, %v1478_v63 }
 0x2de   : > { %v1872_v59 = vmul.f32 %v1840_v18, %v831_v5  ;;  %v1675_v23 = vpop.permute.xlu1 %1674 }
 0x2df   : > { %v1677_v58 = vpop.permute.xlu0 %1676  ;;  %v1896_v29 = vpack.c.bf16 %v1874_v52, %v1873_v54 }
 0x2e0   : > { %v1895_v7 = vpack.c.bf16 %v1872_v59, %v1871_v45 }
 0x2e2   : > { %v1390_v9 = vpop.permute.xlu1 %1389  ;;  %5237 = vmatprep.mubr.msk.bf16.mxu0 %vm1930_vm7, %v1895_v7 }
 0x2e3   : > { %v6616_v17 = vpop.permute.xlu0 %1391  ;;  %5238 = vmatmul.mubr.msk.bf16.gmra.mrb[48].mxu0 %vm1930_vm7, %v1896_v29 }
 0x2e6   : > { %v1386_v1 = vpop.permute.xlu1 %1385 }
 0x2e7   : > { %v1388_v38 = vpop.permute.xlu0 %1387  ;;  %v1748_v11 = vsel %vm1726_vm5, %v8214_v44, %v1386_v1 }
 0x2e8   : > { %v1749_v26 = vsel %vm1726_vm5, %v6113_v22, %v1388_v38  ;;  %v836_v22 = vld [vmem:[%s8068_s13 + $0xb0] sm:$0xff] }
 0x2ea   : > { %v1671_v42 = vpop.permute.xlu1 %1670 }
 0x2eb   : > { %v1673_v31 = vpop.permute.xlu0 %1672 }
 0x2ee   : > { %v1575_v35 = vpop.permute.xlu1 %1574 }
 0x2ef   : > { %v1480_v20 = vpop.permute.xlu0 %1479  ;;  %v1810_v53 = vsel %vm600_vm1, %v1778_v19, %v1575_v35  ;;  %v841_v19 = vld [vmem:[%s8068_s13 + $0xd8] sm:$0xff] }
 0x2f0   : > { %v1843_v39 = vsel %vm1822_vm6, %v1810_v53, %v1671_v42  ;;  %v1779_v44 = vsel %vm909_vm2, %v1747_v32, %v1480_v20 }
 0x2f1   : > { %v1875_v49 = vmul.f32 %v1843_v39, %v834_v60 }
 0x2f2   : > { %v1486_v21 = vpop.permute.xlu1 %1485 }
 0x2f3   : > { %v1581_v25 = vpop.permute.xlu0 %1580 }
 0x2f6   : > { %v1482_v37 = vpop.permute.xlu1 %1481 }
 0x2f7   : > { %v1484_v51 = vpop.permute.xlu0 %1483  ;;  %v1780_v27 = vsel %vm909_vm2, %v1748_v11, %v1482_v37 }
 0x2f8   : > { %v1781_v43 = vsel %vm909_vm2, %v1749_v26, %v1484_v51 }
 0x2f9   : > { %v1813_v28 = vsel %vm600_vm1, %v1781_v43, %v1581_v25  ;;  %v838_v25 = vld [vmem:[%s8068_s13 + $0xc0] sm:$0xff] }
 0x2fa   : > { %v1579_v63 = vpop.permute.xlu1 %1578  ;;  %v1846_v10 = vsel %vm1822_vm6, %v1813_v28, %v1677_v58  ;;  %v1750_v58 = vsel %vm1726_vm5, %v6110_v46, %v1390_v9  ;;  %v1751_v46 = vsel %vm1726_vm5, %v6098_v41, %v6616_v17  ;;  %v839_v41 = vld [vmem:[%s8068_s13 + $0xc8] sm:$0xff] }
 0x2fb   : > { %v1812_v6 = vsel %vm600_vm1, %v1780_v27, %v1579_v63  ;;  %v1577_v34 = vpop.permute.xlu0 %1576  ;;  %v1878_v55 = vmul.f32 %v1846_v10, %v837_v12  ;;  %v1782_v29 = vsel %vm909_vm2, %v1750_v58, %v1486_v21  ;;  %v845_v58 = vld [vmem:[%s8068_s13 + $0xf8] sm:$0xff] }
 0x2fc   : > { %v1845_v47 = vsel %vm1822_vm6, %v1812_v6, %v1675_v23  ;;  %v1811_v30 = vsel %vm600_vm1, %v1779_v44, %v1577_v34 }
 0x2fd   : > { %v1877_v8 = vmul.f32 %v1845_v47, %v836_v22  ;;  %v1844_v2 = vsel %vm1822_vm6, %v1811_v30, %v1673_v31 }
 0x2fe   : > { %v1876_v3 = vmul.f32 %v1844_v2, %v835_v15  ;;  %v1683_v50 = vpop.permute.xlu1 %1682 }
 0x2ff   : > { %v1685_v16 = vpop.permute.xlu0 %1684  ;;  %v1898_v62 = vpack.c.bf16 %v1878_v55, %v1877_v8 }
 0x300   : > { %v1897_v5 = vpack.c.bf16 %v1876_v3, %v1875_v49 }
 0x302   : > { %v1398_v61 = vpop.permute.xlu1 %1397  ;;  %5241 = vmatprep.mubr.msk.bf16.mxu0 %vm1930_vm7, %v1897_v5 }
 0x303   : > { %v1400_v13 = vpop.permute.xlu0 %1399  ;;  %5242 = vmatmul.mubr.msk.bf16.gmra.mrb[52].mxu0 %vm1930_vm7, %v1898_v62  ;;  %v1754_v47 = vsel %vm1726_vm5, %v6174_v4, %v1398_v61  ;;  %v843_v61 = vld [vmem:[%s8068_s13 + $0xe8] sm:$0xff] }
 0x304   : > { %v1755_v3 = vsel %vm1726_vm5, %v8224_v0, %v1400_v13 }
 0x306   : > { %v1394_v33 = vpop.permute.xlu1 %1393 }
 0x307   : > { %v1396_v40 = vpop.permute.xlu0 %1395  ;;  %v1752_v35 = vsel %vm1726_vm5, %v8222_v56, %v1394_v33  ;;  %v6713_v33 = vld [vmem:[%s8061_s6] ss:$0 sm:$0xff] }
 0x308   : > { %v1753_v1 = vsel %vm1726_vm5, %v6177_v24, %v1396_v40  ;;  %v840_v24 = vld [vmem:[%s8068_s13 + $0xd0] sm:$0xff] }
 0x30a   : > { %v1679_v54 = vpop.permute.xlu1 %1678 }
 0x30b   : > { %v1681_v18 = vpop.permute.xlu0 %1680 }
 0x30e   : > { %v1583_v45 = vpop.permute.xlu1 %1582 }
 0x30f   : > { %v1488_v59 = vpop.permute.xlu0 %1487  ;;  %v1814_v42 = vsel %vm600_vm1, %v1782_v29, %v1583_v45  ;;  %v844_v45 = vld [vmem:[%s8068_s13 + $0xf0] sm:$0xff] }
 0x310   : > { %v1847_v14 = vsel %vm1822_vm6, %v1814_v42, %v1679_v54  ;;  %v1783_v56 = vsel %vm909_vm2, %v1751_v46, %v1488_v59 }
 0x311   : > { %v1879_v28 = vmul.f32 %v1847_v14, %v838_v25 }
 0x312   : > { %v1494_v23 = vpop.permute.xlu1 %1493 }
 0x313   : > { %v1589_v52 = vpop.permute.xlu0 %1588  ;;  %v1786_v8 = vsel %vm909_vm2, %v1754_v47, %v1494_v23 }
 0x316   : > { %v1490_v7 = vpop.permute.xlu1 %1489 }
 0x317   : > { %v1492_v38 = vpop.permute.xlu0 %1491  ;;  %v1784_v9 = vsel %vm909_vm2, %v1752_v35, %v1490_v7 }
 0x318   : > { %v1785_v31 = vsel %vm909_vm2, %v1753_v1, %v1492_v38 }
 0x319   : > { %v1817_v20 = vsel %vm600_vm1, %v1785_v31, %v1589_v52 }
 0x31a   : > { %v1587_v21 = vpop.permute.xlu1 %1586  ;;  %v1850_v26 = vsel %vm1822_vm6, %v1817_v20, %v1685_v16  ;;  %v842_v16 = vld [vmem:[%s8068_s13 + $0xe0] sm:$0xff] }
 0x31b   : > { %v1816_v37 = vsel %vm600_vm1, %v1784_v9, %v1587_v21  ;;  %v1585_v17 = vpop.permute.xlu0 %1584  ;;  %v1882_v22 = vmul.f32 %v1850_v26, %v841_v19 }
 0x31c   : > { %v1849_v51 = vsel %vm1822_vm6, %v1816_v37, %v1683_v50  ;;  %v1815_v53 = vsel %vm600_vm1, %v1783_v56, %v1585_v17 }
 0x31d   : > { %v1881_v43 = vmul.f32 %v1849_v51, %v840_v24  ;;  %v1848_v11 = vsel %vm1822_vm6, %v1815_v53, %v1681_v18 }
 0x31e   : > { %v1880_v32 = vmul.f32 %v1848_v11, %v839_v41  ;;  %v1402_v27 = vpop.permute.xlu1 %1401 }
 0x31f   : > { %v1404_v63 = vpop.permute.xlu0 %1403  ;;  %v1900_v39 = vpack.c.bf16 %v1882_v22, %v1881_v43  ;;  %v1756_v50 = vsel %vm1726_vm5, %v6182_v57, %v1402_v27 }
 0x320   : > { %v1899_v60 = vpack.c.bf16 %v1880_v32, %v1879_v28  ;;  %v1757_v55 = vsel %vm1726_vm5, %v6246_v36, %v1404_v63 }
 0x322   : > { %v1687_v44 = vpop.permute.xlu1 %1686  ;;  %5245 = vmatprep.mubr.msk.bf16.mxu0 %vm1930_vm7, %v1899_v60 }
 0x323   : > { %v1689_v6 = vpop.permute.xlu0 %1688  ;;  %5246 = vmatmul.mubr.msk.bf16.gmra.mrb[56].mxu0 %vm1930_vm7, %v1900_v39 }
 0x326   : > { %v1591_v15 = vpop.permute.xlu1 %1590 }
 0x327   : > { %v1496_v34 = vpop.permute.xlu0 %1495  ;;  %v1818_v49 = vsel %vm600_vm1, %v1786_v8, %v1591_v15 }
 0x328   : > { %v1851_v4 = vsel %vm1822_vm6, %v1818_v49, %v1687_v44  ;;  %v1787_v5 = vsel %vm909_vm2, %v1755_v3, %v1496_v34  ;;  %v5468_v34 = vld [vmem:[%s8058_s3 + $0x8] sm:$0xff]  }
 0x329   : > { %v1883_v18 = vmul.f32 %v1851_v4, %v842_v16  ;;  %5287 = vmatprep.subr.bf16.mxu1 %v5468_v34 }
 0x32a   : > { %v1498_v12 = vpop.permute.xlu1 %1497  ;;  %5288 = vmatpush3.bf16.msra.mxu1 %v5468_v34 }
 0x32b   : > { %v1597_v10 = vpop.permute.xlu0 %1596  ;;  %v1788_v13 = vsel %vm909_vm2, %v1756_v50, %v1498_v12 }
 0x32e   : > { %v1595_v30 = vpop.permute.xlu1 %1594 }
 0x32f   : > { %v1500_v2 = vpop.permute.xlu0 %1499  ;;  %v1820_v40 = vsel %vm600_vm1, %v1788_v13, %v1595_v30 }
 0x330   : > { %v1789_v57 = vsel %vm909_vm2, %v1757_v55, %v1500_v2 }
 0x331   : > { %v1821_v29 = vsel %vm600_vm1, %v1789_v57, %v1597_v10 }
 0x332   : > { %v1691_v62 = vpop.permute.xlu1 %1690 }
 0x333   : > { %v1593_v0 = vpop.permute.xlu0 %1592  ;;  %v1853_v59 = vsel %vm1822_vm6, %v1820_v40, %v1691_v62 }
 0x334   : > { %v1819_v36 = vsel %vm600_vm1, %v1787_v5, %v1593_v0  ;;  %v1885_v46 = vmul.f32 %v1853_v59, %v844_v45 }
 0x335   : > { %v1852_v54 = vsel %vm1822_vm6, %v1819_v36, %v1689_v6 }
 0x336   : > { %v1884_v23 = vmul.f32 %v1852_v54, %v843_v61  ;;  %v5223_v52 = vpop.f32.mrb[32].mxu0 }
 0x337   : > { %v2025_v7 = vadd.f32 %v5223_v52, %v6713_v33  ;;  %v1693_v1 = vpop.permute.xlu0 %1692  ;;  %v2016_v38 = vpop.f32.mrb[33].mxu0 }
 0x338   : > { %v1901_v42 = vpack.c.bf16 %v1884_v23, %v1883_v18  ;;  %v1854_v31 = vsel %vm1822_vm6, %v1821_v29, %v1693_v1  ;;  %v2017_v35 = vadd.f32 %v6713_v33, %v2016_v38  ;;  %v5224_v20 = vpop.f32.mrb[34].mxu0 }
 0x339   : > { %v1886_v9 = vmul.f32 %v1854_v31, %v845_v58  ;;  %v2028_v24 = vadd.f32 %v5224_v20, %v6713_v33  ;;  %v2019_v21 = vpop.f32.mrb[35].mxu0  ;;  %v2145_v14 = vmax.f32 %v2025_v7, 0.0 }
 0x33a   : > { %v2020_v25 = vadd.f32 %v6713_v33, %v2019_v21  ;;  %5249 = vmatprep.mubr.msk.bf16.mxu0 %vm1930_vm7, %v1901_v42  ;;  %v2143_v41 = vmax.f32 %v2017_v35, 0.0 }
 0x33b   : > { %v1902_v56 = vpack.c.bf16 %v1886_v9, %v1885_v46  ;;  %v2146_v37 = vmax.f32 %v2028_v24, 0.0 }
 0x33c   : > { %v2144_v17 = vmax.f32 %v2020_v25, 0.0 }
 0x33d   : > { %v2176_v19 = vpack.c.bf16 %v2146_v37, %v2145_v14  ;;  %5250 = vmatmul.mubr.msk.bf16.gmra.mrb[60].mxu0 %vm1930_vm7, %v1902_v56 }
 0x33e   : > { %v2175_v26 = vpack.c.bf16 %v2144_v17, %v2143_v41 }
 0x340   : > { %5255 = vmatprep.mubr.msk.bf16.mxu0 %vm1726_vm5, %v2175_v26 }
 0x345   : > { %5256 = vmatmul.mubr.msk.bf16.vlgmr.msra.gmra.mrb[64].mxu0 %vm1726_vm5, %v2176_v19 }
 0x356   : > { %v5227_v51 = vpop.f32.mrb[36].mxu0 }
 0x357   : > { %v2041_v53 = vadd.f32 %v5227_v51, %v6713_v33  ;;  %v2032_v43 = vpop.f32.mrb[37].mxu0 }
 0x358   : > { %v2033_v11 = vadd.f32 %v6713_v33, %v2032_v43  ;;  %v5228_v28 = vpop.f32.mrb[38].mxu0 }
 0x359   : > { %v2044_v32 = vadd.f32 %v5228_v28, %v6713_v33  ;;  %v2035_v27 = vpop.f32.mrb[39].mxu0  ;;  %v2149_v63 = vmax.f32 %v2041_v53, 0.0 }
 0x35a   : > { %v2036_v22 = vadd.f32 %v6713_v33, %v2035_v27  ;;  %v2147_v39 = vmax.f32 %v2033_v11, 0.0 }
 0x35b   : > { %v2150_v60 = vmax.f32 %v2044_v32, 0.0 }
 0x35c   : > { %v2148_v44 = vmax.f32 %v2036_v22, 0.0 }
 0x35d   : > { %v2178_v6 = vpack.c.bf16 %v2150_v60, %v2149_v63 }
 0x35e   : > { %v2177_v15 = vpack.c.bf16 %v2148_v44, %v2147_v39 }
 0x360   : > { %5259 = vmatprep.mubr.msk.bf16.mxu0 %vm1726_vm5, %v2177_v15 }
 0x361   : > { %5260 = vmatmul.mubr.msk.bf16.gmra.mrb[68].mxu0 %vm1726_vm5, %v2178_v6 }
 0x376   : > { %v5231_v12 = vpop.f32.mrb[40].mxu0 }
 0x377   : > { %v2057_v10 = vadd.f32 %v5231_v12, %v6713_v33  ;;  %v2048_v47 = vpop.f32.mrb[41].mxu0 }
 0x378   : > { %v2049_v30 = vadd.f32 %v6713_v33, %v2048_v47  ;;  %v5232_v8 = vpop.f32.mrb[42].mxu0 }
 0x379   : > { %v2060_v2 = vadd.f32 %v5232_v8, %v6713_v33  ;;  %v2051_v49 = vpop.f32.mrb[43].mxu0  ;;  %v2153_v50 = vmax.f32 %v2057_v10, 0.0 }
 0x37a   : > { %v2052_v3 = vadd.f32 %v6713_v33, %v2051_v49  ;;  %v2151_v16 = vmax.f32 %v2049_v30, 0.0 }
 0x37b   : > { %v2154_v55 = vmax.f32 %v2060_v2, 0.0 }
 0x37c   : > { %v2152_v4 = vmax.f32 %v2052_v3, 0.0 }
 0x37d   : > { %v2180_v5 = vpack.c.bf16 %v2154_v55, %v2153_v50 }
 0x37e   : > { %v2179_v62 = vpack.c.bf16 %v2152_v4, %v2151_v16 }
 0x380   : > { %5263 = vmatprep.mubr.msk.bf16.mxu0 %vm1726_vm5, %v2179_v62 }
 0x381   : > { %5264 = vmatmul.mubr.msk.bf16.gmra.mrb[72].mxu0 %vm1726_vm5, %v2180_v5 }
 0x396   : > { %v5235_v61 = vpop.f32.mrb[44].mxu0 }
 0x397   : > { %v2073_v0 = vadd.f32 %v5235_v61, %v6713_v33  ;;  %v2064_v13 = vpop.f32.mrb[45].mxu0 }
 0x398   : > { %v2065_v57 = vadd.f32 %v6713_v33, %v2064_v13  ;;  %v5236_v36 = vpop.f32.mrb[46].mxu0 }
 0x399   : > { %v2076_v40 = vadd.f32 %v5236_v36, %v6713_v33  ;;  %v2067_v54 = vpop.f32.mrb[47].mxu0  ;;  %v2157_v45 = vmax.f32 %v2073_v0, 0.0 }
 0x39a   : > { %v2068_v18 = vadd.f32 %v6713_v33, %v2067_v54  ;;  %v2155_v23 = vmax.f32 %v2065_v57, 0.0 }
 0x39b   : > { %v2158_v59 = vmax.f32 %v2076_v40, 0.0 }
 0x39c   : > { %v2156_v52 = vmax.f32 %v2068_v18, 0.0 }
 0x39d   : > { %v2182_v58 = vpack.c.bf16 %v2158_v59, %v2157_v45  ;;  %v8227_v59 = vld [vmem:[#allocation3_spill] sm:$0xff] }
 0x39e   : > { %v2181_v7 = vpack.c.bf16 %v2156_v52, %v2155_v23  ;;  %v6781_v52 = vld [vmem:[%s8063_s8] ss:$0 sm:$0xff] }
 0x3a0   : > { %5267 = vmatprep.mubr.msk.bf16.mxu0 %vm1726_vm5, %v2181_v7  ;;  %v8228_v7 = vld [vmem:[#allocation2_spill] sm:$0xff] }
 0x3a1   : > { %5268 = vmatmul.mubr.msk.bf16.gmra.mrb[76].mxu0 %vm1726_vm5, %v2182_v58 }
 0x3b6   : > { %v5239_v29 = vpop.f32.mrb[48].mxu0 }
 0x3b7   : > { %v2089_v1 = vadd.f32 %v5239_v29, %v6713_v33  ;;  %v2080_v38 = vpop.f32.mrb[49].mxu0 }
 0x3b8   : > { %v2081_v42 = vadd.f32 %v6713_v33, %v2080_v38  ;;  %v5240_v31 = vpop.f32.mrb[50].mxu0 }
 0x3b9   : > { %v2092_v35 = vadd.f32 %v5240_v31, %v6713_v33  ;;  %v2083_v20 = vpop.f32.mrb[51].mxu0  ;;  %v2161_v9 = vmax.f32 %v2089_v1, 0.0 }
 0x3ba   : > { %v2084_v46 = vadd.f32 %v6713_v33, %v2083_v20  ;;  %v2159_v21 = vmax.f32 %v2081_v42, 0.0 }
 0x3bb   : > { %v2162_v24 = vmax.f32 %v2092_v35, 0.0  ;;  %v8230_v35 = vld [vmem:[#allocation5_spill] sm:$0xff] }
 0x3bc   : > { %v2160_v25 = vmax.f32 %v2084_v46, 0.0 }
 0x3bd   : > { %v2184_v14 = vpack.c.bf16 %v2162_v24, %v2161_v9 }
 0x3be   : > { %v2183_v56 = vpack.c.bf16 %v2160_v25, %v2159_v21 }
 0x3c0   : > { %5271 = vmatprep.mubr.msk.bf16.mxu0 %vm1726_vm5, %v2183_v56 }
 0x3c1   : > { %5272 = vmatmul.mubr.msk.bf16.gmra.mrb[80].mxu0 %vm1726_vm5, %v2184_v14 }
 0x3d6   : > { %v5243_v37 = vpop.f32.mrb[52].mxu0 }
 0x3d7   : > { %v2105_v41 = vadd.f32 %v5243_v37, %v6713_v33  ;;  %v2096_v17 = vpop.f32.mrb[53].mxu0 }
 0x3d8   : > { %v2097_v19 = vadd.f32 %v6713_v33, %v2096_v17  ;;  %v5244_v26 = vpop.f32.mrb[54].mxu0 }
 0x3d9   : > { %v2108_v51 = vadd.f32 %v5244_v26, %v6713_v33  ;;  %v2099_v53 = vpop.f32.mrb[55].mxu0  ;;  %v2165_v11 = vmax.f32 %v2105_v41, 0.0 }
 0x3da   : > { %v2100_v43 = vadd.f32 %v6713_v33, %v2099_v53  ;;  %v2163_v32 = vmax.f32 %v2097_v19, 0.0  ;;  %v8231_v19 = vld [vmem:[#allocation6_spill] sm:$0xff]  ;;  %v8232_v53 = vld [vmem:[#allocation7_spill] sm:$0xff] }
 0x3db   : > { %v2166_v28 = vmax.f32 %v2108_v51, 0.0 }
 0x3dc   : > { %v2164_v27 = vmax.f32 %v2100_v43, 0.0 }
 0x3dd   : > { %v2186_v22 = vpack.c.bf16 %v2166_v28, %v2165_v11  ;;  %v8233_v28 = vld [vmem:[#allocation8_spill] sm:$0xff] }
 0x3de   : > { %v2185_v63 = vpack.c.bf16 %v2164_v27, %v2163_v32 }
 0x3e0   : > { %5275 = vmatprep.mubr.msk.bf16.mxu0 %vm1726_vm5, %v2185_v63  ;;  %v8234_v63 = vld [vmem:[#allocation9_spill] sm:$0xff] }
 0x3e1   : > { %5276 = vmatmul.mubr.msk.bf16.gmra.mrb[84].mxu0 %vm1726_vm5, %v2186_v22 }
 0x3f6   : > { %v5247_v60 = vpop.f32.mrb[56].mxu0 }
 0x3f7   : > { %v2121_v39 = vadd.f32 %v5247_v60, %v6713_v33  ;;  %v2112_v44 = vpop.f32.mrb[57].mxu0 }
 0x3f8   : > { %v2113_v6 = vadd.f32 %v6713_v33, %v2112_v44  ;;  %v5248_v15 = vpop.f32.mrb[58].mxu0 }
 0x3f9   : > { %v2124_v34 = vadd.f32 %v5248_v15, %v6713_v33  ;;  %v2115_v12 = vpop.f32.mrb[59].mxu0  ;;  %v2169_v47 = vmax.f32 %v2121_v39, 0.0 }
 0x3fa   : > { %v2116_v10 = vadd.f32 %v6713_v33, %v2115_v12  ;;  %v2167_v8 = vmax.f32 %v2113_v6, 0.0 }
 0x3fb   : > { %v2170_v30 = vmax.f32 %v2124_v34, 0.0 }
 0x3fc   : > { %v2168_v2 = vmax.f32 %v2116_v10, 0.0 }
 0x3fd   : > { %v2188_v49 = vpack.c.bf16 %v2170_v30, %v2169_v47 }
 0x3fe   : > { %v2187_v3 = vpack.c.bf16 %v2168_v2, %v2167_v8  ;;  %v8235_v2 = vld [vmem:[#allocation10_spill] sm:$0xff] }
 0x400   : > { %5279 = vmatprep.mubr.msk.bf16.mxu0 %vm1726_vm5, %v2187_v3 }
 0x401   : > { %5280 = vmatmul.mubr.msk.bf16.gmra.mrb[88].mxu0 %vm1726_vm5, %v2188_v49 }
 0x410   : > { %v5251_v50 = vpop.f32.mrb[60].mxu0 }
 0x411   : > { %v2137_v55 = vadd.f32 %v5251_v50, %v6713_v33  ;;  %v2128_v16 = vpop.f32.mrb[61].mxu0  ;;  %v8236_v50 = vld [vmem:[#allocation11_spill] sm:$0xff] }
 0x412   : > { %v2129_v4 = vadd.f32 %v6713_v33, %v2128_v16  ;;  %v5252_v5 = vpop.f32.mrb[62].mxu0 }
 0x413   : > { %v2140_v62 = vadd.f32 %v5252_v5, %v6713_v33  ;;  %v2131_v61 = vpop.f32.mrb[63].mxu0  ;;  %v2173_v13 = vmax.f32 %v2137_v55, 0.0 }
 0x414   : > { %v2132_v0 = vadd.f32 %v6713_v33, %v2131_v61  ;;  %v2171_v36 = vmax.f32 %v2129_v4, 0.0  ;;  %v8229_v33 = vld [vmem:[#allocation4_spill] sm:$0xff] }
 0x415   : > { %v2174_v57 = vmax.f32 %v2140_v62, 0.0  ;;  %v8237_v4 = vld [vmem:[#allocation12_spill] sm:$0xff] }
 0x416   : > { %v2172_v40 = vmax.f32 %v2132_v0, 0.0  ;;  %v8238_v0 = vld [vmem:[#allocation13_spill] sm:$0xff] }
 0x417   : > { %v2190_v54 = vpack.c.bf16 %v2174_v57, %v2173_v13 }
 0x418   : > { %v2189_v18 = vpack.c.bf16 %v2172_v40, %v2171_v36  ;;  %v5257_v45 = vpop.f32.mrb[64].mxu0 }
 0x419   : > { %v2406_v23 = vadd.f32 %v5257_v45, %v8227_v59  ;;  %v2277_v58 = vpop.f32.mrb[65].mxu0 }
 0x41a   : > { %v2404_v29 = vadd.f32 %v2277_v58, %v8228_v7  ;;  %v5258_v1 = vpop.f32.mrb[66].mxu0  ;;  %5283 = vmatprep.mubr.msk.bf16.mxu0 %vm1726_vm5, %v2189_v18 }
 0x41b   : > { %v2407_v38 = vadd.f32 %v5258_v1, %v8229_v33  ;;  %v2280_v42 = vpop.f32.mrb[67].mxu0  ;;  %5284 = vmatmul.mubr.msk.bf16.gmra.mrb[92].mxu0 %vm1726_vm5, %v2190_v54  ;;  %v6792_v46 = vadd.f32 %v6781_v52, %v2406_v23 }
 0x41c   : > { %v6788_v31 = vadd.f32 %v6781_v52, %v2404_v29  ;;  %v2405_v20 = vadd.f32 %v2280_v42, %v8230_v35  ;;  %v8241_v29 = vld [vmem:[#allocation14_spill] sm:$0xff] }
 0x41d   : > { %v6795_v9 = vadd.f32 %v6781_v52, %v2407_v38  ;;  %v2477_v56 = vmax.f32 %v6792_v46, 0.0  ;;  %v8242_v38 = vld [vmem:[#allocation15_spill] sm:$0xff] }
 0x41e   : > { %v6798_v24 = vadd.f32 %v6781_v52, %v2405_v20  ;;  %v2475_v25 = vmax.f32 %v6788_v31, 0.0  ;;  %v8243_v20 = vld [vmem:[#allocation16_spill] sm:$0xff] }
 0x41f   : > { %v2478_v21 = vmax.f32 %v6795_v9, 0.0 }
 0x420   : > { %v2476_v14 = vmax.f32 %v6798_v24, 0.0 }
 0x421   : > { %v2508_v41 = vpack.c.bf16 %v2478_v21, %v2477_v56  ;;  %v8245_v56 = vld [vmem:[#allocation17_spill] sm:$0xff] }
 0x422   : > { %v2507_v37 = vpack.c.bf16 %v2476_v14, %v2475_v25 }
 0x424   : > { %5289 = vmatprep.mubr.msk.bf16.mxu1 %vm909_vm2, %v2507_v37 }
 0x425   : > { %5290 = vmatmul.mubr.msk.bf16.vlgmr.msra.gmra.mrb[32].mxu1 %vm909_vm2, %v2508_v41 }
 0x434   : > { %v5261_v17 = vpop.f32.mrb[68].mxu0 }
 0x435   : > { %v2410_v26 = vadd.f32 %v5261_v17, %v8231_v19  ;;  %v2293_v51 = vpop.f32.mrb[69].mxu0 }
 0x436   : > { %v2408_v43 = vadd.f32 %v2293_v51, %v8232_v53  ;;  %v5262_v11 = vpop.f32.mrb[70].mxu0 }
 0x437   : > { %v2411_v32 = vadd.f32 %v5262_v11, %v8233_v28  ;;  %v2296_v27 = vpop.f32.mrb[71].mxu0  ;;  %v6814_v39 = vadd.f32 %v6781_v52, %v2410_v26 }
 0x438   : > { %v6810_v22 = vadd.f32 %v6781_v52, %v2408_v43  ;;  %v2409_v60 = vadd.f32 %v2296_v27, %v8234_v63  ;;  %v8249_v27 = vld [vmem:[#allocation18_spill] sm:$0xff] }
 0x439   : > { %v6817_v44 = vadd.f32 %v6781_v52, %v2411_v32  ;;  %v2481_v10 = vmax.f32 %v6814_v39, 0.0 }
 0x43a   : > { %v6820_v6 = vadd.f32 %v6781_v52, %v2409_v60  ;;  %v2479_v34 = vmax.f32 %v6810_v22, 0.0 }
 0x43b   : > { %v2482_v15 = vmax.f32 %v6817_v44, 0.0 }
 0x43c   : > { %v2480_v12 = vmax.f32 %v6820_v6, 0.0 }
 0x43d   : > { %v2510_v30 = vpack.c.bf16 %v2482_v15, %v2481_v10  ;;  %v8250_v15 = vld [vmem:[#allocation19_spill] sm:$0xff]  ;;  %v8251_v10 = vld [vmem:[#allocation20_spill] sm:$0xff] }
 0x43e   : > { %v2509_v47 = vpack.c.bf16 %v2480_v12, %v2479_v34 }
 0x440   : > { %5293 = vmatprep.mubr.msk.bf16.mxu1 %vm909_vm2, %v2509_v47 }
 0x441   : > { %5294 = vmatmul.mubr.msk.bf16.gmra.mrb[36].mxu1 %vm909_vm2, %v2510_v30 }
 0x454   : > { %v5265_v8 = vpop.f32.mrb[72].mxu0 }
 0x455   : > { %v2414_v49 = vadd.f32 %v5265_v8, %v8235_v2  ;;  %v2309_v3 = vpop.f32.mrb[73].mxu0  ;;  %v8253_v2 = vld [vmem:[#allocation21_spill] sm:$0xff] }
 0x456   : > { %v2412_v55 = vadd.f32 %v2309_v3, %v8236_v50  ;;  %v5266_v16 = vpop.f32.mrb[74].mxu0 }
 0x457   : > { %v2415_v5 = vadd.f32 %v5266_v16, %v8237_v4  ;;  %v2312_v62 = vpop.f32.mrb[75].mxu0  ;;  %v6836_v57 = vadd.f32 %v6781_v52, %v2414_v49 }
 0x458   : > { %v6832_v61 = vadd.f32 %v6781_v52, %v2412_v55  ;;  %v2413_v13 = vadd.f32 %v2312_v62, %v8238_v0 }
 0x459   : > { %v6839_v36 = vadd.f32 %v6781_v52, %v2415_v5  ;;  %v2485_v59 = vmax.f32 %v6836_v57, 0.0 }
 0x45a   : > { %v6842_v40 = vadd.f32 %v6781_v52, %v2413_v13  ;;  %v2483_v18 = vmax.f32 %v6832_v61, 0.0 }
 0x45b   : > { %8239 = vst [vmem:[#allocation38_spill] sm:$0xff] %v6839_v36  ;;  %v2486_v54 = vmax.f32 %v6839_v36, 0.0 }
 0x45c   : > { %8240 = vst [vmem:[#allocation40_spill] sm:$0xff] %v6842_v40  ;;  %v2484_v45 = vmax.f32 %v6842_v40, 0.0 }
 0x45d   : > { %v2512_v58 = vpack.c.bf16 %v2486_v54, %v2485_v59 }
 0x45e   : > { %v2511_v23 = vpack.c.bf16 %v2484_v45, %v2483_v18  ;;  %v8257_v18 = vld [vmem:[#allocation22_spill] sm:$0xff] }
 0x460   : > { %5297 = vmatprep.mubr.msk.bf16.mxu1 %vm909_vm2, %v2511_v23  ;;  %v8258_v23 = vld [vmem:[#allocation23_spill] sm:$0xff] }
 0x461   : > { %5298 = vmatmul.mubr.msk.bf16.gmra.mrb[40].mxu1 %vm909_vm2, %v2512_v58 }
 0x474   : > { %v5269_v7 = vpop.f32.mrb[76].mxu0 }
 0x475   : > { %v2418_v1 = vadd.f32 %v5269_v7, %v8241_v29  ;;  %v2325_v33 = vpop.f32.mrb[77].mxu0  ;;  %v8259_v29 = vld [vmem:[#allocation24_spill] sm:$0xff] }
 0x476   : > { %v2416_v42 = vadd.f32 %v2325_v33, %v8242_v38  ;;  %v5270_v35 = vpop.f32.mrb[78].mxu0 }
 0x477   : > { %v2419_v21 = vadd.f32 %v5270_v35, %v8243_v20  ;;  %v2328_v25 = vpop.f32.mrb[79].mxu0  ;;  %v6858_v41 = vadd.f32 %v6781_v52, %v2418_v1 }
 0x478   : > { %v6854_v14 = vadd.f32 %v6781_v52, %v2416_v42  ;;  %v2417_v37 = vadd.f32 %v2328_v25, %v8245_v56  ;;  %v8261_v42 = vld [vmem:[#allocation25_spill] sm:$0xff] }
 0x479   : > { %8246 = vst [vmem:[#allocation42_spill] sm:$0xff] %v6858_v41  ;;  %v6861_v17 = vadd.f32 %v6781_v52, %v2419_v21  ;;  %v2489_v43 = vmax.f32 %v6858_v41, 0.0 }
 0x47a   : > { %8244 = vst [vmem:[#allocation39_spill] sm:$0xff] %v6854_v14  ;;  %v6864_v19 = vadd.f32 %v6781_v52, %v2417_v37  ;;  %v2487_v51 = vmax.f32 %v6854_v14, 0.0 }
 0x47b   : > { %8247 = vst [vmem:[#allocation41_spill] sm:$0xff] %v6861_v17  ;;  %v2490_v26 = vmax.f32 %v6861_v17, 0.0 }
 0x47c   : > { %8248 = vst [vmem:[#allocation35_spill] sm:$0xff] %v6864_v19  ;;  %v2488_v53 = vmax.f32 %v6864_v19, 0.0 }
 0x47d   : > { %v2514_v28 = vpack.c.bf16 %v2490_v26, %v2489_v43 }
 0x47e   : > { %v2513_v11 = vpack.c.bf16 %v2488_v53, %v2487_v51 }
 0x480   : > { %5301 = vmatprep.mubr.msk.bf16.mxu1 %vm909_vm2, %v2513_v11 }
 0x481   : > { %5302 = vmatmul.mubr.msk.bf16.gmra.mrb[44].mxu1 %vm909_vm2, %v2514_v28  ;;  %v8265_v28 = vld [vmem:[#allocation26_spill] sm:$0xff] }
 0x494   : > { %v5273_v32 = vpop.f32.mrb[80].mxu0 }
 0x495   : > { %v2422_v63 = vadd.f32 %v5273_v32, %v8249_v27  ;;  %v2341_v60 = vpop.f32.mrb[81].mxu0 }
 0x496   : > { %v2420_v34 = vadd.f32 %v2341_v60, %v8250_v15  ;;  %v5274_v12 = vpop.f32.mrb[82].mxu0 }
 0x497   : > { %v2423_v47 = vadd.f32 %v5274_v12, %v8251_v10  ;;  %v2344_v30 = vpop.f32.mrb[83].mxu0  ;;  %v6880_v3 = vadd.f32 %v6781_v52, %v2422_v63  ;;  %v8266_v63 = vld [vmem:[#allocation27_spill] sm:$0xff] }
 0x498   : > { %v6876_v8 = vadd.f32 %v6781_v52, %v2420_v34  ;;  %v2421_v49 = vadd.f32 %v2344_v30, %v8253_v2  ;;  %v8267_v34 = vld [vmem:[#allocation28_spill] sm:$0xff]  ;;  %v8269_v30 = vld [vmem:[#allocation29_spill] sm:$0xff] }
 0x499   : > { %8254 = vst [vmem:[#allocation43_spill] sm:$0xff] %v6880_v3  ;;  %v6883_v50 = vadd.f32 %v6781_v52, %v2423_v47  ;;  %v2493_v62 = vmax.f32 %v6880_v3, 0.0 }
 0x49a   : > { %8252 = vst [vmem:[#allocation34_spill] sm:$0xff] %v6876_v8  ;;  %v6886_v55 = vadd.f32 %v6781_v52, %v2421_v49  ;;  %v2491_v4 = vmax.f32 %v6876_v8, 0.0 }
 0x49b   : > { %8255 = vst [vmem:[#allocation44_spill] sm:$0xff] %v6883_v50  ;;  %v2494_v16 = vmax.f32 %v6883_v50, 0.0 }
 0x49c   : > { %8256 = vst [vmem:[#allocation45_spill] sm:$0xff] %v6886_v55  ;;  %v2492_v5 = vmax.f32 %v6886_v55, 0.0 }
 0x49d   : > { %v2516_v13 = vpack.c.bf16 %v2494_v16, %v2493_v62 }
 0x49e   : > { %v2515_v0 = vpack.c.bf16 %v2492_v5, %v2491_v4 }
 0x4a0   : > { %5305 = vmatprep.mubr.msk.bf16.mxu1 %vm909_vm2, %v2515_v0 }
 0x4a1   : > { %5306 = vmatmul.mubr.msk.bf16.gmra.mrb[48].mxu1 %vm909_vm2, %v2516_v13 }
 0x4b4   : > { %v5277_v54 = vpop.f32.mrb[84].mxu0 }
 0x4b5   : > { %v2426_v45 = vadd.f32 %v5277_v54, %v8257_v18  ;;  %v2357_v59 = vpop.f32.mrb[85].mxu0 }
 0x4b6   : > { %v2424_v58 = vadd.f32 %v2357_v59, %v8258_v23  ;;  %v5278_v7 = vpop.f32.mrb[86].mxu0  ;;  %v8273_v59 = vld [vmem:[#allocation30_spill] sm:$0xff] }
 0x4b7   : > { %v2427_v1 = vadd.f32 %v5278_v7, %v8259_v29  ;;  %v2360_v33 = vpop.f32.mrb[87].mxu0  ;;  %v6902_v20 = vadd.f32 %v6781_v52, %v2426_v45  ;;  %v8274_v7 = vld [vmem:[#allocation31_spill] sm:$0xff] }
 0x4b8   : > { %v6898_v38 = vadd.f32 %v6781_v52, %v2424_v58  ;;  %v2425_v35 = vadd.f32 %v2360_v33, %v8261_v42  ;;  %v8275_v33 = vld [vmem:[#allocation32_spill] sm:$0xff] }
 0x4b9   : > { %8262 = vst [vmem:[#allocation46_spill] sm:$0xff] %v6902_v20  ;;  %v6905_v21 = vadd.f32 %v6781_v52, %v2427_v1  ;;  %v2497_v51 = vmax.f32 %v6902_v20, 0.0 }
 0x4ba   : > { %8260 = vst [vmem:[#allocation49_spill] sm:$0xff] %v6898_v38  ;;  %v6908_v25 = vadd.f32 %v6781_v52, %v2425_v35  ;;  %v2495_v37 = vmax.f32 %v6898_v38, 0.0 }
 0x4bb   : > { %8263 = vst [vmem:[#allocation50_spill] sm:$0xff] %v6905_v21  ;;  %v2498_v56 = vmax.f32 %v6905_v21, 0.0 }
 0x4bc   : > { %8264 = vst [vmem:[#allocation37_spill] sm:$0xff] %v6908_v25  ;;  %v2496_v26 = vmax.f32 %v6908_v25, 0.0 }
 0x4bd   : > { %v2518_v43 = vpack.c.bf16 %v2498_v56, %v2497_v51 }
 0x4be   : > { %v2517_v53 = vpack.c.bf16 %v2496_v26, %v2495_v37  ;;  %v8277_v37 = vld [vmem:[#allocation33_spill] sm:$0xff] }
 0x4c0   : > { %5309 = vmatprep.mubr.msk.bf16.mxu1 %vm909_vm2, %v2517_v53 }
 0x4c1   : > { %5310 = vmatmul.mubr.msk.bf16.gmra.mrb[52].mxu1 %vm909_vm2, %v2518_v43 }
 0x4d4   : > { %v5281_v11 = vpop.f32.mrb[88].mxu0 }
 0x4d5   : > { %v2430_v32 = vadd.f32 %v5281_v11, %v8265_v28  ;;  %v2373_v27 = vpop.f32.mrb[89].mxu0 }
 0x4d6   : > { %v2428_v60 = vadd.f32 %v2373_v27, %v8266_v63  ;;  %v5282_v15 = vpop.f32.mrb[90].mxu0  ;;  %v6960_v27 = vld [vmem:[%s8059_s4 + $0x1] ss:$0 sm:$0xff] }
 0x4d7   : > { %v2431_v12 = vadd.f32 %v5282_v15, %v8267_v34  ;;  %v2376_v10 = vpop.f32.mrb[91].mxu0  ;;  %v6924_v49 = vadd.f32 %v6781_v52, %v2430_v32 }
 0x4d8   : > { %v6920_v47 = vadd.f32 %v6781_v52, %v2428_v60  ;;  %v2429_v2 = vadd.f32 %v2376_v10, %v8269_v30 }
 0x4d9   : > { %8270 = vst [vmem:[#allocation47_spill] sm:$0xff] %v6924_v49  ;;  %v6927_v16 = vadd.f32 %v6781_v52, %v2431_v12  ;;  %v2501_v13 = vmax.f32 %v6924_v49, 0.0 }
 0x4da   : > { %8268 = vst [vmem:[#allocation36_spill] sm:$0xff] %v6920_v47  ;;  %v6930_v4 = vadd.f32 %v6781_v52, %v2429_v2  ;;  %v2499_v62 = vmax.f32 %v6920_v47, 0.0 }
 0x4db   : > { %8271 = vst [vmem:[#allocation48_spill] sm:$0xff] %v6927_v16  ;;  %v2502_v5 = vmax.f32 %v6927_v16, 0.0 }
 0x4dc   : > { %8272 = vst [vmem:[#allocation52_spill] sm:$0xff] %v6930_v4  ;;  %v2500_v0 = vmax.f32 %v6930_v4, 0.0 }
 0x4dd   : > { %v2520_v18 = vpack.c.bf16 %v2502_v5, %v2501_v13 }
 0x4de   : > { %v2519_v54 = vpack.c.bf16 %v2500_v0, %v2499_v62 }
 0x4e0   : > { %5313 = vmatprep.mubr.msk.bf16.mxu1 %vm909_vm2, %v2519_v54 }
 0x4e1   : > { %5314 = vmatmul.mubr.msk.bf16.gmra.mrb[56].mxu1 %vm909_vm2, %v2520_v18 }
 0x4ee   : > { %v5285_v45 = vpop.f32.mrb[92].mxu0 }
 0x4ef   : > { %v2434_v23 = vadd.f32 %v5285_v45, %v8273_v59  ;;  %v2389_v58 = vpop.f32.mrb[93].mxu0 }
 0x4f0   : > { %v2432_v29 = vadd.f32 %v2389_v58, %v8274_v7  ;;  %v5286_v1 = vpop.f32.mrb[94].mxu0 }
 0x4f1   : > { %v2435_v42 = vadd.f32 %v5286_v1, %v8275_v33  ;;  %v2392_v35 = vpop.f32.mrb[95].mxu0  ;;  %v6946_v51 = vadd.f32 %v6781_v52, %v2434_v23 }
 0x4f2   : > { %v6942_v56 = vadd.f32 %v6781_v52, %v2432_v29  ;;  %v2433_v26 = vadd.f32 %v2392_v35, %v8277_v37 }
 0x4f3   : > { %8278 = vst [vmem:[#allocation3_spill] sm:$0xff] %v6946_v51  ;;  %v6949_v53 = vadd.f32 %v6781_v52, %v2435_v42  ;;  %v2505_v63 = vmax.f32 %v6946_v51, 0.0 }
 0x4f4   : > { %8276 = vst [vmem:[#allocation51_spill] sm:$0xff] %v6942_v56  ;;  %v6952_v43 = vadd.f32 %v6781_v52, %v2433_v26  ;;  %v2503_v28 = vmax.f32 %v6942_v56, 0.0 }
 0x4f5   : > { %8279 = vst [vmem:[#allocation2_spill] sm:$0xff] %v6949_v53  ;;  %v2506_v11 = vmax.f32 %v6949_v53, 0.0 }
 0x4f6   : > { %8280 = vst [vmem:[#allocation4_spill] sm:$0xff] %v6952_v43  ;;  %v2504_v32 = vmax.f32 %v6952_v43, 0.0 }
 0x4f7   : > { %v2522_v34 = vpack.c.bf16 %v2506_v11, %v2505_v63  ;;  %v5470_v63 = vld [vmem:[%s8060_s5 + $0x1c] sm:$0xff]  }
 0x4f8   : > { %v2521_v60 = vpack.c.bf16 %v2504_v32, %v2503_v28  ;;  %v5291_v15 = vpop.f32.mrb[32].mxu1  ;;  %v5469_v32 = vld [vmem:[%s8060_s5 + $0x14] sm:$0xff]  }
 0x4f9   : > { %v2631_v12 = vadd.f32 %v5291_v15, %v6960_v27  ;;  %v2622_v52 = vpop.f32.mrb[33].mxu1  ;;  %5321 = vmatprep.subr.bf16.mxu0 %v5469_v32 }
 0x4fa   : > { %v2623_v10 = vadd.f32 %v6960_v27, %v2622_v52  ;;  %v5292_v30 = vpop.f32.mrb[34].mxu1  ;;  %5317 = vmatprep.mubr.msk.bf16.mxu1 %vm909_vm2, %v2521_v60  ;;  %5322 = vmatpush3.bf16.msra.mxu0 %v5469_v32 }
 0x4fb   : > { %v2751_v2 = vmax.f32 %v2631_v12, 0.0  ;;  %v2634_v5 = vadd.f32 %v5292_v30, %v6960_v27  ;;  %v2625_v62 = vpop.f32.mrb[35].mxu1  ;;  %5318 = vmatmul.mubr.msk.bf16.gmra.mrb[60].mxu1 %vm909_vm2, %v2522_v34  ;;  %5323 = vmatprep.subr.bf16.mxu0 %v5470_v63  ;;  %v5471_v34 = vld [vmem:[%s8060_s5 + $0x24] ss:$0 sps:$4 sm:$0xff]  }
 0x4fc   : > { %v2749_v0 = vmax.f32 %v2623_v10, 0.0  ;;  %v2626_v13 = vadd.f32 %v6960_v27, %v2625_v62  ;;  %v3598_v12 = vsel %vm649_vm0, %v5471_v34, 0 }
 0x4fd   : > { %v6969_v54 = vmax.f32 %v2634_v5, 0.0  ;;  %3255 = vrot.lane.b32.xlu0 %v2751_v2, %s5519_s21  ;;  %v2905_v45 = vrot.slane %v2751_v2, 1  ;;  %v2814_v23 = vrot.slane %v2751_v2, 7 }
 0x4fe   : > { %v2750_v18 = vmax.f32 %v2626_v13, 0.0  ;;  %2970 = vrot.lane.b32.xlu1 %v2749_v0, %s5518_s28  ;;  %v2811_v7 = vrot.slane %v2749_v0, 7  ;;  %v2902_v29 = vrot.slane %v2749_v0, 1  ;;  %5324 = vmatpush3.bf16.msra.mxu0 %v5470_v63 }
 0x4ff   : > { %v2907_v59 = vrot.slane %v6969_v54, 1  ;;  %v2816_v58 = vrot.slane %v6969_v54, 7  ;;  %5430 = vmatprep.subr.msk.bf16.mxu0 %vm649_vm0, %v5471_v34 }
 0x500   : > { %v2903_v1 = vrot.slane %v2750_v18, 1  ;;  %v2812_v33 = vrot.slane %v2750_v18, 7  ;;  %v7002_v60 = vsel %vm1181_vm3, 0.0, %v2811_v7  ;;  %v2964_v15 = vsel %vm1273_vm4, 0.0, %v2902_v29 }
 0x501   : > { %2974 = vrot.lane.b32.xlu0 %v2751_v2, %s5518_s28  ;;  %v2908_v42 = vsel %vm1273_vm4, %v2905_v45, %v2907_v59  ;;  %v6978_v35 = vsel %vm1181_vm3, %v2814_v23, %v2816_v58 }
 0x502   : > { %3257 = vrot.lane.b32.xlu1 %v6969_v54, %s5519_s21  ;;  %v2904_v37 = vsel %vm1273_vm4, %v2902_v29, %v2903_v1  ;;  %v2906_v26 = vsel %vm1273_vm4, %v2903_v1, %v2905_v45  ;;  %v6985_v11 = vsel %vm1181_vm3, %v2812_v33, %v2814_v23  ;;  %v6988_v28 = vsel %vm1181_vm3, %v2811_v7, %v2812_v33 }
 0x503   : > { %5326 = vmatpush3.bf16.msra.mxu0 %v3598_v12 }
 0x505   : > { %3251 = vrot.lane.b32.xlu0 %v2749_v0, %s5519_s21 }
 0x506   : > { %2976 = vrot.lane.b32.xlu1 %v6969_v54, %s5518_s28 }
 0x509   : > { %2972 = vrot.lane.b32.xlu0 %v2750_v18, %s5518_s28 }
 0x50a   : > { %3253 = vrot.lane.b32.xlu1 %v2750_v18, %s5519_s21 }
 0x50d   : > { %3155 = vrot.lane.b32.xlu0 %v7002_v60, %s5520_s24 }
 0x50e   : > { %3061 = vrot.lane.b32.xlu1 %v2964_v15, %s5517_s27 }
 0x511   : > { %3067 = vrot.lane.b32.xlu0 %v2908_v42, %s5517_s27 }
 0x512   : > { %3161 = vrot.lane.b32.xlu1 %v6978_v35, %s5520_s24 }
 0x514   : > { %v5295_v52 = vpop.f32.mrb[36].mxu1 }
 0x515   : > { %v2647_v10 = vadd.f32 %v5295_v52, %v6960_v27  ;;  %3063 = vrot.lane.b32.xlu0 %v2904_v37, %s5517_s27  ;;  %v2638_v30 = vpop.f32.mrb[37].mxu1 }
 0x516   : > { %v2639_v2 = vadd.f32 %v6960_v27, %v2638_v30  ;;  %3065 = vrot.lane.b32.xlu1 %v2906_v26, %s5517_s27  ;;  %v5296_v5 = vpop.f32.mrb[38].mxu1 }
 0x517   : > { %v2755_v62 = vmax.f32 %v2647_v10, 0.0  ;;  %v2650_v0 = vadd.f32 %v5296_v5, %v6960_v27  ;;  %v2641_v13 = vpop.f32.mrb[39].mxu1 }
 0x518   : > { %v2753_v54 = vmax.f32 %v2639_v2, 0.0  ;;  %v2642_v18 = vadd.f32 %v6960_v27, %v2641_v13 }
 0x519   : > { %v2756_v45 = vmax.f32 %v2650_v0, 0.0  ;;  %3159 = vrot.lane.b32.xlu0 %v6985_v11, %s5520_s24  ;;  %v2913_v1 = vrot.slane %v2755_v62, 1  ;;  %v2822_v42 = vrot.slane %v2755_v62, 7 }
 0x51a   : > { %v2754_v23 = vmax.f32 %v2642_v18, 0.0  ;;  %3157 = vrot.lane.b32.xlu1 %v6988_v28, %s5520_s24  ;;  %v2818_v7 = vrot.slane %v2753_v54, 7  ;;  %v2909_v29 = vrot.slane %v2753_v54, 1 }
 0x51b   : > { %v2915_v33 = vrot.slane %v2756_v45, 1  ;;  %v2824_v37 = vrot.slane %v2756_v45, 7 }
 0x51c   : > { %v7027_v26 = vsel %vm1181_vm3, %v2816_v58, %v2818_v7  ;;  %v2910_v32 = vsel %vm1273_vm4, %v2907_v59, %v2909_v29  ;;  %v2911_v63 = vrot.slane %v2754_v23, 1  ;;  %v2820_v15 = vrot.slane %v2754_v23, 7 }
 0x51d   : > { %3263 = vrot.lane.b32.xlu0 %v2755_v62, %s5519_s21  ;;  %v2916_v34 = vsel %vm1273_vm4, %v2913_v1, %v2915_v33  ;;  %v7033_v12 = vsel %vm1181_vm3, %v2822_v42, %v2824_v37 }
 0x51e   : > { %3265 = vrot.lane.b32.xlu1 %v2756_v45, %s5519_s21  ;;  %v2912_v52 = vsel %vm1273_vm4, %v2909_v29, %v2911_v63  ;;  %v2914_v10 = vsel %vm1273_vm4, %v2911_v63, %v2913_v1  ;;  %v7039_v58 = vsel %vm1181_vm3, %v2820_v15, %v2822_v42  ;;  %v7042_v59 = vsel %vm1181_vm3, %v2818_v7, %v2820_v15 }
 0x521   : > { %2982 = vrot.lane.b32.xlu0 %v2755_v62, %s5518_s28 }
 0x522   : > { %2984 = vrot.lane.b32.xlu1 %v2756_v45, %s5518_s28 }
 0x525   : > { %2978 = vrot.lane.b32.xlu0 %v2753_v54, %s5518_s28 }
 0x526   : > { %2980 = vrot.lane.b32.xlu1 %v2754_v23, %s5518_s28 }
 0x529   : > { %3259 = vrot.lane.b32.xlu0 %v2753_v54, %s5519_s21 }
 0x52a   : > { %3261 = vrot.lane.b32.xlu1 %v2754_v23, %s5519_s21 }
 0x52d   : > { %3163 = vrot.lane.b32.xlu0 %v7027_v26, %s5520_s24 }
 0x52e   : > { %3069 = vrot.lane.b32.xlu1 %v2910_v32, %s5517_s27 }
 0x531   : > { %3075 = vrot.lane.b32.xlu0 %v2916_v34, %s5517_s27 }
 0x532   : > { %3169 = vrot.lane.b32.xlu1 %v7033_v12, %s5520_s24 }
 0x534   : > { %v5299_v30 = vpop.f32.mrb[40].mxu1 }
 0x535   : > { %v2663_v2 = vadd.f32 %v5299_v30, %v6960_v27  ;;  %3071 = vrot.lane.b32.xlu0 %v2912_v52, %s5517_s27  ;;  %v2654_v5 = vpop.f32.mrb[41].mxu1 }
 0x536   : > { %v2655_v62 = vadd.f32 %v6960_v27, %v2654_v5  ;;  %3073 = vrot.lane.b32.xlu1 %v2914_v10, %s5517_s27  ;;  %v5300_v0 = vpop.f32.mrb[42].mxu1 }
 0x537   : > { %v2759_v13 = vmax.f32 %v2663_v2, 0.0  ;;  %v2666_v54 = vadd.f32 %v5300_v0, %v6960_v27  ;;  %v2657_v18 = vpop.f32.mrb[43].mxu1 }
 0x538   : > { %v2757_v45 = vmax.f32 %v2655_v62, 0.0  ;;  %v2658_v23 = vadd.f32 %v6960_v27, %v2657_v18 }
 0x539   : > { %v2760_v7 = vmax.f32 %v2666_v54, 0.0  ;;  %3167 = vrot.lane.b32.xlu0 %v7039_v58, %s5520_s24  ;;  %v2921_v32 = vrot.slane %v2759_v13, 1  ;;  %v2830_v15 = vrot.slane %v2759_v13, 7 }
 0x53a   : > { %v2758_v29 = vmax.f32 %v2658_v23, 0.0  ;;  %3165 = vrot.lane.b32.xlu1 %v7042_v59, %s5520_s24  ;;  %v2826_v1 = vrot.slane %v2757_v45, 7  ;;  %v2917_v42 = vrot.slane %v2757_v45, 1 }
 0x53b   : > { %v2923_v63 = vrot.slane %v2760_v7, 1  ;;  %v2832_v34 = vrot.slane %v2760_v7, 7 }
 0x53c   : > { %v7067_v52 = vsel %vm1181_vm3, %v2824_v37, %v2826_v1  ;;  %v2918_v10 = vsel %vm1273_vm4, %v2915_v33, %v2917_v42  ;;  %v2919_v30 = vrot.slane %v2758_v29, 1  ;;  %v2828_v2 = vrot.slane %v2758_v29, 7 }
 0x53d   : > { %3271 = vrot.lane.b32.xlu0 %v2759_v13, %s5519_s21  ;;  %v2924_v5 = vsel %vm1273_vm4, %v2921_v32, %v2923_v63  ;;  %v7073_v62 = vsel %vm1181_vm3, %v2830_v15, %v2832_v34 }
 0x53e   : > { %3273 = vrot.lane.b32.xlu1 %v2760_v7, %s5519_s21  ;;  %v2920_v0 = vsel %vm1273_vm4, %v2917_v42, %v2919_v30  ;;  %v2922_v54 = vsel %vm1273_vm4, %v2919_v30, %v2921_v32  ;;  %v7079_v37 = vsel %vm1181_vm3, %v2828_v2, %v2830_v15  ;;  %v7082_v33 = vsel %vm1181_vm3, %v2826_v1, %v2828_v2 }
 0x541   : > { %2990 = vrot.lane.b32.xlu0 %v2759_v13, %s5518_s28 }
 0x542   : > { %2992 = vrot.lane.b32.xlu1 %v2760_v7, %s5518_s28 }
 0x545   : > { %2986 = vrot.lane.b32.xlu0 %v2757_v45, %s5518_s28 }
 0x546   : > { %2988 = vrot.lane.b32.xlu1 %v2758_v29, %s5518_s28 }
 0x549   : > { %3267 = vrot.lane.b32.xlu0 %v2757_v45, %s5519_s21 }
 0x54a   : > { %3269 = vrot.lane.b32.xlu1 %v2758_v29, %s5519_s21 }
 0x54d   : > { %3171 = vrot.lane.b32.xlu0 %v7067_v52, %s5520_s24 }
 0x54e   : > { %3077 = vrot.lane.b32.xlu1 %v2918_v10, %s5517_s27 }
 0x551   : > { %3083 = vrot.lane.b32.xlu0 %v2924_v5, %s5517_s27 }
 0x552   : > { %3177 = vrot.lane.b32.xlu1 %v7073_v62, %s5520_s24 }
 0x554   : > { %v5303_v13 = vpop.f32.mrb[44].mxu1 }
 0x555   : > { %v2679_v18 = vadd.f32 %v5303_v13, %v6960_v27  ;;  %3079 = vrot.lane.b32.xlu0 %v2920_v0, %s5517_s27  ;;  %v2670_v23 = vpop.f32.mrb[45].mxu1 }
 0x556   : > { %v2671_v45 = vadd.f32 %v6960_v27, %v2670_v23  ;;  %3081 = vrot.lane.b32.xlu1 %v2922_v54, %s5517_s27  ;;  %v5304_v7 = vpop.f32.mrb[46].mxu1 }
 0x557   : > { %v2763_v29 = vmax.f32 %v2679_v18, 0.0  ;;  %v2682_v1 = vadd.f32 %v5304_v7, %v6960_v27  ;;  %v2673_v42 = vpop.f32.mrb[47].mxu1 }
 0x558   : > { %v2761_v32 = vmax.f32 %v2671_v45, 0.0  ;;  %v2674_v15 = vadd.f32 %v6960_v27, %v2673_v42 }
 0x559   : > { %v7102_v10 = vmax.f32 %v2682_v1, 0.0  ;;  %3175 = vrot.lane.b32.xlu0 %v7079_v37, %s5520_s24  ;;  %v2929_v0 = vrot.slane %v2763_v29, 1  ;;  %v2838_v13 = vrot.slane %v2763_v29, 7 }
 0x55a   : > { %v2762_v30 = vmax.f32 %v2674_v15, 0.0  ;;  %3173 = vrot.lane.b32.xlu1 %v7082_v33, %s5520_s24  ;;  %v2834_v2 = vrot.slane %v2761_v32, 7  ;;  %v2925_v5 = vrot.slane %v2761_v32, 1 }
 0x55b   : > { %v2931_v54 = vrot.slane %v7102_v10, 1  ;;  %v2840_v18 = vrot.slane %v7102_v10, 7 }
 0x55c   : > { %v7111_v23 = vsel %vm1181_vm3, %v2832_v34, %v2834_v2  ;;  %v2926_v45 = vsel %vm1273_vm4, %v2923_v63, %v2925_v5  ;;  %v2927_v7 = vrot.slane %v2762_v30, 1  ;;  %v2836_v1 = vrot.slane %v2762_v30, 7 }
 0x55d   : > { %3279 = vrot.lane.b32.xlu0 %v2763_v29, %s5519_s21  ;;  %v2932_v42 = vsel %vm1273_vm4, %v2929_v0, %v2931_v54  ;;  %v7117_v15 = vsel %vm1181_vm3, %v2838_v13, %v2840_v18 }
 0x55e   : > { %3281 = vrot.lane.b32.xlu1 %v7102_v10, %s5519_s21  ;;  %v2928_v43 = vsel %vm1273_vm4, %v2925_v5, %v2927_v7  ;;  %v2930_v53 = vsel %vm1273_vm4, %v2927_v7, %v2929_v0  ;;  %v7124_v34 = vsel %vm1181_vm3, %v2836_v1, %v2838_v13  ;;  %v7127_v63 = vsel %vm1181_vm3, %v2834_v2, %v2836_v1 }
 0x561   : > { %2998 = vrot.lane.b32.xlu0 %v2763_v29, %s5518_s28 }
 0x562   : > { %3000 = vrot.lane.b32.xlu1 %v7102_v10, %s5518_s28 }
 0x565   : > { %2994 = vrot.lane.b32.xlu0 %v2761_v32, %s5518_s28 }
 0x566   : > { %2996 = vrot.lane.b32.xlu1 %v2762_v30, %s5518_s28 }
 0x569   : > { %3275 = vrot.lane.b32.xlu0 %v2761_v32, %s5519_s21 }
 0x56a   : > { %3277 = vrot.lane.b32.xlu1 %v2762_v30, %s5519_s21 }
 0x56d   : > { %3179 = vrot.lane.b32.xlu0 %v7111_v23, %s5520_s24 }
 0x56e   : > { %3085 = vrot.lane.b32.xlu1 %v2926_v45, %s5517_s27 }
 0x56f   : > { %v7139_v2 = vpop.permute.xlu0 %3255 }
 0x570   : > { %v2971_v5 = vpop.permute.xlu1 %2970 }
 0x571   : > { %3091 = vrot.lane.b32.xlu0 %v2932_v42, %s5517_s27 }
 0x572   : > { %3185 = vrot.lane.b32.xlu1 %v7117_v15, %s5520_s24 }
 0x573   : > { %v7144_v29 = vpop.permute.xlu0 %2974 }
 0x574   : > { %v7146_v10 = vpop.permute.xlu1 %3257  ;;  %v5307_v32 = vpop.f32.mrb[48].mxu1 }
 0x575   : > { %v2695_v30 = vadd.f32 %v5307_v32, %v6960_v27  ;;  %3087 = vrot.lane.b32.xlu0 %v2928_v43, %s5517_s27  ;;  %v2686_v0 = vpop.f32.mrb[49].mxu1 }
 0x576   : > { %v2687_v13 = vadd.f32 %v6960_v27, %v2686_v0  ;;  %3089 = vrot.lane.b32.xlu1 %v2930_v53, %s5517_s27  ;;  %v5308_v45 = vpop.f32.mrb[50].mxu1 }
 0x577   : > { %v2767_v7 = vmax.f32 %v2695_v30, 0.0  ;;  %v2698_v1 = vadd.f32 %v5308_v45, %v6960_v27  ;;  %v3252_v42 = vpop.permute.xlu0 %3251  ;;  %v2689_v56 = vpop.f32.mrb[51].mxu1 }
 0x578   : > { %v2765_v51 = vmax.f32 %v2687_v13, 0.0  ;;  %v2690_v4 = vadd.f32 %v6960_v27, %v2689_v56  ;;  %v7154_v16 = vpop.permute.xlu1 %2976 }
 0x579   : > { %v7156_v47 = vmax.f32 %v2698_v1, 0.0  ;;  %3183 = vrot.lane.b32.xlu0 %v7124_v34, %s5520_s24  ;;  %v2937_v0 = vrot.slane %v2767_v7, 1  ;;  %v2846_v13 = vrot.slane %v2767_v7, 7 }
 0x57a   : > { %v2766_v43 = vmax.f32 %v2690_v4, 0.0  ;;  %3181 = vrot.lane.b32.xlu1 %v7127_v63, %s5520_s24  ;;  %v2842_v53 = vrot.slane %v2765_v51, 7  ;;  %v2933_v32 = vrot.slane %v2765_v51, 1 }
 0x57b   : > { %v2973_v30 = vpop.permute.xlu0 %2972  ;;  %v8142_v45 = vrot.slane %v7156_v47, 1  ;;  %v8143_v56 = vrot.slane %v7156_v47, 7 }
 0x57c   : > { %v3254_v49 = vpop.permute.xlu1 %3253  ;;  %v7165_v1 = vsel %vm1181_vm3, %v2840_v18, %v2842_v53  ;;  %v2934_v25 = vsel %vm1273_vm4, %v2931_v54, %v2933_v32  ;;  %v2935_v21 = vrot.slane %v2766_v43, 1  ;;  %v2844_v20 = vrot.slane %v2766_v43, 7 }
 0x57d   : > { %3287 = vrot.lane.b32.xlu0 %v2767_v7, %s5519_s21  ;;  %v2940_v4 = vsel %vm1273_vm4, %v2937_v0, %v8142_v45  ;;  %v7175_v38 = vsel %vm1181_vm3, %v2846_v13, %v8143_v56 }
 0x57e   : > { %3289 = vrot.lane.b32.xlu1 %v7156_v47, %s5519_s21  ;;  %v2936_v18 = vsel %vm1273_vm4, %v2933_v32, %v2935_v21  ;;  %v2938_v54 = vsel %vm1273_vm4, %v2935_v21, %v2937_v0  ;;  %v7182_v50 = vsel %vm1181_vm3, %v2844_v20, %v2846_v13  ;;  %v7185_v8 = vsel %vm1181_vm3, %v2842_v53, %v2844_v20 }
 0x57f   : > { %v3156_v55 = vpop.permute.xlu0 %3155  ;;  %v3348_v32 = vsel %vm1726_vm5, %v6988_v28, %v2973_v30  ;;  %v3347_v53 = vsel %vm1726_vm5, %v7002_v60, %v2971_v5  ;;  %v8281_v30 = vld [vmem:[#allocation53_spill] sm:$0xff]  ;;  %v5476_v5 = vld [vmem:[%s8068_s13 + $0x10] sm:$0xff] }
 0x580   : > { %v3062_v45 = vpop.permute.xlu1 %3061  ;;  %v3408_v20 = vsel %vm600_vm1, %v6305_v48, %v3156_v55 }
 0x581   : > { %3006 = vrot.lane.b32.xlu0 %v2767_v7, %s5518_s28  ;;  %v3440_v28 = vsel %vm1822_vm6, %v3408_v20, %v3252_v42  ;;  %v3377_v14 = vsel %vm909_vm2, %v8281_v30, %v3062_v45  ;;  %v5479_v45 = vld [vmem:[%s8068_s13 + $0x18] sm:$0xff] }
 0x582   : > { %3008 = vrot.lane.b32.xlu1 %v7156_v47, %s5518_s28 }
 0x583   : > { %v7190_v56 = vpop.permute.xlu0 %3067 }
 0x584   : > { %v3162_v3 = vpop.permute.xlu1 %3161 }
 0x585   : > { %3002 = vrot.lane.b32.xlu0 %v2765_v51, %s5518_s28 }
 0x586   : > { %3004 = vrot.lane.b32.xlu1 %v2766_v43, %s5518_s28 }
 0x587   : > { %v3064_v21 = vpop.permute.xlu0 %3063 }
 0x588   : > { %v3066_v0 = vpop.permute.xlu1 %3065  ;;  %v3378_v19 = vsel %vm909_vm2, %v3347_v53, %v3064_v21 }
 0x589   : > { %v3379_v7 = vsel %vm909_vm2, %v3348_v32, %v3066_v0  ;;  %3283 = vrot.lane.b32.xlu0 %v2765_v51, %s5519_s21 }
 0x58a   : > { %v3411_v13 = vsel %vm600_vm1, %v3379_v7, %v3162_v3  ;;  %3285 = vrot.lane.b32.xlu1 %v2766_v43, %s5519_s21 }
 0x58b   : > { %v3160_v17 = vpop.permute.xlu0 %3159  ;;  %v3443_v51 = vsel %vm1822_vm6, %v3411_v13, %v7146_v10 }
 0x58c   : > { %v3410_v48 = vsel %vm600_vm1, %v3378_v19, %v3160_v17  ;;  %v3158_v55 = vpop.permute.xlu1 %3157  ;;  %v5477_v17 = vld [vmem:[%s8068_s13] sm:$0xff]  ;;  %v3475_v21 = vmul.f32 %v5479_v45, %v3443_v51 }
 0x58d   : > { %v3442_v60 = vsel %vm1822_vm6, %v3410_v48, %v7139_v2  ;;  %v3409_v3 = vsel %vm600_vm1, %v3377_v14, %v3158_v55  ;;  %3187 = vrot.lane.b32.xlu0 %v7165_v1, %s5520_s24  ;;  %v3472_v19 = vmul.f32 %v5477_v17, %v3440_v28  ;;  %v5478_v14 = vld [vmem:[%s8068_s13 + $0x8] sm:$0xff] }
 0x58e   : > { %v3474_v42 = vmul.f32 %v5476_v5, %v3442_v60  ;;  %v3441_v43 = vsel %vm1822_vm6, %v3409_v3, %v3254_v49  ;;  %3093 = vrot.lane.b32.xlu1 %v2934_v25, %s5517_s27 }
 0x58f   : > { %v3473_v2 = vmul.f32 %v5478_v14, %v3441_v43  ;;  %v7227_v10 = vpop.permute.xlu0 %3263 }
 0x590   : > { %v7232_v49 = vpop.permute.xlu1 %3265  ;;  %v3505_v32 = vpack.c.bf16 %v3475_v21, %v3474_v42 }
 0x591   : > { %v3504_v25 = vpack.c.bf16 %v3473_v2, %v3472_v19  ;;  %3099 = vrot.lane.b32.xlu0 %v2940_v4, %s5517_s27 }
 0x592   : > { %3193 = vrot.lane.b32.xlu1 %v7175_v38, %s5520_s24 }
 0x593   : > { %5327 = vmatprep.mubr.msk.bf16.mxu0 %vm1930_vm7, %v3504_v25  ;;  %v7238_v0 = vpop.permute.xlu0 %2982  ;;  %v8282_v25 = vrot.slane %v7156_v47, 7 }
 0x594   : > { %5328 = vmatmul.mubr.msk.bf16.vlgmr.msra.gmra.mrb[96].mxu0 %vm1930_vm7, %v3505_v32  ;;  %v7241_v20 = vpop.permute.xlu1 %2984  ;;  %v5311_v7 = vpop.f32.mrb[52].mxu1 }
 0x595   : > { %v2711_v53 = vadd.f32 %v5311_v7, %v6960_v27  ;;  %3095 = vrot.lane.b32.xlu0 %v2936_v18, %s5517_s27  ;;  %v2702_v13 = vpop.f32.mrb[53].mxu1  ;;  %v8283_v7 = vrot.slane %v7156_v47, 1 }
 0x596   : > { %v2703_v4 = vadd.f32 %v6960_v27, %v2702_v13  ;;  %3097 = vrot.lane.b32.xlu1 %v2938_v54, %s5517_s27  ;;  %v5312_v28 = vpop.f32.mrb[54].mxu1 }
 0x597   : > { %v2771_v30 = vmax.f32 %v2711_v53, 0.0  ;;  %v2714_v48 = vadd.f32 %v5312_v28, %v6960_v27  ;;  %v2979_v55 = vpop.permute.xlu0 %2978  ;;  %v2705_v51 = vpop.f32.mrb[55].mxu1 }
 0x598   : > { %v2769_v60 = vmax.f32 %v2703_v4, 0.0  ;;  %v2706_v3 = vadd.f32 %v6960_v27, %v2705_v51  ;;  %v2981_v5 = vpop.permute.xlu1 %2980  ;;  %v3351_v40 = vsel %vm1726_vm5, %v7027_v26, %v2979_v55 }
 0x599   : > { %v7249_v42 = vmax.f32 %v2714_v48, 0.0  ;;  %3191 = vrot.lane.b32.xlu0 %v7182_v50, %s5520_s24  ;;  %v2945_v19 = vrot.slane %v2771_v30, 1  ;;  %v2854_v2 = vrot.slane %v2771_v30, 7 }
 0x59a   : > { %v2770_v18 = vmax.f32 %v2706_v3, 0.0  ;;  %3189 = vrot.lane.b32.xlu1 %v7185_v8, %s5520_s24  ;;  %v2850_v54 = vrot.slane %v2769_v60, 7  ;;  %v2941_v43 = vrot.slane %v2769_v60, 1 }
 0x59b   : > { %v3260_v17 = vpop.permute.xlu0 %3259  ;;  %v8148_v14 = vrot.slane %v7249_v42, 1  ;;  %v8149_v45 = vrot.slane %v7249_v42, 7 }
 0x59c   : > { %v3262_v21 = vpop.permute.xlu1 %3261  ;;  %v7260_v32 = vsel %vm1181_vm3, %v8282_v25, %v2850_v54  ;;  %v2942_v53 = vsel %vm1273_vm4, %v8283_v7, %v2941_v43  ;;  %v2943_v13 = vrot.slane %v2770_v18, 1  ;;  %v2852_v4 = vrot.slane %v2770_v18, 7 }
 0x59d   : > { %3295 = vrot.lane.b32.xlu0 %v2771_v30, %s5519_s21  ;;  %v2948_v28 = vsel %vm1273_vm4, %v2945_v19, %v8148_v14  ;;  %v7272_v48 = vsel %vm1181_vm3, %v2854_v2, %v8149_v45 }
 0x59e   : > { %3297 = vrot.lane.b32.xlu1 %v7249_v42, %s5519_s21  ;;  %v2944_v47 = vsel %vm1273_vm4, %v2941_v43, %v2943_v13  ;;  %v2946_v51 = vsel %vm1273_vm4, %v2943_v13, %v2945_v19  ;;  %v7279_v3 = vsel %vm1181_vm3, %v2852_v4, %v2854_v2  ;;  %v7282_v25 = vsel %vm1181_vm3, %v2850_v54, %v2852_v4 }
 0x59f   : > { %v3164_v7 = vpop.permute.xlu0 %3163  ;;  %v3349_v43 = vsel %vm1726_vm5, %v6985_v11, %v7144_v29  ;;  %v3350_v11 = vsel %vm1726_vm5, %v6978_v35, %v7154_v16 }
 0x5a0   : > { %v3070_v14 = vpop.permute.xlu1 %3069  ;;  %v3380_v19 = vsel %vm909_vm2, %v3349_v43, %v7190_v56 }
 0x5a1   : > { %3014 = vrot.lane.b32.xlu0 %v2771_v30, %s5518_s28  ;;  %v3352_v30 = vsel %vm1726_vm5, %v7042_v59, %v2981_v5  ;;  %v3412_v13 = vsel %vm600_vm1, %v3380_v19, %v3164_v7  ;;  %v3381_v5 = vsel %vm909_vm2, %v3350_v11, %v3070_v14  ;;  %v5483_v14 = vld [vmem:[%s8068_s13 + $0x38] sm:$0xff] }
 0x5a2   : > { %3016 = vrot.lane.b32.xlu1 %v7249_v42, %s5518_s28  ;;  %v3444_v56 = vsel %vm1822_vm6, %v3412_v13, %v3260_v17 }
 0x5a3   : > { %v7287_v45 = vpop.permute.xlu0 %3075 }
 0x5a4   : > { %v3170_v41 = vpop.permute.xlu1 %3169 }
 0x5a5   : > { %3010 = vrot.lane.b32.xlu0 %v2769_v60, %s5518_s28 }
 0x5a6   : > { %3012 = vrot.lane.b32.xlu1 %v2770_v18, %s5518_s28 }
 0x5a7   : > { %v3072_v54 = vpop.permute.xlu0 %3071 }
 0x5a8   : > { %v3074_v2 = vpop.permute.xlu1 %3073  ;;  %v3382_v59 = vsel %vm909_vm2, %v3351_v40, %v3072_v54  ;;  %v5480_v40 = vld [vmem:[%s8068_s13 + $0x30] sm:$0xff] }
 0x5a9   : > { %v3383_v4 = vsel %vm909_vm2, %v3352_v30, %v3074_v2  ;;  %3291 = vrot.lane.b32.xlu0 %v2769_v60, %s5519_s21 }
 0x5aa   : > { %v3415_v36 = vsel %vm600_vm1, %v3383_v4, %v3170_v41  ;;  %3293 = vrot.lane.b32.xlu1 %v2770_v18, %s5519_s21 }
 0x5ab   : > { %v3168_v29 = vpop.permute.xlu0 %3167  ;;  %v3447_v26 = vsel %vm1822_vm6, %v3415_v36, %v7232_v49  ;;  %v5481_v36 = vld [vmem:[%s8068_s13 + $0x20] sm:$0xff] }
 0x5ac   : > { %v3414_v60 = vsel %vm600_vm1, %v3382_v59, %v3168_v29  ;;  %v3166_v7 = vpop.permute.xlu1 %3165  ;;  %v3476_v49 = vmul.f32 %v5481_v36, %v3444_v56  ;;  %v3479_v43 = vmul.f32 %v5483_v14, %v3447_v26 }
 0x5ad   : > { %v3446_v41 = vsel %vm1822_vm6, %v3414_v60, %v7227_v10  ;;  %v3413_v55 = vsel %vm600_vm1, %v3381_v5, %v3166_v7  ;;  %3195 = vrot.lane.b32.xlu0 %v7260_v32, %s5520_s24  ;;  %v5482_v10 = vld [vmem:[%s8068_s13 + $0x28] sm:$0xff] }
 0x5ae   : > { %v3478_v16 = vmul.f32 %v5480_v40, %v3446_v41  ;;  %v3445_v35 = vsel %vm1822_vm6, %v3413_v55, %v3262_v21  ;;  %3101 = vrot.lane.b32.xlu1 %v2942_v53, %s5517_s27 }
 0x5af   : > { %v3477_v18 = vmul.f32 %v5482_v10, %v3445_v35  ;;  %v7330_v17 = vpop.permute.xlu0 %3271 }
 0x5b0   : > { %v7335_v21 = vpop.permute.xlu1 %3273  ;;  %v3507_v54 = vpack.c.bf16 %v3479_v43, %v3478_v16  ;;  %v8285_v43 = vrot.slane %v7249_v42, 1 }
 0x5b1   : > { %v3506_v53 = vpack.c.bf16 %v3477_v18, %v3476_v49  ;;  %3107 = vrot.lane.b32.xlu0 %v2948_v28, %s5517_s27  ;;  %v8284_v18 = vrot.slane %v7249_v42, 7 }
 0x5b2   : > { %3201 = vrot.lane.b32.xlu1 %v7272_v48, %s5520_s24 }
 0x5b3   : > { %5331 = vmatprep.mubr.msk.bf16.mxu0 %vm1930_vm7, %v3506_v53  ;;  %v7341_v19 = vpop.permute.xlu0 %2990 }
 0x5b4   : > { %5332 = vmatmul.mubr.msk.bf16.gmra.mrb[100].mxu0 %vm1930_vm7, %v3507_v54  ;;  %v7344_v30 = vpop.permute.xlu1 %2992  ;;  %v5315_v2 = vpop.f32.mrb[56].mxu1 }
 0x5b5   : > { %v2727_v13 = vadd.f32 %v5315_v2, %v6960_v27  ;;  %3103 = vrot.lane.b32.xlu0 %v2944_v47, %s5517_s27  ;;  %v2718_v4 = vpop.f32.mrb[57].mxu1 }
 0x5b6   : > { %v2719_v28 = vadd.f32 %v6960_v27, %v2718_v4  ;;  %3105 = vrot.lane.b32.xlu1 %v2946_v51, %s5517_s27  ;;  %v5316_v11 = vpop.f32.mrb[58].mxu1 }
 0x5b7   : > { %v2775_v59 = vmax.f32 %v2727_v13, 0.0  ;;  %v2730_v29 = vadd.f32 %v5316_v11, %v6960_v27  ;;  %v2987_v56 = vpop.permute.xlu0 %2986  ;;  %v2721_v5 = vpop.f32.mrb[59].mxu1 }
 0x5b8   : > { %v2773_v60 = vmax.f32 %v2719_v28, 0.0  ;;  %v2722_v7 = vadd.f32 %v6960_v27, %v2721_v5  ;;  %v2989_v26 = vpop.permute.xlu1 %2988 }
 0x5b9   : > { %v7352_v41 = vmax.f32 %v2730_v29, 0.0  ;;  %3199 = vrot.lane.b32.xlu0 %v7279_v3, %s5520_s24  ;;  %v2953_v16 = vrot.slane %v2775_v59, 1  ;;  %v2862_v36 = vrot.slane %v2775_v59, 7 }
 0x5ba   : > { %v2774_v47 = vmax.f32 %v2722_v7, 0.0  ;;  %3197 = vrot.lane.b32.xlu1 %v7282_v25, %s5520_s24  ;;  %v2858_v51 = vrot.slane %v2773_v60, 7  ;;  %v2949_v55 = vrot.slane %v2773_v60, 1 }
 0x5bb   : > { %v3268_v40 = vpop.permute.xlu0 %3267  ;;  %v8153_v35 = vrot.slane %v7352_v41, 1  ;;  %v8154_v49 = vrot.slane %v7352_v41, 7 }
 0x5bc   : > { %v3270_v10 = vpop.permute.xlu1 %3269  ;;  %v7363_v14 = vsel %vm1181_vm3, %v8284_v18, %v2858_v51  ;;  %v2950_v53 = vsel %vm1273_vm4, %v8285_v43, %v2949_v55  ;;  %v2951_v54 = vrot.slane %v2774_v47, 1  ;;  %v2860_v2 = vrot.slane %v2774_v47, 7 }
 0x5bd   : > { %3303 = vrot.lane.b32.xlu0 %v2775_v59, %s5519_s21  ;;  %v2956_v13 = vsel %vm1273_vm4, %v2953_v16, %v8153_v35  ;;  %v7375_v4 = vsel %vm1181_vm3, %v2862_v36, %v8154_v49  ;;  %v3355_v35 = vsel %vm1726_vm5, %v7067_v52, %v2987_v56 }
 0x5be   : > { %3305 = vrot.lane.b32.xlu1 %v7352_v41, %s5519_s21  ;;  %v7380_v42 = vsel %vm1273_vm4, %v2949_v55, %v2951_v54  ;;  %v7383_v28 = vsel %vm1273_vm4, %v2951_v54, %v2953_v16  ;;  %v7386_v11 = vsel %vm1181_vm3, %v2860_v2, %v2862_v36  ;;  %v7389_v29 = vsel %vm1181_vm3, %v2858_v51, %v2860_v2 }
 0x5bf   : > { %v3172_v5 = vpop.permute.xlu0 %3171  ;;  %v3353_v16 = vsel %vm1726_vm5, %v7039_v58, %v7238_v0  ;;  %v3354_v58 = vsel %vm1726_vm5, %v7033_v12, %v7241_v20  ;;  %v5484_v12 = vld [vmem:[%s8068_s13 + $0x50] sm:$0xff] }
 0x5c0   : > { %v3078_v7 = vpop.permute.xlu1 %3077  ;;  %v3384_v36 = vsel %vm909_vm2, %v3353_v16, %v7287_v45 }
 0x5c1   : > { %3022 = vrot.lane.b32.xlu0 %v2775_v59, %s5518_s28  ;;  %v3356_v59 = vsel %vm1726_vm5, %v7082_v33, %v2989_v26  ;;  %v3416_v54 = vsel %vm600_vm1, %v3384_v36, %v3172_v5  ;;  %v3385_v26 = vsel %vm909_vm2, %v3354_v58, %v3078_v7 }
 0x5c2   : > { %3024 = vrot.lane.b32.xlu1 %v7352_v41, %s5518_s28  ;;  %v3448_v45 = vsel %vm1822_vm6, %v3416_v54, %v3268_v40 }
 0x5c3   : > { %v7394_v18 = vpop.permute.xlu0 %3083 }
 0x5c4   : > { %v3178_v55 = vpop.permute.xlu1 %3177 }
 0x5c5   : > { %3018 = vrot.lane.b32.xlu0 %v2773_v60, %s5518_s28 }
 0x5c6   : > { %3020 = vrot.lane.b32.xlu1 %v2774_v47, %s5518_s28 }
 0x5c7   : > { %v3080_v51 = vpop.permute.xlu0 %3079 }
 0x5c8   : > { %v3082_v43 = vpop.permute.xlu1 %3081  ;;  %v3386_v33 = vsel %vm909_vm2, %v3355_v35, %v3080_v51 }
 0x5c9   : > { %v3387_v2 = vsel %vm909_vm2, %v3356_v59, %v3082_v43  ;;  %3299 = vrot.lane.b32.xlu0 %v2773_v60, %s5519_s21 }
 0x5ca   : > { %v3419_v49 = vsel %vm600_vm1, %v3387_v2, %v3178_v55  ;;  %3301 = vrot.lane.b32.xlu1 %v2774_v47, %s5519_s21 }
 0x5cb   : > { %v3176_v0 = vpop.permute.xlu0 %3175  ;;  %v3451_v52 = vsel %vm1822_vm6, %v3419_v49, %v7335_v21  ;;  %v5485_v21 = vld [vmem:[%s8068_s13 + $0x40] sm:$0xff]  ;;  %v5486_v49 = vld [vmem:[%s8068_s13 + $0x48] sm:$0xff] }
 0x5cc   : > { %v3418_v60 = vsel %vm600_vm1, %v3386_v33, %v3176_v0  ;;  %v3174_v5 = vpop.permute.xlu1 %3173 }
 0x5cd   : > { %v3450_v56 = vsel %vm1822_vm6, %v3418_v60, %v7330_v17  ;;  %v3417_v47 = vsel %vm600_vm1, %v3385_v26, %v3174_v5  ;;  %3203 = vrot.lane.b32.xlu0 %v7363_v14, %s5520_s24  ;;  %v3480_v17 = vmul.f32 %v5485_v21, %v3448_v45  ;;  %v8287_v21 = vrot.slane %v7352_v41, 1 }
 0x5ce   : > { %v3482_v20 = vmul.f32 %v5484_v12, %v3450_v56  ;;  %v3449_v40 = vsel %vm1822_vm6, %v3417_v47, %v3270_v10  ;;  %3109 = vrot.lane.b32.xlu1 %v2950_v53, %s5517_s27  ;;  %v5319_v35 = vpop.f32.mrb[60].mxu1  ;;  %v5487_v10 = vld [vmem:[%s8068_s13 + $0x58] sm:$0xff] }
 0x5cf   : > { %v3481_v7 = vmul.f32 %v5486_v49, %v3449_v40  ;;  %v2743_v55 = vadd.f32 %v5319_v35, %v6960_v27  ;;  %v7438_v16 = vpop.permute.xlu0 %3279  ;;  %v2734_v51 = vpop.f32.mrb[61].mxu1  ;;  %v3483_v53 = vmul.f32 %v5487_v10, %v3451_v52  ;;  %v8286_v40 = vrot.slane %v7352_v41, 7 }
 0x5d0   : > { %v2735_v36 = vadd.f32 %v6960_v27, %v2734_v51  ;;  %v7444_v59 = vpop.permute.xlu1 %3281  ;;  %v5320_v43 = vpop.f32.mrb[62].mxu1 }
 0x5d1   : > { %v3508_v54 = vpack.c.bf16 %v3481_v7, %v3480_v17  ;;  %v7446_v2 = vmax.f32 %v2743_v55, 0.0  ;;  %v7449_v58 = vadd.f32 %v5320_v43, %v6960_v27  ;;  %3115 = vrot.lane.b32.xlu0 %v2956_v13, %s5517_s27  ;;  %v2737_v33 = vpop.f32.mrb[63].mxu1  ;;  %v3509_v0 = vpack.c.bf16 %v3483_v53, %v3482_v20 }
 0x5d2   : > { %v2777_v45 = vmax.f32 %v2735_v36, 0.0  ;;  %v2738_v26 = vadd.f32 %v6960_v27, %v2737_v33  ;;  %3209 = vrot.lane.b32.xlu1 %v7375_v4, %s5520_s24 }
 0x5d3   : > { %v2780_v60 = vmax.f32 %v7449_v58, 0.0  ;;  %5335 = vmatprep.mubr.msk.bf16.mxu0 %vm1930_vm7, %v3508_v54  ;;  %v7457_v5 = vpop.permute.xlu0 %2998  ;;  %v2961_v12 = vrot.slane %v7446_v2, 1  ;;  %v2966_v27 = vrot.slane %v7446_v2, 7 }
 0x5d4   : > { %v2778_v52 = vmax.f32 %v2738_v26, 0.0  ;;  %5336 = vmatmul.mubr.msk.bf16.gmra.mrb[104].mxu0 %vm1930_vm7, %v3509_v0  ;;  %v7460_v56 = vpop.permute.xlu1 %3000  ;;  %v2866_v13 = vrot.slane %v2777_v45, 7  ;;  %v2957_v47 = vrot.slane %v2777_v45, 1 }
 0x5d5   : > { %v2968_v20 = vrot.slane %v2780_v60, 7  ;;  %3111 = vrot.lane.b32.xlu0 %v7380_v42, %s5517_s27 }
 0x5d6   : > { %3113 = vrot.lane.b32.xlu1 %v7383_v28, %s5517_s27  ;;  %v7473_v35 = vsel %vm1181_vm3, %v8286_v40, %v2866_v13  ;;  %v2958_v17 = vsel %vm1273_vm4, %v8287_v21, %v2957_v47  ;;  %v2959_v49 = vrot.slane %v2778_v52, 1  ;;  %v2868_v7 = vrot.slane %v2778_v52, 7 }
 0x5d7   : > { %v2995_v55 = vpop.permute.xlu0 %2994  ;;  %v2969_v51 = vsel %vm1181_vm3, %v2966_v27, %v2968_v20 }
 0x5d8   : > { %v2997_v10 = vpop.permute.xlu1 %2996  ;;  %v2960_v42 = vsel %vm1273_vm4, %v2957_v47, %v2959_v49  ;;  %v2967_v53 = vsel %vm1181_vm3, %v2868_v7, %v2966_v27  ;;  %v2962_v28 = vsel %vm1273_vm4, %v2959_v49, %v2961_v12  ;;  %v7485_v36 = vsel %vm1181_vm3, %v2866_v13, %v2868_v7 }
 0x5d9   : > { %3207 = vrot.lane.b32.xlu0 %v7386_v11, %s5520_s24  ;;  %v3357_v13 = vsel %vm1726_vm5, %v7079_v37, %v7341_v19  ;;  %v3359_v40 = vsel %vm1726_vm5, %v7111_v23, %v2995_v55  ;;  %v3358_v37 = vsel %vm1726_vm5, %v7073_v62, %v7344_v30  ;;  %v5488_v62 = vld [vmem:[%s8068_s13 + $0x70] sm:$0xff] }
 0x5da   : > { %3205 = vrot.lane.b32.xlu1 %v7389_v29, %s5520_s24  ;;  %v3388_v12 = vsel %vm909_vm2, %v3357_v13, %v7394_v18 }
 0x5db   : > { %v3276_v41 = vpop.permute.xlu0 %3275 }
 0x5dc   : > { %v3278_v43 = vpop.permute.xlu1 %3277 }
 0x5dd   : > { %3026 = vrot.lane.b32.xlu0 %v2777_v45, %s5518_s28 }
 0x5de   : > { %3028 = vrot.lane.b32.xlu1 %v2778_v52, %s5518_s28  ;;  %s5003_s28 = sshll.u32 %s8311_s30, 9 }
 0x5df   : > { %v3180_v54 = vpop.permute.xlu0 %3179  ;;  %s7918_s19 = scalar_lea.vmem %s8069_s14, %s5003_s28 }
 0x5e0   : > { %v3086_v33 = vpop.permute.xlu1 %3085 }
 0x5e1   : > { %3307 = vrot.lane.b32.xlu0 %v2777_v45, %s5519_s21  ;;  %v3360_v45 = vsel %vm1726_vm5, %v7127_v63, %v2997_v10 }
 0x5e2   : > { %3309 = vrot.lane.b32.xlu1 %v2778_v52, %s5519_s21  ;;  %v3420_v52 = vsel %vm600_vm1, %v3388_v12, %v3180_v54 }
 0x5e3   : > { %v3092_v0 = vpop.permute.xlu0 %3091  ;;  %v3452_v18 = vsel %vm1822_vm6, %v3420_v52, %v3276_v41 }
 0x5e4   : > { %v3186_v26 = vpop.permute.xlu1 %3185 }
 0x5e5   : > { %3211 = vrot.lane.b32.xlu0 %v7473_v35, %s5520_s24 }
 0x5e6   : > { %3117 = vrot.lane.b32.xlu1 %v2958_v17, %s5517_s27  ;;  %v3389_v17 = vsel %vm909_vm2, %v3358_v37, %v3086_v33 }
 0x5e7   : > { %v3088_v47 = vpop.permute.xlu0 %3087 }
 0x5e8   : > { %v3090_v27 = vpop.permute.xlu1 %3089  ;;  %v3390_v63 = vsel %vm909_vm2, %v3359_v40, %v3088_v47 }
 0x5e9   : > { %v3391_v20 = vsel %vm909_vm2, %v3360_v45, %v3090_v27  ;;  %3119 = vrot.lane.b32.xlu0 %v2960_v42, %s5517_s27 }
 0x5ea   : > { %v3423_v21 = vsel %vm600_vm1, %v3391_v20, %v3186_v26  ;;  %3217 = vrot.lane.b32.xlu1 %v2969_v51, %s5520_s24 }
 0x5eb   : > { %v3184_v19 = vpop.permute.xlu0 %3183  ;;  %v3455_v23 = vsel %vm1822_vm6, %v3423_v21, %v7444_v59  ;;  %v4945_v59 = vld [vmem:[%s8062_s7 + $0x4] sm:$0xf] }
 0x5ec   : > { %v3422_v49 = vsel %vm600_vm1, %v3390_v63, %v3184_v19  ;;  %v3182_v7 = vpop.permute.xlu1 %3181  ;;  %5431 = vmatprep.subr.msk.bf16.mxu1 %vm649_vm0, %v4945_v59  ;;  %v3361_v19 = vsel %vm1726_vm5, %v7124_v34, %v7457_v5  ;;  %v3362_v34 = vsel %vm1726_vm5, %v7117_v15, %v7460_v56  ;;  %v5492_v15 = vld [vmem:[%s8068_s13 + $0x90] sm:$0xff] }
 0x5ed   : > { %v3454_v55 = vsel %vm1822_vm6, %v3422_v49, %v7438_v16  ;;  %v3421_v51 = vsel %vm600_vm1, %v3389_v17, %v3182_v7  ;;  %3215 = vrot.lane.b32.xlu0 %v2967_v53, %s5520_s24  ;;  %v5489_v16 = vld [vmem:[%s8068_s13 + $0x60] sm:$0xff]  ;;  %v5490_v53 = vld [vmem:[%s8068_s13 + $0x68] sm:$0xff]  ;;  %v3392_v17 = vsel %vm909_vm2, %v3361_v19, %v3092_v0 }
 0x5ee   : > { %v3486_v30 = vmul.f32 %v5488_v62, %v3454_v55  ;;  %v3453_v10 = vsel %vm1822_vm6, %v3421_v51, %v3278_v43  ;;  %3121 = vrot.lane.b32.xlu1 %v2962_v28, %s5517_s27  ;;  %v3484_v42 = vmul.f32 %v5489_v16, %v3452_v18  ;;  %v3860_v43 = vsel %vm649_vm0, %v4945_v59, 0  ;;  %v5491_v28 = vld [vmem:[%s8068_s13 + $0x78] sm:$0xff] }
 0x5ef   : > { %v3485_v41 = vmul.f32 %v5490_v53, %v3453_v10  ;;  %v3288_v54 = vpop.permute.xlu0 %3287  ;;  %v3487_v33 = vmul.f32 %v5491_v28, %v3455_v23  ;;  %5360 = vmatpush3.bf16.msra.mxu1 %v3860_v43  ;;  %v5495_v28 = vld [vmem:[%s8068_s13 + $0x98] sm:$0xff] }
 0x5f0   : > { %v3290_v26 = vpop.permute.xlu1 %3289 }
 0x5f1   : > { %v3510_v13 = vpack.c.bf16 %v3485_v41, %v3484_v42  ;;  %3311 = vrot.lane.b32.xlu0 %v7446_v2, %s5519_s21  ;;  %v3511_v47 = vpack.c.bf16 %v3487_v33, %v3486_v30  ;;  %v5493_v42 = vld [vmem:[%s8068_s13 + $0x80] sm:$0xff]  ;;  %v5494_v41 = vld [vmem:[%s8068_s13 + $0x88] sm:$0xff] }
 0x5f2   : > { %3213 = vrot.lane.b32.xlu1 %v7485_v36, %s5520_s24 }
 0x5f3   : > { %5339 = vmatprep.mubr.msk.bf16.mxu0 %vm1930_vm7, %v3510_v13  ;;  %v3007_v12 = vpop.permute.xlu0 %3006 }
 0x5f4   : > { %5340 = vmatmul.mubr.msk.bf16.gmra.mrb[108].mxu0 %vm1930_vm7, %v3511_v47  ;;  %v7548_v45 = vpop.permute.xlu1 %3008 }
 0x5f6   : > { %3313 = vrot.lane.b32.xlu1 %v2780_v60, %s5519_s21 }
 0x5f7   : > { %v3003_v27 = vpop.permute.xlu0 %3002 }
 0x5f8   : > { %v3005_v52 = vpop.permute.xlu1 %3004  ;;  %v3363_v23 = vsel %vm1726_vm5, %v7165_v1, %v3003_v27 }
 0x5f9   : > { %v3364_v49 = vsel %vm1726_vm5, %v7185_v8, %v3005_v52 }
 0x5fb   : > { %v3284_v20 = vpop.permute.xlu0 %3283 }
 0x5fc   : > { %v3286_v40 = vpop.permute.xlu1 %3285 }
 0x5ff   : > { %v3188_v2 = vpop.permute.xlu0 %3187 }
 0x600   : > { %v3094_v21 = vpop.permute.xlu1 %3093  ;;  %v3424_v60 = vsel %vm600_vm1, %v3392_v17, %v3188_v2 }
 0x601   : > { %v3456_v51 = vsel %vm1822_vm6, %v3424_v60, %v3284_v20  ;;  %v3393_v8 = vsel %vm909_vm2, %v3362_v34, %v3094_v21 }
 0x602   : > { %v3488_v53 = vmul.f32 %v5493_v42, %v3456_v51 }
 0x603   : > { %v3100_v37 = vpop.permute.xlu0 %3099 }
 0x604   : > { %v3194_v63 = vpop.permute.xlu1 %3193 }
 0x607   : > { %v3096_v18 = vpop.permute.xlu0 %3095 }
 0x608   : > { %v3098_v58 = vpop.permute.xlu1 %3097  ;;  %v3394_v5 = vsel %vm909_vm2, %v3363_v23, %v3096_v18 }
 0x609   : > { %v3395_v7 = vsel %vm909_vm2, %v3364_v49, %v3098_v58  ;;  %v3365_v49 = vsel %vm1726_vm5, %v7182_v50, %v3007_v12  ;;  %v3366_v50 = vsel %vm1726_vm5, %v7175_v38, %v7548_v45  ;;  %v5496_v38 = vld [vmem:[%s8068_s13 + $0xb0] sm:$0xff] }
 0x60a   : > { %v3427_v55 = vsel %vm600_vm1, %v3395_v7, %v3194_v63  ;;  %v3396_v60 = vsel %vm909_vm2, %v3365_v49, %v3100_v37 }
 0x60b   : > { %v3192_v0 = vpop.permute.xlu0 %3191  ;;  %v3459_v10 = vsel %vm1822_vm6, %v3427_v55, %v3290_v26 }
 0x60c   : > { %v3426_v62 = vsel %vm600_vm1, %v3394_v5, %v3192_v0  ;;  %v3190_v30 = vpop.permute.xlu1 %3189  ;;  %v3491_v33 = vmul.f32 %v5495_v28, %v3459_v10 }
 0x60d   : > { %v3458_v1 = vsel %vm1822_vm6, %v3426_v62, %v3288_v54  ;;  %v3425_v59 = vsel %vm600_vm1, %v3393_v8, %v3190_v30 }
 0x60e   : > { %v3490_v56 = vmul.f32 %v5492_v15, %v3458_v1  ;;  %v3457_v16 = vsel %vm1822_vm6, %v3425_v59, %v3286_v40  ;;  %v5497_v59 = vld [vmem:[%s8068_s13 + $0xa0] sm:$0xff] }
 0x60f   : > { %v3489_v43 = vmul.f32 %v5494_v41, %v3457_v16  ;;  %v3296_v54 = vpop.permute.xlu0 %3295 }
 0x610   : > { %v3298_v26 = vpop.permute.xlu1 %3297  ;;  %v3513_v47 = vpack.c.bf16 %v3491_v33, %v3490_v56  ;;  %v5498_v56 = vld [vmem:[%s8068_s13 + $0xa8] sm:$0xff] }
 0x611   : > { %v3512_v13 = vpack.c.bf16 %v3489_v43, %v3488_v53  ;;  %v5499_v53 = vld [vmem:[%s8068_s13 + $0xb8] sm:$0xff] }
 0x613   : > { %5343 = vmatprep.mubr.msk.bf16.mxu0 %vm1930_vm7, %v3512_v13  ;;  %v3015_v27 = vpop.permute.xlu0 %3014 }
 0x614   : > { %5344 = vmatmul.mubr.msk.bf16.gmra.mrb[112].mxu0 %vm1930_vm7, %v3513_v47  ;;  %v7589_v52 = vpop.permute.xlu1 %3016 }
 0x617   : > { %v3011_v20 = vpop.permute.xlu0 %3010 }
 0x618   : > { %v3013_v40 = vpop.permute.xlu1 %3012  ;;  %v3367_v5 = vsel %vm1726_vm5, %v7260_v32, %v3011_v20 }
 0x619   : > { %v3368_v7 = vsel %vm1726_vm5, %v7282_v25, %v3013_v40 }
 0x61b   : > { %v3292_v2 = vpop.permute.xlu0 %3291 }
 0x61c   : > { %v3294_v21 = vpop.permute.xlu1 %3293 }
 0x61f   : > { %v3196_v63 = vpop.permute.xlu0 %3195 }
 0x620   : > { %v3102_v19 = vpop.permute.xlu1 %3101  ;;  %v3428_v55 = vsel %vm600_vm1, %v3396_v60, %v3196_v63 }
 0x621   : > { %v3460_v51 = vsel %vm1822_vm6, %v3428_v55, %v3292_v2  ;;  %v3397_v25 = vsel %vm909_vm2, %v3366_v50, %v3102_v19 }
 0x622   : > { %v3492_v15 = vmul.f32 %v5497_v59, %v3460_v51 }
 0x623   : > { %v3108_v18 = vpop.permute.xlu0 %3107 }
 0x624   : > { %v3202_v17 = vpop.permute.xlu1 %3201 }
 0x627   : > { %v3104_v58 = vpop.permute.xlu0 %3103 }
 0x628   : > { %v3106_v23 = vpop.permute.xlu1 %3105  ;;  %v3398_v12 = vsel %vm909_vm2, %v3367_v5, %v3104_v58 }
 0x629   : > { %v3399_v34 = vsel %vm909_vm2, %v3368_v7, %v3106_v23 }
 0x62a   : > { %v3431_v0 = vsel %vm600_vm1, %v3399_v34, %v3202_v17  ;;  %v3369_v17 = vsel %vm1726_vm5, %v7279_v3, %v3015_v27  ;;  %v3370_v3 = vsel %vm1726_vm5, %v7272_v48, %v7589_v52  ;;  %v5500_v48 = vld [vmem:[%s8068_s13 + $0xd0] sm:$0xff] }
 0x62b   : > { %v3200_v37 = vpop.permute.xlu0 %3199  ;;  %v3463_v30 = vsel %vm1822_vm6, %v3431_v0, %v3298_v26  ;;  %v3400_v58 = vsel %vm909_vm2, %v3369_v17, %v3108_v18 }
 0x62c   : > { %v3430_v8 = vsel %vm600_vm1, %v3398_v12, %v3200_v37  ;;  %v3198_v62 = vpop.permute.xlu1 %3197  ;;  %v3495_v41 = vmul.f32 %v5499_v53, %v3463_v30  ;;  %v5502_v30 = vld [vmem:[%s8068_s13 + $0xc8] sm:$0xff] }
 0x62d   : > { %v3462_v32 = vsel %vm1822_vm6, %v3430_v8, %v3296_v54  ;;  %v3429_v10 = vsel %vm600_vm1, %v3397_v25, %v3198_v62  ;;  %v5501_v8 = vld [vmem:[%s8068_s13 + $0xc0] sm:$0xff] }
 0x62e   : > { %v3494_v45 = vmul.f32 %v5496_v38, %v3462_v32  ;;  %v3461_v1 = vsel %vm1822_vm6, %v3429_v10, %v3294_v21  ;;  %v5503_v38 = vld [vmem:[%s8068_s13 + $0xd8] sm:$0xff] }
 0x62f   : > { %v3493_v16 = vmul.f32 %v5498_v56, %v3461_v1  ;;  %v3304_v42 = vpop.permute.xlu0 %3303 }
 0x630   : > { %v3306_v43 = vpop.permute.xlu1 %3305  ;;  %v3515_v28 = vpack.c.bf16 %v3495_v41, %v3494_v45 }
 0x631   : > { %v3514_v54 = vpack.c.bf16 %v3493_v16, %v3492_v15 }
 0x633   : > { %5347 = vmatprep.mubr.msk.bf16.mxu0 %vm1930_vm7, %v3514_v54  ;;  %v3023_v33 = vpop.permute.xlu0 %3022 }
 0x634   : > { %5348 = vmatmul.mubr.msk.bf16.gmra.mrb[116].mxu0 %vm1930_vm7, %v3515_v28  ;;  %v3025_v26 = vpop.permute.xlu1 %3024  ;;  %v3373_v54 = vsel %vm1726_vm5, %v7386_v11, %v3023_v33 }
 0x637   : > { %v3019_v13 = vpop.permute.xlu0 %3018 }
 0x638   : > { %v3021_v47 = vpop.permute.xlu1 %3020  ;;  %v3371_v34 = vsel %vm1726_vm5, %v7363_v14, %v3019_v13 }
 0x639   : > { %v3372_v60 = vsel %vm1726_vm5, %v7389_v29, %v3021_v47 }
 0x63b   : > { %v3300_v20 = vpop.permute.xlu0 %3299 }
 0x63c   : > { %v3302_v40 = vpop.permute.xlu1 %3301 }
 0x63f   : > { %v3204_v2 = vpop.permute.xlu0 %3203 }
 0x640   : > { %v3110_v21 = vpop.permute.xlu1 %3109  ;;  %v3432_v23 = vsel %vm600_vm1, %v3400_v58, %v3204_v2 }
 0x641   : > { %v3464_v0 = vsel %vm1822_vm6, %v3432_v23, %v3300_v20  ;;  %v3401_v29 = vsel %vm909_vm2, %v3370_v3, %v3110_v21  ;;  %v5505_v23 = vld [vmem:[%s8068_s13 + $0xe8] sm:$0xff] }
 0x642   : > { %v3496_v62 = vmul.f32 %v5501_v8, %v3464_v0 }
 0x643   : > { %v3116_v63 = vpop.permute.xlu0 %3115 }
 0x644   : > { %v3210_v19 = vpop.permute.xlu1 %3209  ;;  %v3404_v13 = vsel %vm909_vm2, %v3373_v54, %v3116_v63 }
 0x647   : > { %v3112_v49 = vpop.permute.xlu0 %3111 }
 0x648   : > { %v3114_v7 = vpop.permute.xlu1 %3113  ;;  %v3402_v27 = vsel %vm909_vm2, %v3371_v34, %v3112_v49 }
 0x649   : > { %v3403_v55 = vsel %vm909_vm2, %v3372_v60, %v3114_v7 }
 0x64a   : > { %v3435_v5 = vsel %vm600_vm1, %v3403_v55, %v3210_v19 }
 0x64b   : > { %v3208_v18 = vpop.permute.xlu0 %3207  ;;  %v3467_v37 = vsel %vm1822_vm6, %v3435_v5, %v3306_v43 }
 0x64c   : > { %v3434_v50 = vsel %vm600_vm1, %v3402_v27, %v3208_v18  ;;  %v3206_v12 = vpop.permute.xlu1 %3205  ;;  %v3499_v45 = vmul.f32 %v5503_v38, %v3467_v37  ;;  %v5506_v37 = vld [vmem:[%s8068_s13 + $0xf0] sm:$0xff] }
 0x64d   : > { %v3466_v14 = vsel %vm1822_vm6, %v3434_v50, %v3304_v42  ;;  %v3433_v51 = vsel %vm600_vm1, %v3401_v29, %v3206_v12 }
 0x64e   : > { %v3498_v52 = vmul.f32 %v5500_v48, %v3466_v14  ;;  %v3465_v25 = vsel %vm1822_vm6, %v3433_v51, %v3302_v40  ;;  %v3374_v40 = vsel %vm1726_vm5, %v7375_v4, %v3025_v26  ;;  %v7679_v4 = vld [vmem:[%s8061_s6 + $0x1] ss:$0 sm:$0xff]  ;;  %v5507_v51 = vld [vmem:[%s8068_s13 + $0xf8] sm:$0xff] }
 0x64f   : > { %v3497_v32 = vmul.f32 %v5502_v30, %v3465_v25  ;;  %v3027_v10 = vpop.permute.xlu0 %3026  ;;  %v5504_v26 = vld [vmem:[%s8068_s13 + $0xe0] sm:$0xff] }
 0x650   : > { %v3029_v1 = vpop.permute.xlu1 %3028  ;;  %v3517_v15 = vpack.c.bf16 %v3499_v45, %v3498_v52  ;;  %v3375_v2 = vsel %vm1726_vm5, %v7473_v35, %v3027_v10 }
 0x651   : > { %v3516_v59 = vpack.c.bf16 %v3497_v32, %v3496_v62  ;;  %v3376_v21 = vsel %vm1726_vm5, %v7485_v36, %v3029_v1 }
 0x653   : > { %5351 = vmatprep.mubr.msk.bf16.mxu0 %vm1930_vm7, %v3516_v59  ;;  %v3308_v56 = vpop.permute.xlu0 %3307 }
 0x654   : > { %5352 = vmatmul.mubr.msk.bf16.gmra.mrb[120].mxu0 %vm1930_vm7, %v3517_v15  ;;  %v3310_v16 = vpop.permute.xlu1 %3309 }
 0x657   : > { %v3212_v42 = vpop.permute.xlu0 %3211 }
 0x658   : > { %v3118_v53 = vpop.permute.xlu1 %3117  ;;  %v3436_v20 = vsel %vm600_vm1, %v3404_v13, %v3212_v42 }
 0x659   : > { %v3468_v19 = vsel %vm1822_vm6, %v3436_v20, %v3308_v56  ;;  %v3405_v17 = vsel %vm909_vm2, %v3374_v40, %v3118_v53 }
 0x65a   : > { %v3500_v60 = vmul.f32 %v5504_v26, %v3468_v19 }
 0x65b   : > { %v3120_v41 = vpop.permute.xlu0 %3119 }
 0x65c   : > { %v3218_v43 = vpop.permute.xlu1 %3217  ;;  %v3406_v63 = vsel %vm909_vm2, %v3375_v2, %v3120_v41 }
 0x65f   : > { %v3216_v28 = vpop.permute.xlu0 %3215 }
 0x660   : > { %v3122_v47 = vpop.permute.xlu1 %3121  ;;  %v3438_v35 = vsel %vm600_vm1, %v3406_v63, %v3216_v28 }
 0x661   : > { %v3407_v49 = vsel %vm909_vm2, %v3376_v21, %v3122_v47 }
 0x662   : > { %v3439_v18 = vsel %vm600_vm1, %v3407_v49, %v3218_v43 }
 0x663   : > { %v3312_v11 = vpop.permute.xlu0 %3311 }
 0x664   : > { %v3214_v33 = vpop.permute.xlu1 %3213  ;;  %v3470_v7 = vsel %vm1822_vm6, %v3438_v35, %v3312_v11 }
 0x665   : > { %v3437_v58 = vsel %vm600_vm1, %v3405_v17, %v3214_v33  ;;  %v3502_v14 = vmul.f32 %v5506_v37, %v3470_v7 }
 0x666   : > { %v3469_v36 = vsel %vm1822_vm6, %v3437_v58, %v3310_v16 }
 0x667   : > { %v3501_v55 = vmul.f32 %v5505_v23, %v3469_v36  ;;  %v5329_v34 = vpop.f32.mrb[96].mxu0 }
 0x668   : > { %v3643_v5 = vadd.f32 %v5329_v34, %v7679_v4  ;;  %v3634_v3 = vpop.f32.mrb[97].mxu0  ;;  %v3314_v27 = vpop.permute.xlu1 %3313 }
 0x669   : > { %v3518_v0 = vpack.c.bf16 %v3501_v55, %v3500_v60  ;;  %v3635_v29 = vadd.f32 %v7679_v4, %v3634_v3  ;;  %v3471_v50 = vsel %vm1822_vm6, %v3439_v18, %v3314_v27  ;;  %v5330_v12 = vpop.f32.mrb[98].mxu0 }
 0x66a   : > { %v3503_v48 = vmul.f32 %v5507_v51, %v3471_v50  ;;  %v3646_v52 = vadd.f32 %v5330_v12, %v7679_v4  ;;  %v3637_v25 = vpop.f32.mrb[99].mxu0  ;;  %v3763_v62 = vmax.f32 %v3643_v5, 0.0 }
 0x66b   : > { %v3638_v8 = vadd.f32 %v7679_v4, %v3637_v25  ;;  %5355 = vmatprep.mubr.msk.bf16.mxu0 %vm1930_vm7, %v3518_v0  ;;  %v3761_v10 = vmax.f32 %v3635_v29, 0.0 }
 0x66c   : > { %v3519_v30 = vpack.c.bf16 %v3503_v48, %v3502_v14  ;;  %v3764_v32 = vmax.f32 %v3646_v52, 0.0  ;;  %v5472_v14 = vld [vmem:[%s8064_s9] sm:$0xff]  }
 0x66d   : > { %v3762_v38 = vmax.f32 %v3638_v8, 0.0  ;;  %5393 = vmatprep.subr.bf16.mxu0 %v5472_v14 }
 0x66e   : > { %v3794_v45 = vpack.c.bf16 %v3764_v32, %v3763_v62  ;;  %5356 = vmatmul.mubr.msk.bf16.gmra.mrb[124].mxu0 %vm1930_vm7, %v3519_v30 }
 0x66f   : > { %v3793_v1 = vpack.c.bf16 %v3762_v38, %v3761_v10  ;;  %5394 = vmatpush3.bf16.msra.mxu0 %v5472_v14 }
 0x671   : > { %5361 = vmatprep.mubr.msk.bf16.mxu1 %vm1726_vm5, %v3793_v1 }
 0x672   : > { %5362 = vmatmul.mubr.msk.bf16.vlgmr.msra.gmra.mrb[64].mxu1 %vm1726_vm5, %v3794_v45 }
 0x687   : > { %v5333_v59 = vpop.f32.mrb[100].mxu0 }
 0x688   : > { %v3659_v15 = vadd.f32 %v5333_v59, %v7679_v4  ;;  %v3650_v56 = vpop.f32.mrb[101].mxu0 }
 0x689   : > { %v3651_v16 = vadd.f32 %v7679_v4, %v3650_v56  ;;  %v5334_v42 = vpop.f32.mrb[102].mxu0 }
 0x68a   : > { %v3662_v53 = vadd.f32 %v5334_v42, %v7679_v4  ;;  %v3653_v41 = vpop.f32.mrb[103].mxu0  ;;  %v3767_v54 = vmax.f32 %v3659_v15, 0.0 }
 0x68b   : > { %v3654_v43 = vadd.f32 %v7679_v4, %v3653_v41  ;;  %v3765_v13 = vmax.f32 %v3651_v16, 0.0 }
 0x68c   : > { %v3768_v28 = vmax.f32 %v3662_v53, 0.0 }
 0x68d   : > { %v3766_v47 = vmax.f32 %v3654_v43, 0.0 }
 0x68e   : > { %v3796_v20 = vpack.c.bf16 %v3768_v28, %v3767_v54 }
 0x68f   : > { %v3795_v40 = vpack.c.bf16 %v3766_v47, %v3765_v13 }
 0x691   : > { %5365 = vmatprep.mubr.msk.bf16.mxu1 %vm1726_vm5, %v3795_v40 }
 0x692   : > { %5366 = vmatmul.mubr.msk.bf16.gmra.mrb[68].mxu1 %vm1726_vm5, %v3796_v20 }
 0x6a7   : > { %v5337_v2 = vpop.f32.mrb[104].mxu0 }
 0x6a8   : > { %v3675_v21 = vadd.f32 %v5337_v2, %v7679_v4  ;;  %v3666_v19 = vpop.f32.mrb[105].mxu0 }
 0x6a9   : > { %v3667_v17 = vadd.f32 %v7679_v4, %v3666_v19  ;;  %v5338_v11 = vpop.f32.mrb[106].mxu0 }
 0x6aa   : > { %v3678_v33 = vadd.f32 %v5338_v11, %v7679_v4  ;;  %v3669_v63 = vpop.f32.mrb[107].mxu0  ;;  %v3771_v58 = vmax.f32 %v3675_v21, 0.0 }
 0x6ab   : > { %v3670_v49 = vadd.f32 %v7679_v4, %v3669_v63  ;;  %v3769_v36 = vmax.f32 %v3667_v17, 0.0 }
 0x6ac   : > { %v3772_v35 = vmax.f32 %v3678_v33, 0.0 }
 0x6ad   : > { %v3770_v26 = vmax.f32 %v3670_v49, 0.0 }
 0x6ae   : > { %v3798_v60 = vpack.c.bf16 %v3772_v35, %v3771_v58 }
 0x6af   : > { %v3797_v7 = vpack.c.bf16 %v3770_v26, %v3769_v36 }
 0x6b1   : > { %5369 = vmatprep.mubr.msk.bf16.mxu1 %vm1726_vm5, %v3797_v7 }
 0x6b2   : > { %5370 = vmatmul.mubr.msk.bf16.gmra.mrb[72].mxu1 %vm1726_vm5, %v3798_v60 }
 0x6c7   : > { %v5341_v23 = vpop.f32.mrb[108].mxu0 }
 0x6c8   : > { %v3691_v55 = vadd.f32 %v5341_v23, %v7679_v4  ;;  %v3682_v34 = vpop.f32.mrb[109].mxu0 }
 0x6c9   : > { %v3683_v5 = vadd.f32 %v7679_v4, %v3682_v34  ;;  %v5342_v3 = vpop.f32.mrb[110].mxu0 }
 0x6ca   : > { %v3694_v27 = vadd.f32 %v5342_v3, %v7679_v4  ;;  %v3685_v18 = vpop.f32.mrb[111].mxu0  ;;  %v3775_v29 = vmax.f32 %v3691_v55, 0.0 }
 0x6cb   : > { %v3686_v0 = vadd.f32 %v7679_v4, %v3685_v18  ;;  %v3773_v12 = vmax.f32 %v3683_v5, 0.0 }
 0x6cc   : > { %v3776_v50 = vmax.f32 %v3694_v27, 0.0 }
 0x6cd   : > { %v3774_v37 = vmax.f32 %v3686_v0, 0.0 }
 0x6ce   : > { %v3800_v51 = vpack.c.bf16 %v3776_v50, %v3775_v29 }
 0x6cf   : > { %v3799_v48 = vpack.c.bf16 %v3774_v37, %v3773_v12 }
 0x6d1   : > { %5373 = vmatprep.mubr.msk.bf16.mxu1 %vm1726_vm5, %v3799_v48 }
 0x6d2   : > { %5374 = vmatmul.mubr.msk.bf16.gmra.mrb[76].mxu1 %vm1726_vm5, %v3800_v51  ;;  %v7752_v51 = vld [vmem:[%s8063_s8 + $0x1] ss:$0 sm:$0xff] }
 0x6e7   : > { %v5345_v52 = vpop.f32.mrb[112].mxu0 }
 0x6e8   : > { %v3707_v25 = vadd.f32 %v5345_v52, %v7679_v4  ;;  %v3698_v8 = vpop.f32.mrb[113].mxu0 }
 0x6e9   : > { %v3699_v62 = vadd.f32 %v7679_v4, %v3698_v8  ;;  %v5346_v30 = vpop.f32.mrb[114].mxu0 }
 0x6ea   : > { %v3710_v32 = vadd.f32 %v5346_v30, %v7679_v4  ;;  %v3701_v10 = vpop.f32.mrb[115].mxu0  ;;  %v3779_v45 = vmax.f32 %v3707_v25, 0.0 }
 0x6eb   : > { %v3702_v38 = vadd.f32 %v7679_v4, %v3701_v10  ;;  %v3777_v59 = vmax.f32 %v3699_v62, 0.0 }
 0x6ec   : > { %v3780_v1 = vmax.f32 %v3710_v32, 0.0 }
 0x6ed   : > { %v3778_v15 = vmax.f32 %v3702_v38, 0.0 }
 0x6ee   : > { %v3802_v56 = vpack.c.bf16 %v3780_v1, %v3779_v45 }
 0x6ef   : > { %v3801_v16 = vpack.c.bf16 %v3778_v15, %v3777_v59 }
 0x6f1   : > { %5377 = vmatprep.mubr.msk.bf16.mxu1 %vm1726_vm5, %v3801_v16 }
 0x6f2   : > { %5378 = vmatmul.mubr.msk.bf16.gmra.mrb[80].mxu1 %vm1726_vm5, %v3802_v56 }
 0x707   : > { %v5349_v42 = vpop.f32.mrb[116].mxu0 }
 0x708   : > { %v3723_v53 = vadd.f32 %v5349_v42, %v7679_v4  ;;  %v3714_v41 = vpop.f32.mrb[117].mxu0 }
 0x709   : > { %v3715_v43 = vadd.f32 %v7679_v4, %v3714_v41  ;;  %v5350_v54 = vpop.f32.mrb[118].mxu0 }
 0x70a   : > { %v3726_v28 = vadd.f32 %v5350_v54, %v7679_v4  ;;  %v3717_v13 = vpop.f32.mrb[119].mxu0  ;;  %v3783_v20 = vmax.f32 %v3723_v53, 0.0 }
 0x70b   : > { %v3718_v47 = vadd.f32 %v7679_v4, %v3717_v13  ;;  %v3781_v2 = vmax.f32 %v3715_v43, 0.0 }
 0x70c   : > { %v3784_v40 = vmax.f32 %v3726_v28, 0.0 }
 0x70d   : > { %v3782_v21 = vmax.f32 %v3718_v47, 0.0 }
 0x70e   : > { %v3804_v19 = vpack.c.bf16 %v3784_v40, %v3783_v20 }
 0x70f   : > { %v3803_v17 = vpack.c.bf16 %v3782_v21, %v3781_v2 }
 0x711   : > { %5381 = vmatprep.mubr.msk.bf16.mxu1 %vm1726_vm5, %v3803_v17 }
 0x712   : > { %5382 = vmatmul.mubr.msk.bf16.gmra.mrb[84].mxu1 %vm1726_vm5, %v3804_v19 }
 0x727   : > { %v5353_v11 = vpop.f32.mrb[120].mxu0 }
 0x728   : > { %v3739_v33 = vadd.f32 %v5353_v11, %v7679_v4  ;;  %v3730_v63 = vpop.f32.mrb[121].mxu0 }
 0x729   : > { %v3731_v49 = vadd.f32 %v7679_v4, %v3730_v63  ;;  %v5354_v58 = vpop.f32.mrb[122].mxu0 }
 0x72a   : > { %v3742_v35 = vadd.f32 %v5354_v58, %v7679_v4  ;;  %v3733_v36 = vpop.f32.mrb[123].mxu0  ;;  %v3787_v60 = vmax.f32 %v3739_v33, 0.0 }
 0x72b   : > { %v3734_v26 = vadd.f32 %v7679_v4, %v3733_v36  ;;  %v3785_v23 = vmax.f32 %v3731_v49, 0.0 }
 0x72c   : > { %v3788_v7 = vmax.f32 %v3742_v35, 0.0 }
 0x72d   : > { %v3786_v55 = vmax.f32 %v3734_v26, 0.0 }
 0x72e   : > { %v3806_v34 = vpack.c.bf16 %v3788_v7, %v3787_v60  ;;  %v8288_v7 = vld [vmem:[#allocation38_spill] sm:$0xff] }
 0x72f   : > { %v3805_v5 = vpack.c.bf16 %v3786_v55, %v3785_v23 }
 0x731   : > { %5385 = vmatprep.mubr.msk.bf16.mxu1 %vm1726_vm5, %v3805_v5  ;;  %v8289_v5 = vld [vmem:[#allocation40_spill] sm:$0xff] }
 0x732   : > { %5386 = vmatmul.mubr.msk.bf16.gmra.mrb[88].mxu1 %vm1726_vm5, %v3806_v34 }
 0x741   : > { %v5357_v3 = vpop.f32.mrb[124].mxu0 }
 0x742   : > { %v3755_v27 = vadd.f32 %v5357_v3, %v7679_v4  ;;  %v3746_v18 = vpop.f32.mrb[125].mxu0 }
 0x743   : > { %v3747_v0 = vadd.f32 %v7679_v4, %v3746_v18  ;;  %v5358_v29 = vpop.f32.mrb[126].mxu0 }
 0x744   : > { %v3758_v50 = vadd.f32 %v5358_v29, %v7679_v4  ;;  %v3749_v12 = vpop.f32.mrb[127].mxu0  ;;  %v3791_v48 = vmax.f32 %v3755_v27, 0.0 }
 0x745   : > { %v3750_v37 = vadd.f32 %v7679_v4, %v3749_v12  ;;  %v5363_v14 = vpop.f32.mrb[64].mxu1  ;;  %v3789_v62 = vmax.f32 %v3747_v0, 0.0 }
 0x746   : > { %v3792_v52 = vmax.f32 %v3758_v50, 0.0  ;;  %v4025_v25 = vadd.f32 %v5363_v14, %v6792_v46  ;;  %v3896_v8 = vpop.f32.mrb[65].mxu1  ;;  %v8290_v14 = vld [vmem:[#allocation42_spill] sm:$0xff] }
 0x747   : > { %v3790_v30 = vmax.f32 %v3750_v37, 0.0  ;;  %v4023_v32 = vadd.f32 %v3896_v8, %v6788_v31  ;;  %v5364_v10 = vpop.f32.mrb[66].mxu1 }
 0x748   : > { %v3808_v38 = vpack.c.bf16 %v3792_v52, %v3791_v48  ;;  %v4065_v45 = vadd.f32 %v7752_v51, %v4025_v25  ;;  %v4026_v4 = vadd.f32 %v5364_v10, %v6795_v9  ;;  %v3899_v1 = vpop.f32.mrb[67].mxu1  ;;  %v8291_v25 = vld [vmem:[#allocation39_spill] sm:$0xff] }
 0x749   : > { %v3807_v59 = vpack.c.bf16 %v3790_v30, %v3789_v62  ;;  %v4063_v15 = vadd.f32 %v7752_v51, %v4023_v32  ;;  %v4024_v56 = vadd.f32 %v3899_v1, %v6798_v24  ;;  %v8292_v32 = vld [vmem:[#allocation41_spill] sm:$0xff] }
 0x74a   : > { %v4066_v16 = vadd.f32 %v7752_v51, %v4026_v4  ;;  %v4097_v42 = vmax.f32 %v4065_v45, 0.0  ;;  %v8293_v4 = vld [vmem:[#allocation35_spill] sm:$0xff] }
 0x74b   : > { %v4064_v46 = vadd.f32 %v7752_v51, %v4024_v56  ;;  %5389 = vmatprep.mubr.msk.bf16.mxu1 %vm1726_vm5, %v3807_v59  ;;  %v4095_v53 = vmax.f32 %v4063_v15, 0.0  ;;  %v5475_v15 = vld [vmem:[%s8066_s11 + $0x4] ss:$8 sps:$4 sm:$0xff]  }
 0x74c   : > { %v4098_v31 = vmax.f32 %v4066_v16, 0.0  ;;  %5390 = vmatmul.mubr.msk.bf16.gmra.mrb[92].mxu1 %vm1726_vm5, %v3808_v38  ;;  %v5473_v16 = vld [vmem:[%s8066_s11] ss:$8 sps:$4 sm:$0xff]   ;;  %4487 = vmatprep.subr.bf16.mxu1 %v5475_v15 }
 0x74d   : > { %v4096_v41 = vmax.f32 %v4064_v46, 0.0  ;;  %4488 = vmatpush1.bf16.msra.mxu1 %v5473_v16 }
 0x74e   : > { %v4128_v43 = vpack.c.bf16 %v4098_v31, %v4097_v42 }
 0x74f   : > { %v4127_v9 = vpack.c.bf16 %v4096_v41, %v4095_v53 }
 0x751   : > { %5395 = vmatprep.mubr.msk.bf16.mxu0 %vm909_vm2, %v4127_v9 }
 0x752   : > { %5396 = vmatmul.mubr.msk.bf16.vlgmr.msra.gmra.mrb[128].mxu0 %vm909_vm2, %v4128_v43  ;;  %v5521_v43 = vmov 0  }
 0x753   : > { %4519 = vmatprep.mubr.bf16.mxu1 %v5521_v43 }
 0x765   : > { %v5367_v54 = vpop.f32.mrb[68].mxu1 }
 0x766   : > { %v4029_v24 = vadd.f32 %v5367_v54, %v6814_v39  ;;  %v3912_v28 = vpop.f32.mrb[69].mxu1 }
 0x767   : > { %v4027_v13 = vadd.f32 %v3912_v28, %v6810_v22  ;;  %v5368_v47 = vpop.f32.mrb[70].mxu1 }
 0x768   : > { %v4069_v20 = vadd.f32 %v7752_v51, %v4029_v24  ;;  %v4030_v40 = vadd.f32 %v5368_v47, %v6817_v44  ;;  %v3915_v2 = vpop.f32.mrb[71].mxu1  ;;  %v8294_v24 = vld [vmem:[#allocation43_spill] sm:$0xff]  ;;  %v8295_v47 = vld [vmem:[#allocation34_spill] sm:$0xff] }
 0x769   : > { %v4067_v21 = vadd.f32 %v7752_v51, %v4027_v13  ;;  %v4028_v19 = vadd.f32 %v3915_v2, %v6820_v6 }
 0x76a   : > { %v4070_v17 = vadd.f32 %v7752_v51, %v4030_v40  ;;  %v4101_v33 = vmax.f32 %v4069_v20, 0.0 }
 0x76b   : > { %v4068_v11 = vadd.f32 %v7752_v51, %v4028_v19  ;;  %v4099_v39 = vmax.f32 %v4067_v21, 0.0  ;;  %v8296_v21 = vld [vmem:[#allocation44_spill] sm:$0xff] }
 0x76c   : > { %v4102_v63 = vmax.f32 %v4070_v17, 0.0 }
 0x76d   : > { %v4100_v49 = vmax.f32 %v4068_v11, 0.0 }
 0x76e   : > { %v4130_v58 = vpack.c.bf16 %v4102_v63, %v4101_v33  ;;  %v8297_v33 = vld [vmem:[#allocation45_spill] sm:$0xff] }
 0x76f   : > { %v4129_v22 = vpack.c.bf16 %v4100_v49, %v4099_v39 }
 0x771   : > { %5399 = vmatprep.mubr.msk.bf16.mxu0 %vm909_vm2, %v4129_v22 }
 0x772   : > { %5400 = vmatmul.mubr.msk.bf16.gmra.mrb[132].mxu0 %vm909_vm2, %v4130_v58 }
 0x785   : > { %v5371_v44 = vpop.f32.mrb[72].mxu1 }
 0x786   : > { %v4033_v35 = vadd.f32 %v5371_v44, %v6836_v57  ;;  %v3928_v36 = vpop.f32.mrb[73].mxu1 }
 0x787   : > { %v4031_v6 = vadd.f32 %v3928_v36, %v6832_v61  ;;  %v5372_v26 = vpop.f32.mrb[74].mxu1 }
 0x788   : > { %v4073_v60 = vadd.f32 %v7752_v51, %v4033_v35  ;;  %v4034_v23 = vadd.f32 %v5372_v26, %v8288_v7  ;;  %v3931_v55 = vpop.f32.mrb[75].mxu1 }
 0x789   : > { %v4071_v34 = vadd.f32 %v7752_v51, %v4031_v6  ;;  %v4032_v3 = vadd.f32 %v3931_v55, %v8289_v5  ;;  %v8299_v55 = vld [vmem:[#allocation49_spill] sm:$0xff] }
 0x78a   : > { %v4074_v27 = vadd.f32 %v7752_v51, %v4034_v23  ;;  %v4105_v0 = vmax.f32 %v4073_v60, 0.0  ;;  %v8298_v60 = vld [vmem:[#allocation46_spill] sm:$0xff] }
 0x78b   : > { %v4072_v18 = vadd.f32 %v7752_v51, %v4032_v3  ;;  %v4103_v57 = vmax.f32 %v4071_v34, 0.0 }
 0x78c   : > { %v4106_v29 = vmax.f32 %v4074_v27, 0.0  ;;  %v8300_v27 = vld [vmem:[#allocation50_spill] sm:$0xff] }
 0x78d   : > { %v4104_v50 = vmax.f32 %v4072_v18, 0.0 }
 0x78e   : > { %v4132_v12 = vpack.c.bf16 %v4106_v29, %v4105_v0 }
 0x78f   : > { %v4131_v61 = vpack.c.bf16 %v4104_v50, %v4103_v57  ;;  %v8301_v57 = vld [vmem:[#allocation37_spill] sm:$0xff] }
 0x791   : > { %5403 = vmatprep.mubr.msk.bf16.mxu0 %vm909_vm2, %v4131_v61 }
 0x792   : > { %5404 = vmatmul.mubr.msk.bf16.gmra.mrb[136].mxu0 %vm909_vm2, %v4132_v12 }
 0x7a5   : > { %v5375_v37 = vpop.f32.mrb[76].mxu1 }
 0x7a6   : > { %v4037_v48 = vadd.f32 %v5375_v37, %v8290_v14  ;;  %v3944_v52 = vpop.f32.mrb[77].mxu1 }
 0x7a7   : > { %v4035_v8 = vadd.f32 %v3944_v52, %v8291_v25  ;;  %v5376_v62 = vpop.f32.mrb[78].mxu1 }
 0x7a8   : > { %v4077_v30 = vadd.f32 %v7752_v51, %v4037_v48  ;;  %v4038_v10 = vadd.f32 %v5376_v62, %v8292_v32  ;;  %v3947_v38 = vpop.f32.mrb[79].mxu1 }
 0x7a9   : > { %v4075_v45 = vadd.f32 %v7752_v51, %v4035_v8  ;;  %v4036_v1 = vadd.f32 %v3947_v38, %v8293_v4  ;;  %v8303_v38 = vld [vmem:[#allocation36_spill] sm:$0xff] }
 0x7aa   : > { %v4078_v59 = vadd.f32 %v7752_v51, %v4038_v10  ;;  %v4109_v46 = vmax.f32 %v4077_v30, 0.0  ;;  %v8302_v30 = vld [vmem:[#allocation47_spill] sm:$0xff] }
 0x7ab   : > { %v4076_v56 = vadd.f32 %v7752_v51, %v4036_v1  ;;  %v4107_v31 = vmax.f32 %v4075_v45, 0.0 }
 0x7ac   : > { %v4110_v42 = vmax.f32 %v4078_v59, 0.0  ;;  %v8304_v59 = vld [vmem:[#allocation48_spill] sm:$0xff] }
 0x7ad   : > { %v4108_v53 = vmax.f32 %v4076_v56, 0.0 }
 0x7ae   : > { %v4134_v41 = vpack.c.bf16 %v4110_v42, %v4109_v46  ;;  %v8305_v46 = vld [vmem:[#allocation52_spill] sm:$0xff] }
 0x7af   : > { %v4133_v9 = vpack.c.bf16 %v4108_v53, %v4107_v31 }
 0x7b1   : > { %5407 = vmatprep.mubr.msk.bf16.mxu0 %vm909_vm2, %v4133_v9 }
 0x7b2   : > { %5408 = vmatmul.mubr.msk.bf16.gmra.mrb[140].mxu0 %vm909_vm2, %v4134_v41 }
 0x7c5   : > { %v5379_v54 = vpop.f32.mrb[80].mxu1 }
 0x7c6   : > { %v4041_v28 = vadd.f32 %v5379_v54, %v8294_v24  ;;  %v3960_v13 = vpop.f32.mrb[81].mxu1 }
 0x7c7   : > { %v4039_v20 = vadd.f32 %v3960_v13, %v8295_v47  ;;  %v5380_v40 = vpop.f32.mrb[82].mxu1 }
 0x7c8   : > { %v4081_v2 = vadd.f32 %v7752_v51, %v4041_v28  ;;  %v4042_v19 = vadd.f32 %v5380_v40, %v8296_v21  ;;  %v3963_v17 = vpop.f32.mrb[83].mxu1  ;;  %v8307_v21 = vld [vmem:[#allocation51_spill] sm:$0xff] }
 0x7c9   : > { %v4079_v11 = vadd.f32 %v7752_v51, %v4039_v20  ;;  %v4040_v63 = vadd.f32 %v3963_v17, %v8297_v33  ;;  %v8306_v20 = vld [vmem:[#allocation3_spill] sm:$0xff]  ;;  %v8308_v33 = vld [vmem:[#allocation2_spill] sm:$0xff] }
 0x7ca   : > { %v4082_v39 = vadd.f32 %v7752_v51, %v4042_v19  ;;  %v4113_v58 = vmax.f32 %v4081_v2, 0.0 }
 0x7cb   : > { %v4080_v49 = vadd.f32 %v7752_v51, %v4040_v63  ;;  %v4111_v44 = vmax.f32 %v4079_v11, 0.0 }
 0x7cc   : > { %v4114_v22 = vmax.f32 %v4082_v39, 0.0 }
 0x7cd   : > { %v4112_v35 = vmax.f32 %v4080_v49, 0.0 }
 0x7ce   : > { %v4136_v36 = vpack.c.bf16 %v4114_v22, %v4113_v58  ;;  %v8309_v58 = vld [vmem:[#allocation4_spill] sm:$0xff] }
 0x7cf   : > { %v4135_v6 = vpack.c.bf16 %v4112_v35, %v4111_v44  ;;  %v7842_v44 = vld [vmem:[%s8065_s10] ss:$0 sm:$0xff] }
 0x7d1   : > { %5411 = vmatprep.mubr.msk.bf16.mxu0 %vm909_vm2, %v4135_v6 }
 0x7d2   : > { %5412 = vmatmul.mubr.msk.bf16.gmra.mrb[144].mxu0 %vm909_vm2, %v4136_v36 }
 0x7e5   : > { %v5383_v26 = vpop.f32.mrb[84].mxu1 }
 0x7e6   : > { %v4045_v7 = vadd.f32 %v5383_v26, %v8298_v60  ;;  %v3976_v23 = vpop.f32.mrb[85].mxu1 }
 0x7e7   : > { %v4043_v34 = vadd.f32 %v3976_v23, %v8299_v55  ;;  %v5384_v5 = vpop.f32.mrb[86].mxu1 }
 0x7e8   : > { %v4085_v3 = vadd.f32 %v7752_v51, %v4045_v7  ;;  %v4046_v18 = vadd.f32 %v5384_v5, %v8300_v27  ;;  %v3979_v0 = vpop.f32.mrb[87].mxu1 }
 0x7e9   : > { %v4083_v29 = vadd.f32 %v7752_v51, %v4043_v34  ;;  %v4044_v50 = vadd.f32 %v3979_v0, %v8301_v57 }
 0x7ea   : > { %v4086_v12 = vadd.f32 %v7752_v51, %v4046_v18  ;;  %v4117_v37 = vmax.f32 %v4085_v3, 0.0 }
 0x7eb   : > { %v4084_v61 = vadd.f32 %v7752_v51, %v4044_v50  ;;  %v4115_v48 = vmax.f32 %v4083_v29, 0.0 }
 0x7ec   : > { %v4118_v14 = vmax.f32 %v4086_v12, 0.0 }
 0x7ed   : > { %v4116_v52 = vmax.f32 %v4084_v61, 0.0 }
 0x7ee   : > { %v4138_v25 = vpack.c.bf16 %v4118_v14, %v4117_v37 }
 0x7ef   : > { %v4137_v8 = vpack.c.bf16 %v4116_v52, %v4115_v48 }
 0x7f1   : > { %5415 = vmatprep.mubr.msk.bf16.mxu0 %vm909_vm2, %v4137_v8 }
 0x7f2   : > { %5416 = vmatmul.mubr.msk.bf16.gmra.mrb[148].mxu0 %vm909_vm2, %v4138_v25 }
 0x805   : > { %v5387_v62 = vpop.f32.mrb[88].mxu1 }
 0x806   : > { %v4049_v32 = vadd.f32 %v5387_v62, %v8302_v30  ;;  %v3992_v10 = vpop.f32.mrb[89].mxu1 }
 0x807   : > { %v4047_v45 = vadd.f32 %v3992_v10, %v8303_v38  ;;  %v5388_v4 = vpop.f32.mrb[90].mxu1 }
 0x808   : > { %v4089_v1 = vadd.f32 %v7752_v51, %v4049_v32  ;;  %v4050_v15 = vadd.f32 %v5388_v4, %v8304_v59  ;;  %v3995_v56 = vpop.f32.mrb[91].mxu1 }
 0x809   : > { %v4087_v16 = vadd.f32 %v7752_v51, %v4047_v45  ;;  %v4048_v42 = vadd.f32 %v3995_v56, %v8305_v46 }
 0x80a   : > { %v4090_v31 = vadd.f32 %v7752_v51, %v4050_v15  ;;  %v4121_v41 = vmax.f32 %v4089_v1, 0.0 }
 0x80b   : > { %v4088_v53 = vadd.f32 %v7752_v51, %v4048_v42  ;;  %v4119_v54 = vmax.f32 %v4087_v16, 0.0 }
 0x80c   : > { %v4122_v9 = vmax.f32 %v4090_v31, 0.0 }
 0x80d   : > { %v4120_v24 = vmax.f32 %v4088_v53, 0.0 }
 0x80e   : > { %v4140_v28 = vpack.c.bf16 %v4122_v9, %v4121_v41 }
 0x80f   : > { %v4139_v13 = vpack.c.bf16 %v4120_v24, %v4119_v54 }
 0x811   : > { %5419 = vmatprep.mubr.msk.bf16.mxu0 %vm909_vm2, %v4139_v13 }
 0x812   : > { %5420 = vmatmul.mubr.msk.bf16.gmra.mrb[152].mxu0 %vm909_vm2, %v4140_v28 }
 0x81f   : > { %v5391_v47 = vpop.f32.mrb[92].mxu1 }
 0x820   : > { %v4053_v40 = vadd.f32 %v5391_v47, %v8306_v20  ;;  %v4008_v2 = vpop.f32.mrb[93].mxu1 }
 0x821   : > { %v4051_v19 = vadd.f32 %v4008_v2, %v8307_v21  ;;  %v5392_v17 = vpop.f32.mrb[94].mxu1 }
 0x822   : > { %v4093_v11 = vadd.f32 %v7752_v51, %v4053_v40  ;;  %v4054_v63 = vadd.f32 %v5392_v17, %v8308_v33  ;;  %v4011_v39 = vpop.f32.mrb[95].mxu1 }
 0x823   : > { %v4091_v49 = vadd.f32 %v7752_v51, %v4051_v19  ;;  %v4052_v22 = vadd.f32 %v4011_v39, %v8309_v58 }
 0x824   : > { %v4094_v35 = vadd.f32 %v7752_v51, %v4054_v63  ;;  %v4125_v26 = vmax.f32 %v4093_v11, 0.0 }
 0x825   : > { %v4092_v36 = vadd.f32 %v7752_v51, %v4052_v22  ;;  %v5397_v6 = vpop.f32.mrb[128].mxu0  ;;  %v4123_v55 = vmax.f32 %v4091_v49, 0.0 }
 0x826   : > { %v4126_v60 = vmax.f32 %v4094_v35, 0.0  ;;  %v4249_v7 = vadd.f32 %v5397_v6, %v7842_v44  ;;  %v4240_v23 = vpop.f32.mrb[129].mxu0 }
 0x827   : > { %v4124_v34 = vmax.f32 %v4092_v36, 0.0  ;;  %v4241_v5 = vadd.f32 %v7842_v44, %v4240_v23  ;;  %v5398_v3 = vpop.f32.mrb[130].mxu0 }
 0x828   : > { %v4142_v27 = vpack.c.bf16 %v4126_v60, %v4125_v26  ;;  %v4252_v18 = vadd.f32 %v5398_v3, %v7842_v44  ;;  %v4243_v0 = vpop.f32.mrb[131].mxu0  ;;  %v4369_v50 = vmax.f32 %v4249_v7, 0.0 }
 0x829   : > { %v4141_v29 = vpack.c.bf16 %v4124_v34, %v4123_v55  ;;  %v4244_v57 = vadd.f32 %v7842_v44, %v4243_v0  ;;  %v4367_v12 = vmax.f32 %v4241_v5, 0.0 }
 0x82a   : > { %v4370_v51 = vmax.f32 %v4252_v18, 0.0 }
 0x82b   : > { %v4368_v61 = vmax.f32 %v4244_v57, 0.0  ;;  %5423 = vmatprep.mubr.msk.bf16.mxu0 %vm909_vm2, %v4141_v29 }
 0x82c   : > { %v4400_v37 = vpack.c.bf16 %v4370_v51, %v4369_v50  ;;  %5424 = vmatmul.mubr.msk.bf16.gmra.mrb[156].mxu0 %vm909_vm2, %v4142_v27 }
 0x82d   : > { %v4399_v14 = vpack.c.bf16 %v4368_v61, %v4367_v12 }
 0x82f   : > { %4984 = vmatmul.mubr.msk.bf16.vlgmr.msra.gmra.mrb[96].mxu1 %vm909_vm2, %v4399_v14 }
 0x830   : > { %4529 = vmatprep.mubr.bf16.mxu1 %v5521_v43 }
 0x837   : > { %4985 = vmatmul.mubr.msk.bf16.gmra.mrb[100].mxu1 %vm909_vm2, %v4400_v37 }
 0x838   : > { %4539 = vmatprep.mubr.bf16.mxu1 %v5521_v43 }
 0x845   : > { %v5401_v48 = vpop.f32.mrb[132].mxu0 }
 0x846   : > { %v4265_v52 = vadd.f32 %v5401_v48, %v7842_v44  ;;  %v4256_v25 = vpop.f32.mrb[133].mxu0 }
 0x847   : > { %v4257_v8 = vadd.f32 %v7842_v44, %v4256_v25  ;;  %v5402_v62 = vpop.f32.mrb[134].mxu0 }
 0x848   : > { %v4268_v30 = vadd.f32 %v5402_v62, %v7842_v44  ;;  %v4259_v32 = vpop.f32.mrb[135].mxu0  ;;  %v4373_v38 = vmax.f32 %v4265_v52, 0.0 }
 0x849   : > { %v4260_v10 = vadd.f32 %v7842_v44, %v4259_v32  ;;  %v4371_v4 = vmax.f32 %v4257_v8, 0.0 }
 0x84a   : > { %v4374_v45 = vmax.f32 %v4268_v30, 0.0 }
 0x84b   : > { %v4372_v1 = vmax.f32 %v4260_v10, 0.0 }
 0x84c   : > { %v4402_v59 = vpack.c.bf16 %v4374_v45, %v4373_v38 }
 0x84d   : > { %v4401_v15 = vpack.c.bf16 %v4372_v1, %v4371_v4 }
 0x84f   : > { %4986 = vmatmul.mubr.msk.bf16.gmra.mrb[104].mxu1 %vm909_vm2, %v4401_v15 }
 0x850   : > { %4549 = vmatprep.mubr.bf16.mxu1 %v5521_v43 }
 0x857   : > { %4987 = vmatmul.mubr.msk.bf16.gmra.mrb[108].mxu1 %vm909_vm2, %v4402_v59 }
 0x858   : > { %4559 = vmatprep.mubr.bf16.mxu1 %v5521_v43 }
 0x865   : > { %v5405_v56 = vpop.f32.mrb[136].mxu0 }
 0x866   : > { %v4281_v16 = vadd.f32 %v5405_v56, %v7842_v44  ;;  %v4272_v46 = vpop.f32.mrb[137].mxu0 }
 0x867   : > { %v4273_v42 = vadd.f32 %v7842_v44, %v4272_v46  ;;  %v5406_v31 = vpop.f32.mrb[138].mxu0 }
 0x868   : > { %v4284_v53 = vadd.f32 %v5406_v31, %v7842_v44  ;;  %v4275_v41 = vpop.f32.mrb[139].mxu0  ;;  %v4377_v54 = vmax.f32 %v4281_v16, 0.0 }
 0x869   : > { %v4276_v9 = vadd.f32 %v7842_v44, %v4275_v41  ;;  %v4375_v28 = vmax.f32 %v4273_v42, 0.0 }
 0x86a   : > { %v4378_v24 = vmax.f32 %v4284_v53, 0.0 }
 0x86b   : > { %v4376_v13 = vmax.f32 %v4276_v9, 0.0 }
 0x86c   : > { %v4404_v47 = vpack.c.bf16 %v4378_v24, %v4377_v54  ;;  %v4419_v54 = vlaneseq }
 0x86d   : > { %v4403_v20 = vpack.c.bf16 %v4376_v13, %v4375_v28  ;;  %v4417_v13 = vld [vmem:[%s8067_s12] sm:$0x3] }
 0x86e   : > { %v4420_v24 = vshrl.u32 %v4419_v54, 7 }
 0x86f   : > { %4988 = vmatmul.mubr.msk.bf16.gmra.mrb[112].mxu1 %vm909_vm2, %v4403_v20 }
 0x870   : > { %4569 = vmatprep.mubr.bf16.mxu1 %v5521_v43  ;;  %v4421_v28 = vsub.s32 0, %v4420_v24 }
 0x877   : > { %4989 = vmatmul.mubr.msk.bf16.gmra.mrb[116].mxu1 %vm909_vm2, %v4404_v47  ;;  %v4425_v47 = vsub.s32 1, %v4420_v24 }
 0x878   : > { %4579 = vmatprep.mubr.bf16.mxu1 %v5521_v43 }
 0x885   : > { %v5409_v40 = vpop.f32.mrb[140].mxu0 }
 0x886   : > { %v4297_v2 = vadd.f32 %v5409_v40, %v7842_v44  ;;  %v4288_v21 = vpop.f32.mrb[141].mxu0  ;;  %v7908_v40 = vrot.slane %v4417_v13, %v4421_v28 }
 0x887   : > { %v4289_v19 = vadd.f32 %v7842_v44, %v4288_v21  ;;  %v5410_v17 = vpop.f32.mrb[142].mxu0 }
 0x888   : > { %v4300_v11 = vadd.f32 %v5410_v17, %v7842_v44  ;;  %v4291_v33 = vpop.f32.mrb[143].mxu0  ;;  %v4381_v39 = vmax.f32 %v4297_v2, 0.0 }
 0x889   : > { %v4292_v63 = vadd.f32 %v7842_v44, %v4291_v33  ;;  %v4379_v58 = vmax.f32 %v4289_v19, 0.0  ;;  %v7911_v19 = vrot.slane %v4417_v13, %v4425_v47 }
 0x88a   : > { %v4382_v49 = vmax.f32 %v4300_v11, 0.0 }
 0x88b   : > { %v4380_v22 = vmax.f32 %v4292_v63, 0.0 }
 0x88c   : > { %v4406_v35 = vpack.c.bf16 %v4382_v49, %v4381_v39 }
 0x88d   : > { %v4405_v36 = vpack.c.bf16 %v4380_v22, %v4379_v58 }
 0x88f   : > { %4990 = vmatmul.mubr.msk.bf16.gmra.mrb[120].mxu1 %vm909_vm2, %v4405_v36 }
 0x890   : > { %4589 = vmatprep.mubr.bf16.mxu1 %v5521_v43 }
 0x897   : > { %4991 = vmatmul.mubr.msk.bf16.gmra.mrb[124].mxu1 %vm909_vm2, %v4406_v35 }
 0x898   : > { %4599 = vmatprep.mubr.bf16.mxu1 %v5521_v43 }
 0x8a5   : > { %v5413_v6 = vpop.f32.mrb[144].mxu0 }
 0x8a6   : > { %v4313_v26 = vadd.f32 %v5413_v6, %v7842_v44  ;;  %v4304_v60 = vpop.f32.mrb[145].mxu0 }
 0x8a7   : > { %v4305_v7 = vadd.f32 %v7842_v44, %v4304_v60  ;;  %v5414_v23 = vpop.f32.mrb[146].mxu0 }
 0x8a8   : > { %v4316_v55 = vadd.f32 %v5414_v23, %v7842_v44  ;;  %v4307_v34 = vpop.f32.mrb[147].mxu0  ;;  %v4385_v3 = vmax.f32 %v4313_v26, 0.0 }
 0x8a9   : > { %v4308_v5 = vadd.f32 %v7842_v44, %v4307_v34  ;;  %v4383_v18 = vmax.f32 %v4305_v7, 0.0 }
 0x8aa   : > { %v4386_v27 = vmax.f32 %v4316_v55, 0.0 }
 0x8ab   : > { %v4384_v0 = vmax.f32 %v4308_v5, 0.0 }
 0x8ac   : > { %v4408_v29 = vpack.c.bf16 %v4386_v27, %v4385_v3 }
 0x8ad   : > { %v4407_v57 = vpack.c.bf16 %v4384_v0, %v4383_v18 }
 0x8af   : > { %4992 = vmatmul.mubr.msk.bf16.gmra.mrb[128].mxu1 %vm909_vm2, %v4407_v57 }
 0x8b0   : > { %4609 = vmatprep.mubr.bf16.mxu1 %v5521_v43 }
 0x8b7   : > { %4993 = vmatmul.mubr.msk.bf16.gmra.mrb[132].mxu1 %vm909_vm2, %v4408_v29 }
 0x8b8   : > { %4619 = vmatprep.mubr.bf16.mxu1 %v5521_v43 }
 0x8c5   : > { %v5417_v50 = vpop.f32.mrb[148].mxu0 }
 0x8c6   : > { %v4329_v51 = vadd.f32 %v5417_v50, %v7842_v44  ;;  %v4320_v12 = vpop.f32.mrb[149].mxu0 }
 0x8c7   : > { %v4321_v61 = vadd.f32 %v7842_v44, %v4320_v12  ;;  %v5418_v37 = vpop.f32.mrb[150].mxu0 }
 0x8c8   : > { %v4332_v14 = vadd.f32 %v5418_v37, %v7842_v44  ;;  %v4323_v48 = vpop.f32.mrb[151].mxu0  ;;  %v4389_v25 = vmax.f32 %v4329_v51, 0.0 }
 0x8c9   : > { %v4324_v52 = vadd.f32 %v7842_v44, %v4323_v48  ;;  %v4387_v62 = vmax.f32 %v4321_v61, 0.0 }
 0x8ca   : > { %v4390_v8 = vmax.f32 %v4332_v14, 0.0 }
 0x8cb   : > { %v4388_v30 = vmax.f32 %v4324_v52, 0.0 }
 0x8cc   : > { %v4410_v32 = vpack.c.bf16 %v4390_v8, %v4389_v25 }
 0x8cd   : > { %v4409_v10 = vpack.c.bf16 %v4388_v30, %v4387_v62 }
 0x8cf   : > { %4994 = vmatmul.mubr.msk.bf16.gmra.mrb[136].mxu1 %vm909_vm2, %v4409_v10 }
 0x8d0   : > { %4629 = vmatprep.mubr.bf16.mxu1 %v5521_v43 }
 0x8d7   : > { %4995 = vmatmul.mubr.msk.bf16.gmra.mrb[140].mxu1 %vm909_vm2, %v4410_v32 }
 0x8d8   : > { %4639 = vmatprep.mubr.bf16.mxu1 %v5521_v43 }
 0x8e5   : > { %v5421_v38 = vpop.f32.mrb[152].mxu0 }
 0x8e6   : > { %v4345_v45 = vadd.f32 %v5421_v38, %v7842_v44  ;;  %v4336_v4 = vpop.f32.mrb[153].mxu0 }
 0x8e7   : > { %v4337_v1 = vadd.f32 %v7842_v44, %v4336_v4  ;;  %v5422_v59 = vpop.f32.mrb[154].mxu0 }
 0x8e8   : > { %v4348_v15 = vadd.f32 %v5422_v59, %v7842_v44  ;;  %v4339_v56 = vpop.f32.mrb[155].mxu0  ;;  %v4393_v46 = vmax.f32 %v4345_v45, 0.0 }
 0x8e9   : > { %v4340_v16 = vadd.f32 %v7842_v44, %v4339_v56  ;;  %v4391_v31 = vmax.f32 %v4337_v1, 0.0 }
 0x8ea   : > { %v4394_v42 = vmax.f32 %v4348_v15, 0.0 }
 0x8eb   : > { %v4392_v53 = vmax.f32 %v4340_v16, 0.0 }
 0x8ec   : > { %v4412_v41 = vpack.c.bf16 %v4394_v42, %v4393_v46 }
 0x8ed   : > { %v4411_v9 = vpack.c.bf16 %v4392_v53, %v4391_v31 }
 0x8ef   : > { %4996 = vmatmul.mubr.msk.bf16.gmra.mrb[144].mxu1 %vm909_vm2, %v4411_v9 }
 0x8f0   : > { %4649 = vmatprep.mubr.bf16.mxu1 %v5521_v43 }
 0x8f7   : > { %4997 = vmatmul.mubr.msk.bf16.gmra.mrb[148].mxu1 %vm909_vm2, %v4412_v41 }
 0x8f8   : > { %4659 = vmatprep.mubr.bf16.mxu1 %v5521_v43 }
 0x8ff   : > { %v5425_v20 = vpop.f32.mrb[156].mxu0 }
 0x900   : > { %v4361_v2 = vadd.f32 %v5425_v20, %v7842_v44  ;;  %v4352_v21 = vpop.f32.mrb[157].mxu0 }
 0x901   : > { %v4353_v17 = vadd.f32 %v7842_v44, %v4352_v21  ;;  %v5426_v11 = vpop.f32.mrb[158].mxu0 }
 0x902   : > { %v4364_v33 = vadd.f32 %v5426_v11, %v7842_v44  ;;  %v4355_v63 = vpop.f32.mrb[159].mxu0  ;;  %v4521_v39 = vpop.f32.mrb[96].mxu1  ;;  %v4397_v35 = vmax.f32 %v4361_v2, 0.0 }
 0x903   : > { %v4356_v49 = vadd.f32 %v7842_v44, %v4355_v63  ;;  %v4522_v58 = vadd.f32 %v4521_v39, %v7908_v40  ;;  %v4523_v22 = vpop.f32.mrb[97].mxu1  ;;  %v4395_v60 = vmax.f32 %v4353_v17, 0.0 }
 0x904   : > { %v4398_v36 = vmax.f32 %v4364_v33, 0.0  ;;  %v4524_v6 = vadd.f32 %v4523_v22, %v7911_v19  ;;  %v4525_v26 = vpop.f32.mrb[98].mxu1 }
 0x905   : > { %v4396_v7 = vmax.f32 %v4356_v49, 0.0  ;;  %4680 = vst [vmem:[%s7918_s19] sm:$0xff] %v4522_v58  ;;  %v4526_v23 = vadd.f32 %v4525_v26, %v7908_v40  ;;  %v4527_v55 = vpop.f32.mrb[99].mxu1 }
 0x906   : > { %v4414_v34 = vpack.c.bf16 %v4398_v36, %v4397_v35  ;;  %4681 = vst [vmem:[%s7918_s19 + $0x8] sm:$0xff] %v4524_v6  ;;  %v4528_v44 = vadd.f32 %v4527_v55, %v7911_v19 }
 0x907   : > { %v4413_v5 = vpack.c.bf16 %v4396_v7, %v4395_v60  ;;  %4682 = vst [vmem:[%s7918_s19 + $0x10] sm:$0xff] %v4526_v23 }
 0x908   : > { %4683 = vst [vmem:[%s7918_s19 + $0x18] sm:$0xff] %v4528_v44 }
 0x909   : > { %4998 = vmatmul.mubr.msk.bf16.gmra.mrb[152].mxu1 %vm909_vm2, %v4413_v5 }
 0x90a   : > { %v4531_v3 = vpop.f32.mrb[100].mxu1  ;;  %4669 = vmatprep.mubr.bf16.mxu1 %v5521_v43 }
 0x90b   : > { %v4532_v27 = vadd.f32 %v4531_v3, %v7908_v40  ;;  %v4533_v18 = vpop.f32.mrb[101].mxu1 }
 0x90c   : > { %v4534_v0 = vadd.f32 %v4533_v18, %v7911_v19  ;;  %v4535_v29 = vpop.f32.mrb[102].mxu1 }
 0x90d   : > { %4684 = vst [vmem:[%s7918_s19 + $0x20] sm:$0xff] %v4532_v27  ;;  %v4536_v57 = vadd.f32 %v4535_v29, %v7908_v40  ;;  %v4537_v50 = vpop.f32.mrb[103].mxu1 }
 0x90e   : > { %4685 = vst [vmem:[%s7918_s19 + $0x28] sm:$0xff] %v4534_v0  ;;  %v4538_v51 = vadd.f32 %v4537_v50, %v7911_v19 }
 0x90f   : > { %4686 = vst [vmem:[%s7918_s19 + $0x30] sm:$0xff] %v4536_v57 }
 0x910   : > { %4687 = vst [vmem:[%s7918_s19 + $0x38] sm:$0xff] %v4538_v51 }
 0x911   : > { %4999 = vmatmul.mubr.msk.bf16.gmra.mrb[156].mxu1 %vm909_vm2, %v4414_v34 }
 0x922   : > { %v4541_v43 = vpop.f32.mrb[104].mxu1 }
 0x923   : > { %v4542_v12 = vadd.f32 %v4541_v43, %v7908_v40  ;;  %v4543_v61 = vpop.f32.mrb[105].mxu1 }
 0x924   : > { %v4544_v37 = vadd.f32 %v4543_v61, %v7911_v19  ;;  %v4545_v14 = vpop.f32.mrb[106].mxu1 }
 0x925   : > { %4688 = vst [vmem:[%s7918_s19 + $0x40] sm:$0xff] %v4542_v12  ;;  %v4546_v48 = vadd.f32 %v4545_v14, %v7908_v40  ;;  %v4547_v52 = vpop.f32.mrb[107].mxu1 }
 0x926   : > { %4689 = vst [vmem:[%s7918_s19 + $0x48] sm:$0xff] %v4544_v37  ;;  %v4548_v25 = vadd.f32 %v4547_v52, %v7911_v19 }
 0x927   : > { %4690 = vst [vmem:[%s7918_s19 + $0x50] sm:$0xff] %v4546_v48 }
 0x928   : > { %4691 = vst [vmem:[%s7918_s19 + $0x58] sm:$0xff] %v4548_v25 }
 0x92a   : > { %v4551_v8 = vpop.f32.mrb[108].mxu1 }
 0x92b   : > { %v4552_v62 = vadd.f32 %v4551_v8, %v7908_v40  ;;  %v4553_v30 = vpop.f32.mrb[109].mxu1 }
 0x92c   : > { %v4554_v32 = vadd.f32 %v4553_v30, %v7911_v19  ;;  %v4555_v10 = vpop.f32.mrb[110].mxu1 }
 0x92d   : > { %4692 = vst [vmem:[%s7918_s19 + $0x60] sm:$0xff] %v4552_v62  ;;  %v4556_v38 = vadd.f32 %v4555_v10, %v7908_v40  ;;  %v4557_v45 = vpop.f32.mrb[111].mxu1 }
 0x92e   : > { %4693 = vst [vmem:[%s7918_s19 + $0x68] sm:$0xff] %v4554_v32  ;;  %v4558_v4 = vadd.f32 %v4557_v45, %v7911_v19 }
 0x92f   : > { %4694 = vst [vmem:[%s7918_s19 + $0x70] sm:$0xff] %v4556_v38 }
 0x930   : > { %4695 = vst [vmem:[%s7918_s19 + $0x78] sm:$0xff] %v4558_v4 }
 0x942   : > { %v4561_v1 = vpop.f32.mrb[112].mxu1 }
 0x943   : > { %v4562_v59 = vadd.f32 %v4561_v1, %v7908_v40  ;;  %v4563_v15 = vpop.f32.mrb[113].mxu1 }
 0x944   : > { %v4564_v56 = vadd.f32 %v4563_v15, %v7911_v19  ;;  %v4565_v16 = vpop.f32.mrb[114].mxu1 }
 0x945   : > { %4696 = vst [vmem:[%s7918_s19 + $0x80] sm:$0xff] %v4562_v59  ;;  %v4566_v46 = vadd.f32 %v4565_v16, %v7908_v40  ;;  %v4567_v42 = vpop.f32.mrb[115].mxu1 }
 0x946   : > { %4697 = vst [vmem:[%s7918_s19 + $0x88] sm:$0xff] %v4564_v56  ;;  %v4568_v31 = vadd.f32 %v4567_v42, %v7911_v19 }
 0x947   : > { %4698 = vst [vmem:[%s7918_s19 + $0x90] sm:$0xff] %v4566_v46 }
 0x948   : > { %4699 = vst [vmem:[%s7918_s19 + $0x98] sm:$0xff] %v4568_v31 }
 0x94a   : > { %v4571_v53 = vpop.f32.mrb[116].mxu1 }
 0x94b   : > { %v4572_v41 = vadd.f32 %v4571_v53, %v7908_v40  ;;  %v4573_v9 = vpop.f32.mrb[117].mxu1 }
 0x94c   : > { %v4574_v54 = vadd.f32 %v4573_v9, %v7911_v19  ;;  %v4575_v24 = vpop.f32.mrb[118].mxu1 }
 0x94d   : > { %4700 = vst [vmem:[%s7918_s19 + $0xa0] sm:$0xff] %v4572_v41  ;;  %v4576_v28 = vadd.f32 %v4575_v24, %v7908_v40  ;;  %v4577_v13 = vpop.f32.mrb[119].mxu1 }
 0x94e   : > { %4701 = vst [vmem:[%s7918_s19 + $0xa8] sm:$0xff] %v4574_v54  ;;  %v4578_v47 = vadd.f32 %v4577_v13, %v7911_v19 }
 0x94f   : > { %4702 = vst [vmem:[%s7918_s19 + $0xb0] sm:$0xff] %v4576_v28 }
 0x950   : > { %4703 = vst [vmem:[%s7918_s19 + $0xb8] sm:$0xff] %v4578_v47 }
 0x962   : > { %v4581_v20 = vpop.f32.mrb[120].mxu1 }
 0x963   : > { %v4582_v2 = vadd.f32 %v4581_v20, %v7908_v40  ;;  %v4583_v21 = vpop.f32.mrb[121].mxu1 }
 0x964   : > { %v4584_v17 = vadd.f32 %v4583_v21, %v7911_v19  ;;  %v4585_v11 = vpop.f32.mrb[122].mxu1 }
 0x965   : > { %4704 = vst [vmem:[%s7918_s19 + $0xc0] sm:$0xff] %v4582_v2  ;;  %v4586_v33 = vadd.f32 %v4585_v11, %v7908_v40  ;;  %v4587_v63 = vpop.f32.mrb[123].mxu1 }
 0x966   : > { %4705 = vst [vmem:[%s7918_s19 + $0xc8] sm:$0xff] %v4584_v17  ;;  %v4588_v39 = vadd.f32 %v4587_v63, %v7911_v19 }
 0x967   : > { %4706 = vst [vmem:[%s7918_s19 + $0xd0] sm:$0xff] %v4586_v33 }
 0x968   : > { %4707 = vst [vmem:[%s7918_s19 + $0xd8] sm:$0xff] %v4588_v39 }
 0x96a   : > { %v4591_v49 = vpop.f32.mrb[124].mxu1 }
 0x96b   : > { %v4592_v58 = vadd.f32 %v4591_v49, %v7908_v40  ;;  %v4593_v22 = vpop.f32.mrb[125].mxu1 }
 0x96c   : > { %v4594_v35 = vadd.f32 %v4593_v22, %v7911_v19  ;;  %v4595_v36 = vpop.f32.mrb[126].mxu1 }
 0x96d   : > { %4708 = vst [vmem:[%s7918_s19 + $0xe0] sm:$0xff] %v4592_v58  ;;  %v4596_v6 = vadd.f32 %v4595_v36, %v7908_v40  ;;  %v4597_v26 = vpop.f32.mrb[127].mxu1 }
 0x96e   : > { %4709 = vst [vmem:[%s7918_s19 + $0xe8] sm:$0xff] %v4594_v35  ;;  %v4598_v60 = vadd.f32 %v4597_v26, %v7911_v19 }
 0x96f   : > { %4710 = vst [vmem:[%s7918_s19 + $0xf0] sm:$0xff] %v4596_v6 }
 0x970   : > { %4711 = vst [vmem:[%s7918_s19 + $0xf8] sm:$0xff] %v4598_v60 }
 0x982   : > { %v4601_v7 = vpop.f32.mrb[128].mxu1 }
 0x983   : > { %v4602_v23 = vadd.f32 %v4601_v7, %v7908_v40  ;;  %v4603_v55 = vpop.f32.mrb[129].mxu1 }
 0x984   : > { %v4604_v34 = vadd.f32 %v4603_v55, %v7911_v19  ;;  %v4605_v44 = vpop.f32.mrb[130].mxu1 }
 0x985   : > { %4712 = vst [vmem:[%s7918_s19 + $0x100] sm:$0xff] %v4602_v23  ;;  %v4606_v5 = vadd.f32 %v4605_v44, %v7908_v40  ;;  %v4607_v3 = vpop.f32.mrb[131].mxu1 }
 0x986   : > { %4713 = vst [vmem:[%s7918_s19 + $0x108] sm:$0xff] %v4604_v34  ;;  %v4608_v27 = vadd.f32 %v4607_v3, %v7911_v19 }
 0x987   : > { %4714 = vst [vmem:[%s7918_s19 + $0x110] sm:$0xff] %v4606_v5 }
 0x988   : > { %4715 = vst [vmem:[%s7918_s19 + $0x118] sm:$0xff] %v4608_v27 }
 0x98a   : > { %v4611_v18 = vpop.f32.mrb[132].mxu1 }
 0x98b   : > { %v4612_v0 = vadd.f32 %v4611_v18, %v7908_v40  ;;  %v4613_v29 = vpop.f32.mrb[133].mxu1 }
 0x98c   : > { %v4614_v57 = vadd.f32 %v4613_v29, %v7911_v19  ;;  %v4615_v50 = vpop.f32.mrb[134].mxu1 }
 0x98d   : > { %4716 = vst [vmem:[%s7918_s19 + $0x120] sm:$0xff] %v4612_v0  ;;  %v4616_v51 = vadd.f32 %v4615_v50, %v7908_v40  ;;  %v4617_v43 = vpop.f32.mrb[135].mxu1 }
 0x98e   : > { %4717 = vst [vmem:[%s7918_s19 + $0x128] sm:$0xff] %v4614_v57  ;;  %v4618_v12 = vadd.f32 %v4617_v43, %v7911_v19 }
 0x98f   : > { %4718 = vst [vmem:[%s7918_s19 + $0x130] sm:$0xff] %v4616_v51 }
 0x990   : > { %4719 = vst [vmem:[%s7918_s19 + $0x138] sm:$0xff] %v4618_v12 }
 0x9a2   : > { %v4621_v61 = vpop.f32.mrb[136].mxu1 }
 0x9a3   : > { %v4622_v37 = vadd.f32 %v4621_v61, %v7908_v40  ;;  %v4623_v14 = vpop.f32.mrb[137].mxu1 }
 0x9a4   : > { %v4624_v48 = vadd.f32 %v4623_v14, %v7911_v19  ;;  %v4625_v52 = vpop.f32.mrb[138].mxu1 }
 0x9a5   : > { %4720 = vst [vmem:[%s7918_s19 + $0x140] sm:$0xff] %v4622_v37  ;;  %v4626_v25 = vadd.f32 %v4625_v52, %v7908_v40  ;;  %v4627_v8 = vpop.f32.mrb[139].mxu1 }
 0x9a6   : > { %4721 = vst [vmem:[%s7918_s19 + $0x148] sm:$0xff] %v4624_v48  ;;  %v4628_v62 = vadd.f32 %v4627_v8, %v7911_v19 }
 0x9a7   : > { %4722 = vst [vmem:[%s7918_s19 + $0x150] sm:$0xff] %v4626_v25 }
 0x9a8   : > { %4723 = vst [vmem:[%s7918_s19 + $0x158] sm:$0xff] %v4628_v62 }
 0x9aa   : > { %v4631_v30 = vpop.f32.mrb[140].mxu1 }
 0x9ab   : > { %v4632_v32 = vadd.f32 %v4631_v30, %v7908_v40  ;;  %v4633_v10 = vpop.f32.mrb[141].mxu1 }
 0x9ac   : > { %v4634_v38 = vadd.f32 %v4633_v10, %v7911_v19  ;;  %v4635_v45 = vpop.f32.mrb[142].mxu1 }
 0x9ad   : > { %4724 = vst [vmem:[%s7918_s19 + $0x160] sm:$0xff] %v4632_v32  ;;  %v4636_v4 = vadd.f32 %v4635_v45, %v7908_v40  ;;  %v4637_v1 = vpop.f32.mrb[143].mxu1 }
 0x9ae   : > { %4725 = vst [vmem:[%s7918_s19 + $0x168] sm:$0xff] %v4634_v38  ;;  %v4638_v59 = vadd.f32 %v4637_v1, %v7911_v19 }
 0x9af   : > { %4726 = vst [vmem:[%s7918_s19 + $0x170] sm:$0xff] %v4636_v4 }
 0x9b0   : > { %4727 = vst [vmem:[%s7918_s19 + $0x178] sm:$0xff] %v4638_v59 }
 0x9c2   : > { %v4641_v15 = vpop.f32.mrb[144].mxu1 }
 0x9c3   : > { %v4642_v56 = vadd.f32 %v4641_v15, %v7908_v40  ;;  %v4643_v16 = vpop.f32.mrb[145].mxu1 }
 0x9c4   : > { %v4644_v46 = vadd.f32 %v4643_v16, %v7911_v19  ;;  %v4645_v42 = vpop.f32.mrb[146].mxu1 }
 0x9c5   : > { %4728 = vst [vmem:[%s7918_s19 + $0x180] sm:$0xff] %v4642_v56  ;;  %v4646_v31 = vadd.f32 %v4645_v42, %v7908_v40  ;;  %v4647_v53 = vpop.f32.mrb[147].mxu1 }
 0x9c6   : > { %4729 = vst [vmem:[%s7918_s19 + $0x188] sm:$0xff] %v4644_v46  ;;  %v4648_v41 = vadd.f32 %v4647_v53, %v7911_v19 }
 0x9c7   : > { %4730 = vst [vmem:[%s7918_s19 + $0x190] sm:$0xff] %v4646_v31 }
 0x9c8   : > { %4731 = vst [vmem:[%s7918_s19 + $0x198] sm:$0xff] %v4648_v41 }
 0x9ca   : > { %v4651_v9 = vpop.f32.mrb[148].mxu1 }
 0x9cb   : > { %v4652_v54 = vadd.f32 %v4651_v9, %v7908_v40  ;;  %v4653_v24 = vpop.f32.mrb[149].mxu1 }
 0x9cc   : > { %v4654_v28 = vadd.f32 %v4653_v24, %v7911_v19  ;;  %v4655_v13 = vpop.f32.mrb[150].mxu1 }
 0x9cd   : > { %4732 = vst [vmem:[%s7918_s19 + $0x1a0] sm:$0xff] %v4652_v54  ;;  %v4656_v47 = vadd.f32 %v4655_v13, %v7908_v40  ;;  %v4657_v20 = vpop.f32.mrb[151].mxu1 }
 0x9ce   : > { %4733 = vst [vmem:[%s7918_s19 + $0x1a8] sm:$0xff] %v4654_v28  ;;  %v4658_v2 = vadd.f32 %v4657_v20, %v7911_v19 }
 0x9cf   : > { %4734 = vst [vmem:[%s7918_s19 + $0x1b0] sm:$0xff] %v4656_v47 }
 0x9d0   : > { %4735 = vst [vmem:[%s7918_s19 + $0x1b8] sm:$0xff] %v4658_v2 }
 0x9dc   : > { %v4661_v21 = vpop.f32.mrb[152].mxu1 }
 0x9dd   : > { %v4662_v17 = vadd.f32 %v4661_v21, %v7908_v40  ;;  %v4663_v11 = vpop.f32.mrb[153].mxu1 }
 0x9de   : > { %v4664_v33 = vadd.f32 %v4663_v11, %v7911_v19  ;;  %v4665_v63 = vpop.f32.mrb[154].mxu1 }
 0x9df   : > { %4736 = vst [vmem:[%s7918_s19 + $0x1c0] sm:$0xff] %v4662_v17  ;;  %v4666_v39 = vadd.f32 %v4665_v63, %v7908_v40  ;;  %v4667_v49 = vpop.f32.mrb[155].mxu1 }
 0x9e0   : > { %4737 = vst [vmem:[%s7918_s19 + $0x1c8] sm:$0xff] %v4664_v33  ;;  %v4668_v58 = vadd.f32 %v4667_v49, %v7911_v19 }
 0x9e1   : > { %4738 = vst [vmem:[%s7918_s19 + $0x1d0] sm:$0xff] %v4666_v39 }
 0x9e2   : > { %4739 = vst [vmem:[%s7918_s19 + $0x1d8] sm:$0xff] %v4668_v58 }
 0x9e4   : > { %v4671_v22 = vpop.f32.mrb[156].mxu1 }
 0x9e5   : > { %v4672_v35 = vadd.f32 %v4671_v22, %v7908_v40  ;;  %v4673_v36 = vpop.f32.mrb[157].mxu1 }
 0x9e6   : > { %v4674_v6 = vadd.f32 %v4673_v36, %v7911_v19  ;;  %v4675_v26 = vpop.f32.mrb[158].mxu1 }
 0x9e7   : > { %4740 = vst [vmem:[%s7918_s19 + $0x1e0] sm:$0xff] %v4672_v35  ;;  %v4676_v60 = vadd.f32 %v4675_v26, %v7908_v40  ;;  %v4677_v7 = vpop.f32.mrb[159].mxu1 }
 0x9e8   : > { %4741 = vst [vmem:[%s7918_s19 + $0x1e8] sm:$0xff] %v4674_v6  ;;  %v4678_v23 = vadd.f32 %v4677_v7, %v7911_v19 }
 0x9e9   : > { %4742 = vst [vmem:[%s7918_s19 + $0x1f0] sm:$0xff] %v4676_v60 }
 0x9ea   : > { %4743 = vst [vmem:[%s7918_s19 + $0x1f8] sm:$0xff] %v4678_v23 }
 0x9eb PF: > { %s24_s29 = sadd.s32 1, %s5514_s29  }
 0x9ec   : > { %p21_p4 = scmp.ge.s32.totalorder %s24_s29, 4  }
 0x9ee   :  { %23 = sbr.rel (!%p21_p4) target bundleno = 1 (0x1), region = 112 }

</bundles_post_ra>
